<compile_context>
chip_gen: v5e
topology: v5e:2x2
jax: 0.10.0
libtpu: 0.0.40
codegen_flags: <defaults>
</compile_context>

<pallas_src>
import functools

import jax
import jax.numpy as jnp
from jax.experimental import pallas as pl
from jax.experimental.pallas import tpu as pltpu

COMPUTE_DTYPE = jnp.bfloat16

# Scoped-VMEM budget note: the largest per-call footprint here is the fused conv
# block (double-buffered window + residual + output + full weights), a few MiB —
# well under the 32 MiB scoped default and v7x's 64 MiB physical VMEM.
_VMEM_LIMIT = 32 * 1024 * 1024


def _round_up(x, m):
    return (x + m - 1) // m * m


# ----------------------------------------------------------------------------
# Kernel 1: row-tiled GEMM with fused bias + optional SiLU (stem / head convs).
# ----------------------------------------------------------------------------
def _gemm_bias_act_kernel(a_ref, w_ref, b_ref, o_ref, *, act):
    acc = jnp.dot(a_ref[...], w_ref[...], preferred_element_type=jnp.float32)
    acc = acc + b_ref[...].astype(jnp.float32)          # (1, N) broadcast over rows
    if act == "silu":
        acc = acc * jax.nn.sigmoid(acc)                  # SiLU on f32 acc (v5e-safe)
    o_ref[...] = acc.astype(o_ref.dtype)


def gemm_bias_act(a, w, b, *, act="none", tm=256, out_dtype=COMPUTE_DTYPE):
    """a: (M, K), w: (K, N), b: (1, N) -> (M, N).  Tiled over M rows.

    TM=256..1024 rows keeps 2*(TM*K + TM*N)*2B (double-buffered bf16 blocks)
    plus the f32 accumulator comfortably inside the 32 MiB scoped / 64 MiB v7x
    VMEM budget while restoring DMA/compute pipelining.
    """
    M, K = a.shape
    Kw, N = w.shape
    assert K == Kw and b.shape == (1, N)
    tm = min(tm, _round_up(M, 8))
    Mp = _round_up(M, tm)
    if Mp != M:
        a = jnp.pad(a, ((0, Mp - M), (0, 0)))
    grid_m = Mp // tm

    cost = pl.CostEstimate(
        flops=2 * Mp * K * N,
        transcendentals=Mp * N if act == "silu" else 0,
        bytes_accessed=(Mp * K + K * N + N + Mp * N) * 2,
    )
    out = pl.pallas_call(
        functools.partial(_gemm_bias_act_kernel, act=act),
        out_shape=jax.ShapeDtypeStruct((Mp, N), out_dtype),
        grid=(grid_m,),
        in_specs=[
            pl.BlockSpec((tm, K), lambda i: (i, 0)),     # row tile of A
            pl.BlockSpec((K, N), lambda i: (0, 0)),      # full-resident weights
            pl.BlockSpec((1, N), lambda i: (0, 0)),      # bias
        ],
        out_specs=pl.BlockSpec((tm, N), lambda i: (i, 0)),
        compiler_params=pltpu.CompilerParams(
            dimension_semantics=("parallel",),           # v7x: shard tiles over 2 TCs
            vmem_limit_bytes=_VMEM_LIMIT,
        ),
        cost_estimate=cost,
    )(a, w, b)
    return out[:M] if Mp != M else out


# ----------------------------------------------------------------------------
# Kernel 2: fused 3x3/s1 conv + bias + SiLU + residual (fused-MBConv, expand=1).
# The 9 taps are 9 shifted (TR*W, C) x (C, C) GEMMs accumulated in f32 from a
# single VMEM-resident halo row-window -> no HBM im2col materialization, and
# the residual add rides free on the VPU inside the same kernel.
# ----------------------------------------------------------------------------
def _fused_mbconv3x3_kernel(xw_ref, w_ref, b_ref, res_ref, o_ref, *, tr, wo):
    # xw_ref : (1, 1, tr+2, wo+2, C)   padded halo row window
    # w_ref  : (9, C, Cout)            full-resident weights
    # b_ref  : (1, Cout)
    # res_ref: (1, tr, wo, C)          residual (stem output)
    # o_ref  : (1, tr, wo, Cout)
    C = w_ref.shape[1]
    cout = w_ref.shape[2]
    xw = xw_ref[0, 0]                                    # (tr+2, wo+2, C) in vregs
    acc = jnp.zeros((tr * wo, cout), jnp.float32)
    for dy in range(3):                                  # 9 taps, unrolled in-kernel
        for dx in range(3):
            patch = xw[dy:dy + tr, dx:dx + wo, :].reshape(tr * wo, C)
            acc += jnp.dot(patch, w_ref[dy * 3 + dx],
                           preferred_element_type=jnp.float32)
    acc = acc + b_ref[...].astype(jnp.float32)
    acc = acc * jax.nn.sigmoid(acc)                      # SiLU on f32 accumulator
    acc = acc + res_ref[0].reshape(tr * wo, C).astype(jnp.float32)  # fused residual
    o_ref[...] = acc.reshape(1, tr, wo, cout).astype(o_ref.dtype)


def fused_mbconv3x3(x_nhwc, w9, b, *, tr=8, out_dtype=COMPUTE_DTYPE):
    """x: (B, H, W, C) -> SiLU(conv3x3_s1(x) + b) + x  (C == Cout). Row-tiled."""
    B, H, W, C = x_nhwc.shape
    ntaps, cw, cout = w9.shape
    assert ntaps == 9 and cw == C and cout == C and b.shape == (1, cout)
    tr = min(tr, H)
    assert H % tr == 0, "row tile must divide H"
    nt = H // tr

    # Halo row windows (layout plumbing only, ~(tr+2)/tr HBM duplication — the
    # replacement for the 9x im2col blow-up).  Windows are non-overlapping blocks
    # so the BlockSpec pipeline double-buffers them across the grid.
    xp = jnp.pad(x_nhwc, ((0, 0), (1, 1), (1, 1), (0, 0)))
    xw = jnp.stack([xp[:, t * tr: t * tr + tr + 2] for t in range(nt)], axis=1)
    # xw: (B, nt, tr+2, W+2, C)

    cost = pl.CostEstimate(
        flops=2 * B * H * W * 9 * C * cout,
        transcendentals=B * H * W * cout,
        bytes_accessed=(xw.size + w9.size + b.size + x_nhwc.size
                        + B * H * W * cout) * 2,
    )
    return pl.pallas_call(
        functools.partial(_fused_mbconv3x3_kernel, tr=tr, wo=W),
        out_shape=jax.ShapeDtypeStruct((B, H, W, cout), out_dtype),
        grid=(B, nt),
        in_specs=[
            pl.BlockSpec((1, 1, tr + 2, W + 2, C), lambda bi, t: (bi, t, 0, 0, 0)),
            pl.BlockSpec((9, C, cout), lambda bi, t: (0, 0, 0)),
            pl.BlockSpec((1, cout), lambda bi, t: (0, 0)),
            pl.BlockSpec((1, tr, W, C), lambda bi, t: (bi, t, 0, 0)),
        ],
        out_specs=pl.BlockSpec((1, tr, W, cout), lambda bi, t: (bi, t, 0, 0)),
        compiler_params=pltpu.CompilerParams(
            dimension_semantics=("parallel", "parallel"),
            vmem_limit_bytes=_VMEM_LIMIT,
        ),
        cost_estimate=cost,
    )(xw, w9, b, x_nhwc)


# ----------------------------------------------------------------------------
# Kernel 3: tiled global average pool fused with the classifier GEMM.
# Grid iterates HW tiles ("arbitrary" reduction axis); an f32 VMEM scratch
# accumulates the sum; the last step scales by the static 1/HW and runs the
# (B, C) x (C, Np) classifier matmul + bias, so the pooled tensor never touches
# HBM and one kernel launch is saved.
# ----------------------------------------------------------------------------
def _pool_classifier_kernel(x_ref, w_ref, b_ref, o_ref, acc_ref, *, inv_hw):
    t = pl.program_id(0)

    @pl.when(t == 0)
    def _():
        acc_ref[...] = jnp.zeros_like(acc_ref)

    acc_ref[...] += jnp.sum(x_ref[...].astype(jnp.float32), axis=1)

    @pl.when(t == pl.num_programs(0) - 1)
    def _():
        pooled = (acc_ref[...] * inv_hw).astype(COMPUTE_DTYPE)   # static 1/HW scale
        logits = jnp.dot(pooled, w_ref[...], preferred_element_type=jnp.float32)
        logits = logits + b_ref[...].astype(jnp.float32)
        o_ref[...] = logits.astype(o_ref.dtype)


def global_pool_classifier(x_flat, w, b, *, thw=128, out_dtype=COMPUTE_DTYPE):
    """x: (B, HW, C), w: (C, Np), b: (1, Np) -> logits (B, Np) (Np lane-padded)."""
    B, HW, C = x_flat.shape
    cw, Np = w.shape
    assert cw == C and b.shape == (1, Np)
    thw = min(thw, HW)
    assert HW % thw == 0, "HW tile must divide HW"
    nt = HW // thw

    cost = pl.CostEstimate(
        flops=B * HW * C + 2 * B * C * Np,
        transcendentals=0,
        bytes_accessed=(B * HW * C + C * Np + Np + B * Np) * 2,
    )
    return pl.pallas_call(
        functools.partial(_pool_classifier_kernel, inv_hw=1.0 / HW),
        out_shape=jax.ShapeDtypeStruct((B, Np), out_dtype),
        grid=(nt,),
        in_specs=[
            pl.BlockSpec((B, thw, C), lambda t: (0, t, 0)),
            pl.BlockSpec((C, Np), lambda t: (0, 0)),
            pl.BlockSpec((1, Np), lambda t: (0, 0)),
        ],
        out_specs=pl.BlockSpec((B, Np), lambda t: (0, 0)),
        scratch_shapes=[pltpu.VMEM((B, C), jnp.float32)],
        compiler_params=pltpu.CompilerParams(
            dimension_semantics=("arbitrary",),          # reduction axis, scratch carry
            vmem_limit_bytes=_VMEM_LIMIT,
        ),
        cost_estimate=cost,
    )(x_flat, w, b)


# ----------------------------------------------------------------------------
# Stem glue: im2col for the 3x3/s2 stem (Cin = 3 -> bandwidth-negligible).
# ----------------------------------------------------------------------------
def _im2col_3x3(x_nhwc, stride):
    B, H, W, C = x_nhwc.shape
    ho, wo = H // stride, W // stride
    xp = jnp.pad(x_nhwc, ((0, 0), (1, 1), (1, 1), (0, 0)))
    cols = [xp[:, dy: dy + ho * stride: stride, dx: dx + wo * stride: stride, :]
            for dy in range(3) for dx in range(3)]
    return jnp.concatenate(cols, axis=-1)                # (B, ho, wo, 9*C)


def stem_conv3x3_s2(x_nhwc, w, b):
    """3x3/s2 stem conv + SiLU via im2col + row-tiled GEMM.  w: (K_pad, Cout)."""
    B, H, W, C = x_nhwc.shape
    patches = _im2col_3x3(x_nhwc, 2)
    _, ho, wo, K = patches.shape
    a = patches.reshape(B * ho * wo, K)
    kpad = w.shape[0]
    if kpad != K:                                        # K 27 -> 32 (bf16 packing)
        a = jnp.pad(a, ((0, 0), (0, kpad - K)))
    y = gemm_bias_act(a, w, b, act="silu")
    return y.reshape(B, ho, wo, w.shape[1])


def head_conv1x1(x_nhwc, w, b):
    B, H, W, C = x_nhwc.shape
    y = gemm_bias_act(x_nhwc.reshape(B * H * W, C), w, b, act="silu")
    return y.reshape(B, H, W, w.shape[1])


# ----------------------------------------------------------------------------
# Model: synthetic EfficientNetV2-S-style backbone with lane-padded channels.
#   stem / fused-MBConv: "true" 24 ch -> 128 lanes; head: 256 (full v6e/v7x MXU
#   width); classifier: 6 classes -> 128 lanes, sliced in the wrapper.
# ----------------------------------------------------------------------------
STEM_K_RAW, STEM_K_PAD = 27, 32
STEM_CH = 128
HEAD_CH = 256
CLS_PAD = 128


def init_params(key, in_channels, num_classes):
    assert in_channels == 3

    def kaiming(k, shape, fan_in):
        return (jax.random.normal(k, shape, jnp.float32)
                * jnp.sqrt(2.0 / fan_in)).astype(COMPUTE_DTYPE)

    ks = jax.random.split(key, 4)
    stem_w = kaiming(ks[0], (STEM_K_RAW, STEM_CH), STEM_K_RAW)
    stem_w = jnp.pad(stem_w, ((0, STEM_K_PAD - STEM_K_RAW), (0, 0)))    # K 27->32
    fc_w = kaiming(ks[3], (HEAD_CH, num_classes), HEAD_CH)
    fc_w = jnp.pad(fc_w, ((0, 0), (0, CLS_PAD - num_classes)))          # N 6->128
    return {
        "stem_w": stem_w,                                               # (32, 128)
        "stem_b": jnp.zeros((1, STEM_CH), COMPUTE_DTYPE),
        "blk_w": kaiming(ks[1], (9, STEM_CH, STEM_CH), 9 * STEM_CH),    # (9,128,128)
        "blk_b": jnp.zeros((1, STEM_CH), COMPUTE_DTYPE),
        "head_w": kaiming(ks[2], (STEM_CH, HEAD_CH), STEM_CH),          # (128, 256)
        "head_b": jnp.zeros((1, HEAD_CH), COMPUTE_DTYPE),
        "fc_w": fc_w,                                                   # (256, 128)
        "fc_b": jnp.zeros((1, CLS_PAD), COMPUTE_DTYPE),
    }


def hms_hbac_spec_forward(params, x_nchw, num_classes):
    """Mirrors HMSHBACSpecModel.forward: x.half(); backbone; pool; classifier."""
    x = x_nchw.astype(COMPUTE_DTYPE)                     # .half() -> bf16 on TPU
    x = jnp.transpose(x, (0, 2, 3, 1))                   # NCHW -> NHWC (lanes = C)

    x = stem_conv3x3_s2(x, params["stem_w"], params["stem_b"])   # (B, H/2, W/2, 128)
    x = fused_mbconv3x3(x, params["blk_w"], params["blk_b"])     # conv+SiLU+residual
    x = head_conv1x1(x, params["head_w"], params["head_b"])      # (B, H/2, W/2, 256)

    B, H, W, C = x.shape
    logits_pad = global_pool_classifier(x.reshape(B, H * W, C),
                                        params["fc_w"], params["fc_b"])
    return logits_pad[:, :num_classes]                   # drop lane padding


# ----------------------------------------------------------------------------
# Demo
# ----------------------------------------------------------------------------
if __name__ == "__main__":
    batch = 2
    in_channels = 3
    num_classes = 6
    H = W = 32

    key = jax.random.PRNGKey(0)
    k_param, k_x = jax.random.split(key)

    params = init_params(k_param, in_channels, num_classes)
    x = jax.random.normal(k_x, (batch, in_channels, H, W), jnp.float32)

    fwd = jax.jit(functools.partial(hms_hbac_spec_forward, num_classes=num_classes))
    out = fwd(params, x)
    jax.block_until_ready(out)

    assert out.shape == (batch, num_classes)
    assert out.dtype == COMPUTE_DTYPE
    print("KERNEL_OK")
</pallas_src>

<mosaic_0001>
module attributes {stable_mosaic.version = 11 : i64} {
  func.func @_gemm_bias_act_kernel(%arg0: i32, %arg1: memref<256x32xbf16, #tpu.memory_space<vmem>>, %arg2: memref<32x128xbf16, #tpu.memory_space<vmem>>, %arg3: memref<1x128xbf16, #tpu.memory_space<vmem>>, %arg4: memref<256x128xbf16, #tpu.memory_space<vmem>>) attributes {dimension_semantics = [#tpu.dimension_semantics<parallel>], iteration_bounds = array<i64: 2>, scalar_prefetch = 0 : i64, scratch_operands = 0 : i64, tpu.core_type = #tpu.core_type<tc>, window_params = [{transform_indices = @transform_0, window_bounds = array<i64: 256, 32>}, {pipeline_mode = #tpu.pipeline_mode<synchronous>, transform_indices = @transform_1, window_bounds = array<i64: 32, 128>}, {pipeline_mode = #tpu.pipeline_mode<synchronous>, transform_indices = @transform_2, window_bounds = array<i64: 1, 128>}, {transform_indices = @transform_3, window_bounds = array<i64: 256, 128>}]} {
    %c0 = arith.constant 0 : index
    %c0_0 = arith.constant 0 : index
    %0 = vector.load %arg1[%c0, %c0_0] : memref<256x32xbf16, #tpu.memory_space<vmem>>, vector<256x32xbf16>
    %c0_1 = arith.constant 0 : index
    %c0_2 = arith.constant 0 : index
    %1 = vector.load %arg2[%c0_1, %c0_2] : memref<32x128xbf16, #tpu.memory_space<vmem>>, vector<32x128xbf16>
    %cst = arith.constant dense<0.000000e+00> : vector<256x128xf32>
    %2 = tpu.matmul %0, %1, %cst {dimension_numbers = #tpu.dot_dimension_numbers<[1], [0], [0], [1], [0, 0, 1, 1], [], []>} : vector<256x32xbf16>, vector<32x128xbf16>, vector<256x128xf32> -> vector<256x128xf32>
    %c0_3 = arith.constant 0 : index
    %c0_4 = arith.constant 0 : index
    %3 = vector.load %arg3[%c0_3, %c0_4] : memref<1x128xbf16, #tpu.memory_space<vmem>>, vector<1x128xbf16>
    %4 = arith.extf %3 : vector<1x128xbf16> to vector<1x128xf32>
    %5 = vector.broadcast %4 : vector<1x128xf32> to vector<256x128xf32>
    %6 = arith.addf %2, %5 : vector<256x128xf32>
    %7 = arith.negf %6 : vector<256x128xf32>
    %8 = math.exp %7 : vector<256x128xf32>
    %cst_5 = arith.constant 1.000000e+00 : f32
    %9 = vector.broadcast %cst_5 : f32 to vector<256x128xf32>
    %10 = arith.addf %9, %8 : vector<256x128xf32>
    %11 = arith.divf %9, %10 : vector<256x128xf32>
    %12 = arith.mulf %6, %11 : vector<256x128xf32>
    %13 = arith.truncf %12 : vector<256x128xf32> to vector<256x128xbf16>
    %c0_6 = arith.constant 0 : index
    %c0_7 = arith.constant 0 : index
    %14 = vector.load %arg4[%c0_6, %c0_7] : memref<256x128xbf16, #tpu.memory_space<vmem>>, vector<256x128xbf16>
    tpu.vector_store %arg4[%c0_6, %c0_7], %13 {strides = array<i32>} : memref<256x128xbf16, #tpu.memory_space<vmem>>, vector<256x128xbf16>,
    return
  }
  func.func @transform_0(%arg0: i32) -> (i32, i32) {
    %c0_i32 = arith.constant 0 : i32
    %c0_i32_0 = arith.constant 0 : i32
    return %arg0, %c0_i32 : i32, i32
  }
  func.func @transform_1(%arg0: i32) -> (i32, i32) {
    %c0_i32 = arith.constant 0 : i32
    %c0_i32_0 = arith.constant 0 : i32
    %c0_i32_1 = arith.constant 0 : i32
    return %c0_i32, %c0_i32_0 : i32, i32
  }
  func.func @transform_2(%arg0: i32) -> (i32, i32) {
    %c0_i32 = arith.constant 0 : i32
    %c0_i32_0 = arith.constant 0 : i32
    %c0_i32_1 = arith.constant 0 : i32
    return %c0_i32, %c0_i32_0 : i32, i32
  }
  func.func @transform_3(%arg0: i32) -> (i32, i32) {
    %c0_i32 = arith.constant 0 : i32
    %c0_i32_0 = arith.constant 0 : i32
    return %arg0, %c0_i32 : i32, i32
  }
}

module attributes {stable_mosaic.version = 11 : i64} {
  func.func @_fused_mbconv3x3_kernel(%arg0: i32, %arg1: i32, %arg2: memref<1x1x10x18x128xbf16, #tpu.memory_space<vmem>>, %arg3: memref<9x128x128xbf16, #tpu.memory_space<vmem>>, %arg4: memref<1x128xbf16, #tpu.memory_space<vmem>>, %arg5: memref<1x8x16x128xbf16, #tpu.memory_space<vmem>>, %arg6: memref<1x8x16x128xbf16, #tpu.memory_space<vmem>>) attributes {dimension_semantics = [#tpu.dimension_semantics<parallel>, #tpu.dimension_semantics<parallel>], iteration_bounds = array<i64: 2, 2>, scalar_prefetch = 0 : i64, scratch_operands = 0 : i64, tpu.core_type = #tpu.core_type<tc>, window_params = [{transform_indices = @transform_0, window_bounds = array<i64: 1, 1, 10, 18, 128>}, {pipeline_mode = #tpu.pipeline_mode<synchronous>, transform_indices = @transform_1, window_bounds = array<i64: 9, 128, 128>}, {pipeline_mode = #tpu.pipeline_mode<synchronous>, transform_indices = @transform_2, window_bounds = array<i64: 1, 128>}, {transform_indices = @transform_3, window_bounds = array<i64: 1, 8, 16, 128>}, {transform_indices = @transform_4, window_bounds = array<i64: 1, 8, 16, 128>}]} {
    %c0 = arith.constant 0 : index
    %c0_0 = arith.constant 0 : index
    %c0_1 = arith.constant 0 : index
    %c0_2 = arith.constant 0 : index
    %c0_3 = arith.constant 0 : index
    %0 = vector.load %arg2[%c0, %c0_0, %c0_1, %c0_2, %c0_3] : memref<1x1x10x18x128xbf16, #tpu.memory_space<vmem>>, vector<1x1x10x18x128xbf16>
    %1 = vector.shape_cast %0 : vector<1x1x10x18x128xbf16> to vector<10x18x128xbf16>
    %cst = arith.constant 0.000000e+00 : f32
    %2 = vector.broadcast %cst : f32 to vector<128x128xf32>
    %3 = vector.extract_strided_slice %1 {offsets = [0, 0, 0], sizes = [8, 16, 128], strides = [1, 1, 1]} : vector<10x18x128xbf16> to vector<8x16x128xbf16>
    %4 = vector.shape_cast %3 : vector<8x16x128xbf16> to vector<128x128xbf16>
    %c0_4 = arith.constant 0 : index
    %c0_5 = arith.constant 0 : index
    %c0_6 = arith.constant 0 : index
    %5 = vector.load %arg3[%c0_4, %c0_5, %c0_6] : memref<9x128x128xbf16, #tpu.memory_space<vmem>>, vector<1x128x128xbf16>
    %6 = vector.shape_cast %5 : vector<1x128x128xbf16> to vector<128x128xbf16>
    %cst_7 = arith.constant dense<0.000000e+00> : vector<128x128xf32>
    %7 = tpu.matmul %4, %6, %cst_7 {dimension_numbers = #tpu.dot_dimension_numbers<[1], [0], [0], [1], [0, 0, 1, 1], [], []>} : vector<128x128xbf16>, vector<128x128xbf16>, vector<128x128xf32> -> vector<128x128xf32>
    %8 = arith.addf %2, %7 : vector<128x128xf32>
    %9 = vector.extract_strided_slice %1 {offsets = [0, 1, 0], sizes = [8, 16, 128], strides = [1, 1, 1]} : vector<10x18x128xbf16> to vector<8x16x128xbf16>
    %10 = vector.shape_cast %9 : vector<8x16x128xbf16> to vector<128x128xbf16>
    %c1 = arith.constant 1 : index
    %c0_8 = arith.constant 0 : index
    %c0_9 = arith.constant 0 : index
    %11 = vector.load %arg3[%c1, %c0_8, %c0_9] : memref<9x128x128xbf16, #tpu.memory_space<vmem>>, vector<1x128x128xbf16>
    %12 = vector.shape_cast %11 : vector<1x128x128xbf16> to vector<128x128xbf16>
    %cst_10 = arith.constant dense<0.000000e+00> : vector<128x128xf32>
    %13 = tpu.matmul %10, %12, %cst_10 {dimension_numbers = #tpu.dot_dimension_numbers<[1], [0], [0], [1], [0, 0, 1, 1], [], []>} : vector<128x128xbf16>, vector<128x128xbf16>, vector<128x128xf32> -> vector<128x128xf32>
    %14 = arith.addf %8, %13 : vector<128x128xf32>
    %15 = vector.extract_strided_slice %1 {offsets = [0, 2, 0], sizes = [8, 16, 128], strides = [1, 1, 1]} : vector<10x18x128xbf16> to vector<8x16x128xbf16>
    %16 = vector.shape_cast %15 : vector<8x16x128xbf16> to vector<128x128xbf16>
    %c2 = arith.constant 2 : index
    %c0_11 = arith.constant 0 : index
    %c0_12 = arith.constant 0 : index
    %17 = vector.load %arg3[%c2, %c0_11, %c0_12] : memref<9x128x128xbf16, #tpu.memory_space<vmem>>, vector<1x128x128xbf16>
    %18 = vector.shape_cast %17 : vector<1x128x128xbf16> to vector<128x128xbf16>
    %cst_13 = arith.constant dense<0.000000e+00> : vector<128x128xf32>
    %19 = tpu.matmul %16, %18, %cst_13 {dimension_numbers = #tpu.dot_dimension_numbers<[1], [0], [0], [1], [0, 0, 1, 1], [], []>} : vector<128x128xbf16>, vector<128x128xbf16>, vector<128x128xf32> -> vector<128x128xf32>
    %20 = arith.addf %14, %19 : vector<128x128xf32>
    %21 = vector.extract_strided_slice %1 {offsets = [1, 0, 0], sizes = [8, 16, 128], strides = [1, 1, 1]} : vector<10x18x128xbf16> to vector<8x16x128xbf16>
    %22 = vector.shape_cast %21 : vector<8x16x128xbf16> to vector<128x128xbf16>
    %c3 = arith.constant 3 : index
    %c0_14 = arith.constant 0 : index
    %c0_15 = arith.constant 0 : index
    %23 = vector.load %arg3[%c3, %c0_14, %c0_15] : memref<9x128x128xbf16, #tpu.memory_space<vmem>>, vector<1x128x128xbf16>
    %24 = vector.shape_cast %23 : vector<1x128x128xbf16> to vector<128x128xbf16>
    %cst_16 = arith.constant dense<0.000000e+00> : vector<128x128xf32>
    %25 = tpu.matmul %22, %24, %cst_16 {dimension_numbers = #tpu.dot_dimension_numbers<[1], [0], [0], [1], [0, 0, 1, 1], [], []>} : vector<128x128xbf16>, vector<128x128xbf16>, vector<128x128xf32> -> vector<128x128xf32>
    %26 = arith.addf %20, %25 : vector<128x128xf32>
    %27 = vector.extract_strided_slice %1 {offsets = [1, 1, 0], sizes = [8, 16, 128], strides = [1, 1, 1]} : vector<10x18x128xbf16> to vector<8x16x128xbf16>
    %28 = vector.shape_cast %27 : vector<8x16x128xbf16> to vector<128x128xbf16>
    %c4 = arith.constant 4 : index
    %c0_17 = arith.constant 0 : index
    %c0_18 = arith.constant 0 : index
    %29 = vector.load %arg3[%c4, %c0_17, %c0_18] : memref<9x128x128xbf16, #tpu.memory_space<vmem>>, vector<1x128x128xbf16>
    %30 = vector.shape_cast %29 : vector<1x128x128xbf16> to vector<128x128xbf16>
    %cst_19 = arith.constant dense<0.000000e+00> : vector<128x128xf32>
    %31 = tpu.matmul %28, %30, %cst_19 {dimension_numbers = #tpu.dot_dimension_numbers<[1], [0], [0], [1], [0, 0, 1, 1], [], []>} : vector<128x128xbf16>, vector<128x128xbf16>, vector<128x128xf32> -> vector<128x128xf32>
    %32 = arith.addf %26, %31 : vector<128x128xf32>
    %33 = vector.extract_strided_slice %1 {offsets = [1, 2, 0], sizes = [8, 16, 128], strides = [1, 1, 1]} : vector<10x18x128xbf16> to vector<8x16x128xbf16>
    %34 = vector.shape_cast %33 : vector<8x16x128xbf16> to vector<128x128xbf16>
    %c5 = arith.constant 5 : index
    %c0_20 = arith.constant 0 : index
    %c0_21 = arith.constant 0 : index
    %35 = vector.load %arg3[%c5, %c0_20, %c0_21] : memref<9x128x128xbf16, #tpu.memory_space<vmem>>, vector<1x128x128xbf16>
    %36 = vector.shape_cast %35 : vector<1x128x128xbf16> to vector<128x128xbf16>
    %cst_22 = arith.constant dense<0.000000e+00> : vector<128x128xf32>
    %37 = tpu.matmul %34, %36, %cst_22 {dimension_numbers = #tpu.dot_dimension_numbers<[1], [0], [0], [1], [0, 0, 1, 1], [], []>} : vector<128x128xbf16>, vector<128x128xbf16>, vector<128x128xf32> -> vector<128x128xf32>
    %38 = arith.addf %32, %37 : vector<128x128xf32>
    %39 = vector.extract_strided_slice %1 {offsets = [2, 0, 0], sizes = [8, 16, 128], strides = [1, 1, 1]} : vector<10x18x128xbf16> to vector<8x16x128xbf16>
    %40 = vector.shape_cast %39 : vector<8x16x128xbf16> to vector<128x128xbf16>
    %c6 = arith.constant 6 : index
    %c0_23 = arith.constant 0 : index
    %c0_24 = arith.constant 0 : index
    %41 = vector.load %arg3[%c6, %c0_23, %c0_24] : memref<9x128x128xbf16, #tpu.memory_space<vmem>>, vector<1x128x128xbf16>
    %42 = vector.shape_cast %41 : vector<1x128x128xbf16> to vector<128x128xbf16>
    %cst_25 = arith.constant dense<0.000000e+00> : vector<128x128xf32>
    %43 = tpu.matmul %40, %42, %cst_25 {dimension_numbers = #tpu.dot_dimension_numbers<[1], [0], [0], [1], [0, 0, 1, 1], [], []>} : vector<128x128xbf16>, vector<128x128xbf16>, vector<128x128xf32> -> vector<128x128xf32>
    %44 = arith.addf %38, %43 : vector<128x128xf32>
    %45 = vector.extract_strided_slice %1 {offsets = [2, 1, 0], sizes = [8, 16, 128], strides = [1, 1, 1]} : vector<10x18x128xbf16> to vector<8x16x128xbf16>
    %46 = vector.shape_cast %45 : vector<8x16x128xbf16> to vector<128x128xbf16>
    %c7 = arith.constant 7 : index
    %c0_26 = arith.constant 0 : index
    %c0_27 = arith.constant 0 : index
    %47 = vector.load %arg3[%c7, %c0_26, %c0_27] : memref<9x128x128xbf16, #tpu.memory_space<vmem>>, vector<1x128x128xbf16>
    %48 = vector.shape_cast %47 : vector<1x128x128xbf16> to vector<128x128xbf16>
    %cst_28 = arith.constant dense<0.000000e+00> : vector<128x128xf32>
    %49 = tpu.matmul %46, %48, %cst_28 {dimension_numbers = #tpu.dot_dimension_numbers<[1], [0], [0], [1], [0, 0, 1, 1], [], []>} : vector<128x128xbf16>, vector<128x128xbf16>, vector<128x128xf32> -> vector<128x128xf32>
    %50 = arith.addf %44, %49 : vector<128x128xf32>
    %51 = vector.extract_strided_slice %1 {offsets = [2, 2, 0], sizes = [8, 16, 128], strides = [1, 1, 1]} : vector<10x18x128xbf16> to vector<8x16x128xbf16>
    %52 = vector.shape_cast %51 : vector<8x16x128xbf16> to vector<128x128xbf16>
    %c8 = arith.constant 8 : index
    %c0_29 = arith.constant 0 : index
    %c0_30 = arith.constant 0 : index
    %53 = vector.load %arg3[%c8, %c0_29, %c0_30] : memref<9x128x128xbf16, #tpu.memory_space<vmem>>, vector<1x128x128xbf16>
    %54 = vector.shape_cast %53 : vector<1x128x128xbf16> to vector<128x128xbf16>
    %cst_31 = arith.constant dense<0.000000e+00> : vector<128x128xf32>
    %55 = tpu.matmul %52, %54, %cst_31 {dimension_numbers = #tpu.dot_dimension_numbers<[1], [0], [0], [1], [0, 0, 1, 1], [], []>} : vector<128x128xbf16>, vector<128x128xbf16>, vector<128x128xf32> -> vector<128x128xf32>
    %56 = arith.addf %50, %55 : vector<128x128xf32>
    %c0_32 = arith.constant 0 : index
    %c0_33 = arith.constant 0 : index
    %57 = vector.load %arg4[%c0_32, %c0_33] : memref<1x128xbf16, #tpu.memory_space<vmem>>, vector<1x128xbf16>
    %58 = arith.extf %57 : vector<1x128xbf16> to vector<1x128xf32>
    %59 = vector.broadcast %58 : vector<1x128xf32> to vector<128x128xf32>
    %60 = arith.addf %56, %59 : vector<128x128xf32>
    %61 = arith.negf %60 : vector<128x128xf32>
    %62 = math.exp %61 : vector<128x128xf32>
    %cst_34 = arith.constant 1.000000e+00 : f32
    %63 = vector.broadcast %cst_34 : f32 to vector<128x128xf32>
    %64 = arith.addf %63, %62 : vector<128x128xf32>
    %65 = arith.divf %63, %64 : vector<128x128xf32>
    %66 = arith.mulf %60, %65 : vector<128x128xf32>
    %c0_35 = arith.constant 0 : index
    %c0_36 = arith.constant 0 : index
    %c0_37 = arith.constant 0 : index
    %c0_38 = arith.constant 0 : index
    %67 = vector.load %arg5[%c0_35, %c0_36, %c0_37, %c0_38] : memref<1x8x16x128xbf16, #tpu.memory_space<vmem>>, vector<1x8x16x128xbf16>
    %68 = vector.shape_cast %67 : vector<1x8x16x128xbf16> to vector<8x16x128xbf16>
    %69 = vector.shape_cast %68 : vector<8x16x128xbf16> to vector<128x128xbf16>
    %70 = arith.extf %69 : vector<128x128xbf16> to vector<128x128xf32>
    %71 = arith.addf %66, %70 : vector<128x128xf32>
    %72 = vector.shape_cast %71 : vector<128x128xf32> to vector<1x8x16x128xf32>
    %73 = arith.truncf %72 : vector<1x8x16x128xf32> to vector<1x8x16x128xbf16>
    %c0_39 = arith.constant 0 : index
    %c0_40 = arith.constant 0 : index
    %c0_41 = arith.constant 0 : index
    %c0_42 = arith.constant 0 : index
    %74 = vector.load %arg6[%c0_39, %c0_40, %c0_41, %c0_42] : memref<1x8x16x128xbf16, #tpu.memory_space<vmem>>, vector<1x8x16x128xbf16>
    tpu.vector_store %arg6[%c0_39, %c0_40, %c0_41, %c0_42], %73 {strides = array<i32>} : memref<1x8x16x128xbf16, #tpu.memory_space<vmem>>, vector<1x8x16x128xbf16>,
    return
  }
  func.func @transform_0(%arg0: i32, %arg1: i32) -> (i32, i32, i32, i32, i32) {
    %c0_i32 = arith.constant 0 : i32
    %c0_i32_0 = arith.constant 0 : i32
    %c0_i32_1 = arith.constant 0 : i32
    %c0_i32_2 = arith.constant 0 : i32
    return %arg0, %arg1, %c0_i32, %c0_i32_0, %c0_i32_1 : i32, i32, i32, i32, i32
  }
  func.func @transform_1(%arg0: i32, %arg1: i32) -> (i32, i32, i32) {
    %c0_i32 = arith.constant 0 : i32
    %c0_i32_0 = arith.constant 0 : i32
    %c0_i32_1 = arith.constant 0 : i32
    %c0_i32_2 = arith.constant 0 : i32
    return %c0_i32, %c0_i32_0, %c0_i32_1 : i32, i32, i32
  }
  func.func @transform_2(%arg0: i32, %arg1: i32) -> (i32, i32) {
    %c0_i32 = arith.constant 0 : i32
    %c0_i32_0 = arith.constant 0 : i32
    %c0_i32_1 = arith.constant 0 : i32
    return %c0_i32, %c0_i32_0 : i32, i32
  }
  func.func @transform_3(%arg0: i32, %arg1: i32) -> (i32, i32, i32, i32) {
    %c0_i32 = arith.constant 0 : i32
    %c0_i32_0 = arith.constant 0 : i32
    %c0_i32_1 = arith.constant 0 : i32
    return %arg0, %arg1, %c0_i32, %c0_i32_0 : i32, i32, i32, i32
  }
  func.func @transform_4(%arg0: i32, %arg1: i32) -> (i32, i32, i32, i32) {
    %c0_i32 = arith.constant 0 : i32
    %c0_i32_0 = arith.constant 0 : i32
    %c0_i32_1 = arith.constant 0 : i32
    return %arg0, %arg1, %c0_i32, %c0_i32_0 : i32, i32, i32, i32
  }
}

module attributes {stable_mosaic.version = 11 : i64} {
  func.func @_gemm_bias_act_kernel(%arg0: i32, %arg1: memref<256x128xbf16, #tpu.memory_space<vmem>>, %arg2: memref<128x256xbf16, #tpu.memory_space<vmem>>, %arg3: memref<1x256xbf16, #tpu.memory_space<vmem>>, %arg4: memref<256x256xbf16, #tpu.memory_space<vmem>>) attributes {dimension_semantics = [#tpu.dimension_semantics<parallel>], iteration_bounds = array<i64: 2>, scalar_prefetch = 0 : i64, scratch_operands = 0 : i64, tpu.core_type = #tpu.core_type<tc>, window_params = [{transform_indices = @transform_0, window_bounds = array<i64: 256, 128>}, {pipeline_mode = #tpu.pipeline_mode<synchronous>, transform_indices = @transform_1, window_bounds = array<i64: 128, 256>}, {pipeline_mode = #tpu.pipeline_mode<synchronous>, transform_indices = @transform_2, window_bounds = array<i64: 1, 256>}, {transform_indices = @transform_3, window_bounds = array<i64: 256, 256>}]} {
    %c0 = arith.constant 0 : index
    %c0_0 = arith.constant 0 : index
    %0 = vector.load %arg1[%c0, %c0_0] : memref<256x128xbf16, #tpu.memory_space<vmem>>, vector<256x128xbf16>
    %c0_1 = arith.constant 0 : index
    %c0_2 = arith.constant 0 : index
    %1 = vector.load %arg2[%c0_1, %c0_2] : memref<128x256xbf16, #tpu.memory_space<vmem>>, vector<128x256xbf16>
    %cst = arith.constant dense<0.000000e+00> : vector<256x256xf32>
    %2 = tpu.matmul %0, %1, %cst {dimension_numbers = #tpu.dot_dimension_numbers<[1], [0], [0], [1], [0, 0, 1, 1], [], []>} : vector<256x128xbf16>, vector<128x256xbf16>, vector<256x256xf32> -> vector<256x256xf32>
    %c0_3 = arith.constant 0 : index
    %c0_4 = arith.constant 0 : index
    %3 = vector.load %arg3[%c0_3, %c0_4] : memref<1x256xbf16, #tpu.memory_space<vmem>>, vector<1x256xbf16>
    %4 = arith.extf %3 : vector<1x256xbf16> to vector<1x256xf32>
    %5 = vector.broadcast %4 : vector<1x256xf32> to vector<256x256xf32>
    %6 = arith.addf %2, %5 : vector<256x256xf32>
    %7 = arith.negf %6 : vector<256x256xf32>
    %8 = math.exp %7 : vector<256x256xf32>
    %cst_5 = arith.constant 1.000000e+00 : f32
    %9 = vector.broadcast %cst_5 : f32 to vector<256x256xf32>
    %10 = arith.addf %9, %8 : vector<256x256xf32>
    %11 = arith.divf %9, %10 : vector<256x256xf32>
    %12 = arith.mulf %6, %11 : vector<256x256xf32>
    %13 = arith.truncf %12 : vector<256x256xf32> to vector<256x256xbf16>
    %c0_6 = arith.constant 0 : index
    %c0_7 = arith.constant 0 : index
    %14 = vector.load %arg4[%c0_6, %c0_7] : memref<256x256xbf16, #tpu.memory_space<vmem>>, vector<256x256xbf16>
    tpu.vector_store %arg4[%c0_6, %c0_7], %13 {strides = array<i32>} : memref<256x256xbf16, #tpu.memory_space<vmem>>, vector<256x256xbf16>,
    return
  }
  func.func @transform_0(%arg0: i32) -> (i32, i32) {
    %c0_i32 = arith.constant 0 : i32
    %c0_i32_0 = arith.constant 0 : i32
    return %arg0, %c0_i32 : i32, i32
  }
  func.func @transform_1(%arg0: i32) -> (i32, i32) {
    %c0_i32 = arith.constant 0 : i32
    %c0_i32_0 = arith.constant 0 : i32
    %c0_i32_1 = arith.constant 0 : i32
    return %c0_i32, %c0_i32_0 : i32, i32
  }
  func.func @transform_2(%arg0: i32) -> (i32, i32) {
    %c0_i32 = arith.constant 0 : i32
    %c0_i32_0 = arith.constant 0 : i32
    %c0_i32_1 = arith.constant 0 : i32
    return %c0_i32, %c0_i32_0 : i32, i32
  }
  func.func @transform_3(%arg0: i32) -> (i32, i32) {
    %c0_i32 = arith.constant 0 : i32
    %c0_i32_0 = arith.constant 0 : i32
    return %arg0, %c0_i32 : i32, i32
  }
}

module attributes {stable_mosaic.version = 11 : i64} {
  func.func @_pool_classifier_kernel(%arg0: i32, %arg1: memref<2x128x256xbf16, #tpu.memory_space<vmem>>, %arg2: memref<256x128xbf16, #tpu.memory_space<vmem>>, %arg3: memref<1x128xbf16, #tpu.memory_space<vmem>>, %arg4: memref<2x128xbf16, #tpu.memory_space<vmem>>, %arg5: memref<2x256xf32, #tpu.memory_space<vmem>>) attributes {dimension_semantics = [#tpu.dimension_semantics<arbitrary>], iteration_bounds = array<i64: 2>, scalar_prefetch = 0 : i64, scratch_operands = 1 : i64, tpu.core_type = #tpu.core_type<tc>, window_params = [{transform_indices = @transform_0, window_bounds = array<i64: 2, 128, 256>}, {pipeline_mode = #tpu.pipeline_mode<synchronous>, transform_indices = @transform_1, window_bounds = array<i64: 256, 128>}, {pipeline_mode = #tpu.pipeline_mode<synchronous>, transform_indices = @transform_2, window_bounds = array<i64: 1, 128>}, {pipeline_mode = #tpu.pipeline_mode<synchronous>, transform_indices = @transform_3, window_bounds = array<i64: 2, 128>}]} {
    %c0_i32 = arith.constant 0 : i32
    %0 = arith.cmpi eq, %arg0, %c0_i32 : i32
    %1 = arith.extui %0 : i1 to i32
    %c0_i32_0 = arith.constant 0 : i32
    %2 = arith.cmpi ne, %1, %c0_i32_0 : i32
    scf.if %2 {
      %cst_8 = arith.constant 0.000000e+00 : f32
      %12 = vector.broadcast %cst_8 : f32 to vector<2x256xf32>
      %c0_9 = arith.constant 0 : index
      %c0_10 = arith.constant 0 : index
      %13 = vector.load %arg5[%c0_9, %c0_10] : memref<2x256xf32, #tpu.memory_space<vmem>>, vector<2x256xf32>
      tpu.vector_store %arg5[%c0_9, %c0_10], %12 {strides = array<i32>} : memref<2x256xf32, #tpu.memory_space<vmem>>, vector<2x256xf32>,
    } else {
    }
    %c0 = arith.constant 0 : index
    %c0_1 = arith.constant 0 : index
    %3 = vector.load %arg5[%c0, %c0_1] : memref<2x256xf32, #tpu.memory_space<vmem>>, vector<2x256xf32>
    %c0_2 = arith.constant 0 : index
    %c0_3 = arith.constant 0 : index
    %c0_4 = arith.constant 0 : index
    %4 = vector.load %arg1[%c0_2, %c0_3, %c0_4] : memref<2x128x256xbf16, #tpu.memory_space<vmem>>, vector<2x128x256xbf16>
    %5 = arith.extf %4 : vector<2x128x256xbf16> to vector<2x128x256xf32>
    %cst = arith.constant dense<0.000000e+00> : vector<2x256xf32>
    %6 = vector.multi_reduction <add>, %5, %cst [1] : vector<2x128x256xf32> to vector<2x256xf32>
    %7 = arith.addf %3, %6 : vector<2x256xf32>
    %c0_5 = arith.constant 0 : index
    %c0_6 = arith.constant 0 : index
    %8 = vector.load %arg5[%c0_5, %c0_6] : memref<2x256xf32, #tpu.memory_space<vmem>>, vector<2x256xf32>
    tpu.vector_store %arg5[%c0_5, %c0_6], %7 {strides = array<i32>} : memref<2x256xf32, #tpu.memory_space<vmem>>, vector<2x256xf32>,
    %c1_i32 = arith.constant 1 : i32
    %9 = arith.cmpi eq, %arg0, %c1_i32 : i32
    %10 = arith.extui %9 : i1 to i32
    %c0_i32_7 = arith.constant 0 : i32
    %11 = arith.cmpi ne, %10, %c0_i32_7 : i32
    scf.if %11 {
      %c0_8 = arith.constant 0 : index
      %c0_9 = arith.constant 0 : index
      %12 = vector.load %arg5[%c0_8, %c0_9] : memref<2x256xf32, #tpu.memory_space<vmem>>, vector<2x256xf32>
      %cst_10 = arith.constant 3.906250e-03 : f32
      %13 = vector.broadcast %cst_10 : f32 to vector<2x256xf32>
      %14 = arith.mulf %12, %13 : vector<2x256xf32>
      %15 = arith.truncf %14 : vector<2x256xf32> to vector<2x256xbf16>
      %c0_11 = arith.constant 0 : index
      %c0_12 = arith.constant 0 : index
      %16 = vector.load %arg2[%c0_11, %c0_12] : memref<256x128xbf16, #tpu.memory_space<vmem>>, vector<256x128xbf16>
      %cst_13 = arith.constant dense<0.000000e+00> : vector<2x128xf32>
      %17 = tpu.matmul %15, %16, %cst_13 {dimension_numbers = #tpu.dot_dimension_numbers<[1], [0], [0], [1], [0, 0, 1, 1], [], []>} : vector<2x256xbf16>, vector<256x128xbf16>, vector<2x128xf32> -> vector<2x128xf32>
      %c0_14 = arith.constant 0 : index
      %c0_15 = arith.constant 0 : index
      %18 = vector.load %arg3[%c0_14, %c0_15] : memref<1x128xbf16, #tpu.memory_space<vmem>>, vector<1x128xbf16>
      %19 = arith.extf %18 : vector<1x128xbf16> to vector<1x128xf32>
      %20 = vector.broadcast %19 : vector<1x128xf32> to vector<2x128xf32>
      %21 = arith.addf %17, %20 : vector<2x128xf32>
      %22 = arith.truncf %21 : vector<2x128xf32> to vector<2x128xbf16>
      %c0_16 = arith.constant 0 : index
      %c0_17 = arith.constant 0 : index
      %23 = vector.load %arg4[%c0_16, %c0_17] : memref<2x128xbf16, #tpu.memory_space<vmem>>, vector<2x128xbf16>
      tpu.vector_store %arg4[%c0_16, %c0_17], %22 {strides = array<i32>} : memref<2x128xbf16, #tpu.memory_space<vmem>>, vector<2x128xbf16>,
    } else {
    }
    return
  }
  func.func @transform_0(%arg0: i32) -> (i32, i32, i32) {
    %c0_i32 = arith.constant 0 : i32
    %c0_i32_0 = arith.constant 0 : i32
    %c0_i32_1 = arith.constant 0 : i32
    return %c0_i32, %arg0, %c0_i32_0 : i32, i32, i32
  }
  func.func @transform_1(%arg0: i32) -> (i32, i32) {
    %c0_i32 = arith.constant 0 : i32
    %c0_i32_0 = arith.constant 0 : i32
    %c0_i32_1 = arith.constant 0 : i32
    return %c0_i32, %c0_i32_0 : i32, i32
  }
  func.func @transform_2(%arg0: i32) -> (i32, i32) {
    %c0_i32 = arith.constant 0 : i32
    %c0_i32_0 = arith.constant 0 : i32
    %c0_i32_1 = arith.constant 0 : i32
    return %c0_i32, %c0_i32_0 : i32, i32
  }
  func.func @transform_3(%arg0: i32) -> (i32, i32) {
    %c0_i32 = arith.constant 0 : i32
    %c0_i32_0 = arith.constant 0 : i32
    %c0_i32_1 = arith.constant 0 : i32
    return %c0_i32, %c0_i32_0 : i32, i32
  }
}

</mosaic_0001>

<bundles_post_ra>
// kernel: hms_hbac_spec_forward.4
= control target key start
LH: loop header
LB: loop body
LE: loop exit
PB: predicated region body
PF: predicated region fallthrough
CT: control target
= control target key end

     0   :  { %s1618_s12 = smov 0   ;;  %s2504_s0 = inlined_call_operand.vmem [shape: bf16[512,32], index: 0, kind: input, shape index: {}]   ;;  %s2505_s1 = inlined_call_operand.vmem [shape: bf16[32,128], index: 1, kind: input, shape index: {}]   ;;  %s2506_s2 = inlined_call_operand.vmem [shape: bf16[1,128], index: 2, kind: input, shape index: {}]   ;;  %s2507_s3 = inlined_call_operand.vmem [shape: bf16[512,128], index: 3, kind: output, shape index: {}]  }
   0x1 LB: > { %s1204_s13 = sadd.s32 4294967295, %s1596_s12   ;;  %p1208_p0 = scmp.ge.s32.totalorder %s1596_s12, 1  ;;  %s1596_s12 = sphi %s1618_s12, %s13_s12  }
   0x2   : > { %p138_p1 = scmp.lt.s32.totalorder %s1596_s12, 3 }
   0x4   : > { %p139_p2 = pnand %p1208_p0, %p138_p1 }
   0x5   : > { %s1209_s16 = sshll.u32 (!%p139_p2), %s1204_s13, 5 }
   0x6   : > { %142 = sbr.rel (%p139_p2) target bundleno = 310 (0x136), region = 32  ;;  %p163_p3 = scmp.lt.s32.totalorder (!%p139_p2), %s1209_s16, 63 }
   0xb   : > { %v1352_v0 = vld [vmem:[%s2505_s1 + $0x8] sm:$0xff]  ;;  %v1351_v1 = vld [vmem:[%s2505_s1] sm:$0xff]  ;;  %s2581_s16 = smov (!%p163_p3, %s1209_s16), 63  ;;  %vm306_vm0 = vcmask 261120  }
   0xc   : > { %361 = vmatpush.bf16.msra.mxu0 %v1352_v0  ;;  %1448 = vmatpush.bf16.msra.mxu1 %v1352_v0  ;;  %s1210_s19 = sshll.u32 %s2581_s16, 2  ;;  %v211_v18 = vld [vmem:[%s2506_s2] sm:$0x1] }
   0xd   : > { %1449 = vmatpush.bf16.msra.mxu2 %v1352_v0  ;;  %1450 = vmatpush.bf16.msra.mxu3 %v1352_v0  ;;  %s1640_s22 = scalar_lea.vmem %s2504_s0, %s1210_s19  ;;  %v212_v19 = vunpack.c.l.bf16 %v211_v18  ;;  %s1899_s27 = scalar_lea.vmem %s2507_s3, %s1210_s19 }
   0xe   : > { %v1335_v2 = vld [vmem:[%s1640_s22] sm:$0xff]  ;;  %v1336_v6 = vld [vmem:[%s1640_s22 + $0x8] sm:$0xff]  ;;  %v1337_v10 = vld [vmem:[%s1640_s22 + $0x10] sm:$0xff] }
   0xf   : > { %v1339_v3 = vld [vmem:[%s1640_s22 + $0x20] sm:$0xff]  ;;  %v1340_v7 = vld [vmem:[%s1640_s22 + $0x28] sm:$0xff]  ;;  %v1341_v11 = vld [vmem:[%s1640_s22 + $0x30] sm:$0xff]  ;;  %v1677_v20 = vperm.slane %v212_v19, 0 }
  0x10   : > { %362 = vmatpush.bf16.msra.mxu0 %v1351_v1  ;;  %1451 = vmatpush.bf16.msra.mxu1 %v1351_v1  ;;  %v1343_v4 = vld [vmem:[%s1640_s22 + $0x40] sm:$0xff]  ;;  %v1344_v8 = vld [vmem:[%s1640_s22 + $0x48] sm:$0xff]  ;;  %v1345_v12 = vld [vmem:[%s1640_s22 + $0x50] sm:$0xff] }
  0x11   : > { %1452 = vmatpush.bf16.msra.mxu2 %v1351_v1  ;;  %1453 = vmatpush.bf16.msra.mxu3 %v1351_v1  ;;  %v1347_v5 = vld [vmem:[%s1640_s22 + $0x60] sm:$0xff]  ;;  %v1348_v9 = vld [vmem:[%s1640_s22 + $0x68] sm:$0xff]  ;;  %v1349_v13 = vld [vmem:[%s1640_s22 + $0x70] sm:$0xff] }
  0x12   : > { %v1338_v14 = vld [vmem:[%s1640_s22 + $0x18] sm:$0xff] }
  0x13   : > { %1285 = vmatmul.msk.bf16.vlgmr.msra.gmra.mxu0 %vm306_vm0, %v1335_v2  ;;  %1289 = vmatmul.msk.bf16.vlgmr.msra.gmra.mxu1 %vm306_vm0, %v1339_v3  ;;  %v1342_v15 = vld [vmem:[%s1640_s22 + $0x38] sm:$0xff] }
  0x14   : > { %1293 = vmatmul.msk.bf16.vlgmr.msra.gmra.mxu2 %vm306_vm0, %v1343_v4  ;;  %1297 = vmatmul.msk.bf16.vlgmr.msra.gmra.mxu3 %vm306_vm0, %v1347_v5  ;;  %v1346_v16 = vld [vmem:[%s1640_s22 + $0x58] sm:$0xff] }
  0x15   : > { %v1350_v17 = vld [vmem:[%s1640_s22 + $0x78] sm:$0xff] }
  0x23   : > { %1286 = vmatmul.msk.bf16.gmra.mxu0 %vm306_vm0, %v1336_v6  ;;  %1290 = vmatmul.msk.bf16.gmra.mxu1 %vm306_vm0, %v1340_v7 }
  0x24   : > { %1294 = vmatmul.msk.bf16.gmra.mxu2 %vm306_vm0, %v1344_v8  ;;  %1298 = vmatmul.msk.bf16.gmra.mxu3 %vm306_vm0, %v1348_v9 }
  0x33   : > { %1287 = vmatmul.msk.bf16.gmra.mxu0 %vm306_vm0, %v1337_v10  ;;  %1291 = vmatmul.msk.bf16.gmra.mxu1 %vm306_vm0, %v1341_v11 }
  0x34   : > { %1295 = vmatmul.msk.bf16.gmra.mxu2 %vm306_vm0, %v1345_v12  ;;  %1299 = vmatmul.msk.bf16.gmra.mxu3 %vm306_vm0, %v1349_v13 }
  0x43   : > { %1288 = vmatmul.msk.bf16.gmra.mxu0 %vm306_vm0, %v1338_v14  ;;  %1292 = vmatmul.msk.bf16.gmra.mxu1 %vm306_vm0, %v1342_v15 }
  0x44   : > { %1296 = vmatmul.msk.bf16.gmra.mxu2 %vm306_vm0, %v1346_v16  ;;  %1300 = vmatmul.msk.bf16.gmra.mxu3 %vm306_vm0, %v1350_v17 }
  0x90   : > { %v364_v21 = vpop.f32.mrf.mxu0  ;;  %v384_v22 = vpop.f32.mrf.mxu1 }
  0x91   : > { %v1680_v23 = vadd.f32 %v364_v21, %v1677_v20  ;;  %v1683_v24 = vadd.f32 %v384_v22, %v1677_v20 }
  0x93   : > { %v1301_v25 = vmul.f32 -1.442695, %v1680_v23  ;;  %v1309_v26 = vmul.f32 -1.442695, %v1683_v24 }
  0x95   : > { %1462 = vpow2.f32 %v1301_v25 }
  0x96   : > { %1464 = vpow2.f32 %v1309_v26 }
  0x97   : > { %v404_v27 = vpop.f32.mrf.mxu2  ;;  %v424_v28 = vpop.f32.mrf.mxu3 }
  0x98   : > { %v1688_v29 = vadd.f32 %v404_v27, %v1677_v20  ;;  %v1691_v30 = vadd.f32 %v424_v28, %v1677_v20  ;;  %v366_v31 = vpop.f32.mrf.mxu0  ;;  %v386_v32 = vpop.f32.mrf.mxu1 }
  0x99   : > { %v1694_v33 = vadd.f32 %v366_v31, %v1677_v20  ;;  %v1697_v34 = vadd.f32 %v386_v32, %v1677_v20 }
  0x9a   : > { %v1317_v35 = vmul.f32 -1.442695, %v1688_v29  ;;  %v1325_v36 = vmul.f32 -1.442695, %v1691_v30 }
  0x9b   : > { %v1463_v37 = vpop.eup %1462  ;;  %v1302_v40 = vmul.f32 -1.442695, %v1694_v33  ;;  %v1310_v42 = vmul.f32 -1.442695, %v1697_v34 }
  0x9c   : > { %v1465_v38 = vpop.eup %1464  ;;  %v1701_v39 = vadd.f32 1.0, %v1463_v37  ;;  %1466 = vpow2.f32 %v1317_v35 }
  0x9d   : > { %v1704_v41 = vadd.f32 1.0, %v1465_v38  ;;  %1468 = vpow2.f32 %v1325_v36 }
  0x9e   : > { %1470 = vrcp.f32 %v1701_v39  ;;  %v581_v55 = vand.u32 2147483647, %v1701_v39  ;;  %v583_v56 = vand.u32 2147483648, %v1701_v39  ;;  %vm577_vm1 = vweird.f32 %v1701_v39 }
  0x9f   : > { %1472 = vrcp.f32 %v1704_v41  ;;  %v406_v43 = vpop.f32.mrf.mxu2  ;;  %v426_v44 = vpop.f32.mrf.mxu3  ;;  %vm697_vm2 = vweird.f32 %v1704_v41  ;;  %v701_v0 = vand.u32 2147483647, %v1704_v41  ;;  %v703_v1 = vand.u32 2147483648, %v1704_v41 }
  0xa0   : > { %1474 = vpow2.f32 %v1302_v40  ;;  %v1710_v45 = vadd.f32 %v406_v43, %v1677_v20  ;;  %v1713_v47 = vadd.f32 %v426_v44, %v1677_v20  ;;  %v369_v57 = vpop.f32.mrf.mxu0  ;;  %v389_v58 = vpop.f32.mrf.mxu1  ;;  %vm1744_vm3 = vcmp.eq.f32.partialorder %v581_v55, 8.507059e+37 }
  0xa1   : > { %1476 = vpow2.f32 %v1310_v42  ;;  %v1738_v3 = vadd.f32 %v369_v57, %v1677_v20  ;;  %v1741_v4 = vadd.f32 %v389_v58, %v1677_v20  ;;  %v584_v7 = vor.u32 1.1754944e-38, %v583_v56 }
  0xa2   : > { %v1467_v46 = vpop.eup %1466  ;;  %v1318_v52 = vmul.f32 -1.442695, %v1710_v45  ;;  %v1326_v61 = vmul.f32 -1.442695, %v1713_v47  ;;  %vm1758_vm5 = vcmp.eq.f32.partialorder %v701_v0, 8.507059e+37  ;;  %v704_v17 = vor.u32 1.1754944e-38, %v703_v1 }
  0xa3   : > { %v1469_v48 = vpop.eup %1468  ;;  %v1715_v49 = vadd.f32 1.0, %v1467_v46  ;;  %v1303_v19 = vmul.f32 -1.442695, %v1738_v3  ;;  %v1769_v21 = vmul.f32 -1.442695, %v1741_v4 }
  0xa4   : > { %v1717_v50 = vpop.eup %1470  ;;  %v1719_v51 = vadd.f32 1.0, %v1469_v48 }
  0xa5   : > { %v1722_v53 = vpop.eup %1472  ;;  %v573_v54 = vmul.f32 %v1717_v50, %v1701_v39  ;;  %1478 = vrcp.f32 %v1715_v49  ;;  %vm578_vm4 = vweird.f32 %v1717_v50  ;;  %v821_v11 = vand.u32 2147483647, %v1715_v49 }
  0xa6   : > { %v1475_v59 = vpop.eup %1474  ;;  %v693_v60 = vmul.f32 %v1722_v53, %v1704_v41  ;;  %1480 = vrcp.f32 %v1719_v51  ;;  %v823_v15 = vand.u32 2147483648, %v1715_v49  ;;  %v943_v16 = vand.u32 2147483648, %v1719_v51  ;;  %vm1781_vm8 = vmor %vm577_vm1, %vm578_vm4 }
  0xa7   : > { %v1477_v62 = vpop.eup %1476  ;;  %v574_v63 = vsub.f32 1.0, %v573_v54  ;;  %1482 = vpow2.f32 %v1318_v52  ;;  %v1748_v8 = vadd.f32 1.0, %v1475_v59  ;;  %v409_v22 = vpop.f32.mrf.mxu2  ;;  %vm698_vm6 = vweird.f32 %v1722_v53 }
  0xa8   : > { %v694_v2 = vsub.f32 1.0, %v693_v60  ;;  %v1750_v9 = vadd.f32 1.0, %v1477_v62  ;;  %1484 = vpow2.f32 %v1326_v61  ;;  %vm817_vm7 = vweird.f32 %v1715_v49  ;;  %vm1806_vm11 = vmor %vm697_vm2, %vm698_vm6 }
  0xa9   : > { %v575_v5 = vmul.f32 %v1717_v50, %v574_v63  ;;  %1486 = vrcp.f32 %v1748_v8  ;;  %v941_v35 = vand.u32 2147483647, %v1719_v51  ;;  %v596_v36 = vand.u32 2147483647, %v1748_v8 }
  0xaa   : > { %v695_v10 = vmul.f32 %v1722_v53, %v694_v2  ;;  %1488 = vrcp.f32 %v1750_v9  ;;  %vm1792_vm9 = vcmp.eq.f32.partialorder %v821_v11, 8.507059e+37  ;;  %v824_v39 = vor.u32 1.1754944e-38, %v823_v15 }
  0xab   : > { %v1755_v12 = vpop.eup %1478  ;;  %v576_v13 = vadd.f32 %v1717_v50, %v575_v5  ;;  %vm937_vm10 = vweird.f32 %v1719_v51  ;;  %v1797_v40 = vor.u32 1.1754944e-38, %v943_v16  ;;  %v1800_v42 = vadd.f32 %v409_v22, %v1677_v20 }
  0xac   : > { %v813_v18 = vmul.f32 %v1755_v12, %v1715_v49  ;;  %v1771_v25 = vpop.eup %1480  ;;  %v696_v26 = vadd.f32 %v1722_v53, %v695_v10  ;;  %vm818_vm12 = vweird.f32 %v1755_v12  ;;  %vm592_vm13 = vweird.f32 %v1748_v8 }
  0xad   : > { %v1483_v27 = vpop.eup %1482  ;;  %v933_v32 = vmul.f32 %v1771_v25, %v1719_v51  ;;  %v580_v37 = vsel %vm1781_vm8, %v1717_v50, %v576_v13  ;;  %v598_v54 = vand.u32 2147483648, %v1748_v8  ;;  %1490 = vpow2.f32 %v1303_v19  ;;  %vm1843_vm0 = vmor %vm817_vm7, %vm818_vm12 }
  0xae   : > { %v814_v31 = vsub.f32 1.0, %v813_v18  ;;  %v1485_v43 = vpop.eup %1484  ;;  %v700_v52 = vsel %vm1806_vm11, %v1722_v53, %v696_v26  ;;  %v1817_v55 = vadd.f32 1.0, %v1483_v27  ;;  %v585_v41 = vsel %vm1744_vm3, %v584_v7, %v580_v37 }
  0xaf   : > { %v934_v48 = vsub.f32 1.0, %v933_v32  ;;  %v1487_v50 = vpop.eup %1486  ;;  %vm1824_vm14 = vcmp.eq.f32.partialorder %v596_v36, 8.507059e+37  ;;  %vm1828_vm15 = vcmp.eq.f32.partialorder %v941_v35, 8.507059e+37  ;;  %v716_v61 = vand.u32 2147483647, %v1750_v9 }
  0xb0   : > { %v815_v46 = vmul.f32 %v1755_v12, %v814_v31  ;;  %v588_v58 = vmul.f32 %v1487_v50, %v1748_v8  ;;  %v1489_v60 = vpop.eup %1488  ;;  %v718_v62 = vand.u32 2147483648, %v1750_v9  ;;  %1492 = vrcp.f32 %v1817_v55 }
  0xb1   : > { %v935_v57 = vmul.f32 %v1771_v25, %v934_v48  ;;  %v1835_v63 = vadd.f32 1.0, %v1485_v43  ;;  %v705_v0 = vsel %vm1758_vm5, %v704_v17, %v700_v52  ;;  %v708_v5 = vmul.f32 %v1489_v60, %v1750_v9  ;;  %v371_v43 = vpop.f32.mrf.mxu0 }
  0xb2   : > { %v816_v56 = vadd.f32 %v1755_v12, %v815_v46  ;;  %v589_v2 = vsub.f32 1.0, %v588_v58  ;;  %vm712_vm1 = vweird.f32 %v1750_v9  ;;  %v1052_v6 = vmul.f32 %v585_v41, %v1680_v23 }
  0xb3   : > { %v936_v10 = vadd.f32 %v1771_v25, %v935_v57  ;;  %vm938_vm2 = vweird.f32 %v1771_v25  ;;  %vm593_vm3 = vweird.f32 %v1487_v50  ;;  %v599_v11 = vor.u32 1.1754944e-38, %v598_v54  ;;  %v1491_v14 = vpop.eup %1490 }
  0xb4   : > { %v820_v7 = vsel %vm1843_vm0, %v1755_v12, %v816_v56  ;;  %v590_v49 = vmul.f32 %v1487_v50, %v589_v2  ;;  %v709_v13 = vsub.f32 1.0, %v708_v5  ;;  %v1060_v15 = vmul.f32 %v705_v0, %v1683_v24  ;;  %vm1865_vm5 = vmor %vm937_vm10, %vm938_vm2  ;;  %v411_v0 = vpop.f32.mrf.mxu2 }
  0xb5   : > { %vm1856_vm4 = vcmp.eq.f32.partialorder %v716_v61, 8.507059e+37  ;;  %v719_v23 = vor.u32 1.1754944e-38, %v718_v62  ;;  %1494 = vrcp.f32 %v1835_v63  ;;  %v825_v12 = vsel %vm1792_vm9, %v824_v39, %v820_v7  ;;  %vm594_vm7 = vmor %vm592_vm13, %vm593_vm3 }
  0xb6   : > { %v591_v18 = vadd.f32 %v1487_v50, %v590_v49  ;;  %v710_v19 = vmul.f32 %v1489_v60, %v709_v13  ;;  %vm713_vm6 = vweird.f32 %v1489_v60  ;;  %v1493_v24 = vpop.eup %1492  ;;  %v940_v22 = vsel %vm1865_vm5, %v1771_v25, %v936_v10 }
  0xb7   : > { %vm832_vm8 = vweird.f32 %v1817_v55  ;;  %v1876_v26 = vadd.f32 1.0, %v1491_v14  ;;  %1496 = vpow2.f32 %v1769_v21  ;;  %v828_v28 = vmul.f32 %v1493_v24, %v1817_v55  ;;  %vm714_vm9 = vmor %vm712_vm1, %vm713_vm6  ;;  %v429_v21 = vpop.f32.mrf.mxu3 }
  0xb8   : > { %v595_v51 = vsel %vm594_vm7, %v1487_v50, %v591_v18  ;;  %v711_v27 = vadd.f32 %v1489_v60, %v710_v19  ;;  %v836_v31 = vand.u32 2147483647, %v1817_v55  ;;  %v1882_v32 = vmul.f32 %v825_v12, %v1688_v29 }
  0xb9   : > { %v600_v8 = vsel %vm1824_vm14, %v599_v11, %v595_v51  ;;  %v838_v25 = vand.u32 2147483648, %v1817_v55  ;;  %1498 = vrcp.f32 %v1876_v26  ;;  %v945_v35 = vsel %vm1828_vm15, %v1797_v40, %v940_v22  ;;  %v374_v51 = vpop.f32.mrf.mxu0 }
  0xba   : > { %v1053_v36 = vmul.f32 %v600_v8, %v1694_v33  ;;  %v715_v37 = vsel %vm714_vm9, %v1489_v60, %v711_v27  ;;  %v829_v29 = vsub.f32 1.0, %v828_v28  ;;  %vm833_vm10 = vweird.f32 %v1493_v24 }
  0xbb   : > { %v1495_v38 = vpop.eup %1494  ;;  %v720_v9 = vsel %vm1856_vm4, %v719_v23, %v715_v37  ;;  %v956_v39 = vand.u32 2147483647, %v1835_v63  ;;  %v1319_v40 = vmul.f32 -1.442695, %v1800_v42  ;;  %vm1907_vm11 = vcmp.eq.f32.partialorder %v836_v31, 8.507059e+37  ;;  %vm834_vm12 = vmor %vm832_vm8, %vm833_vm10 }
  0xbc   : > { %v1356_v33 = vpack.c.bf16 %v1053_v36, %v1052_v6  ;;  %v1061_v44 = vmul.f32 %v720_v9, %v1697_v34  ;;  %v830_v46 = vmul.f32 %v1493_v24, %v829_v29  ;;  %v948_v48 = vmul.f32 %v1495_v38, %v1835_v63  ;;  %v391_v34 = vpop.f32.mrf.mxu1 }
  0xbd   : > { %v1497_v50 = vpop.eup %1496  ;;  %v839_v54 = vor.u32 1.1754944e-38, %v838_v25  ;;  %v958_v41 = vand.u32 2147483648, %v1835_v63  ;;  %1500 = vpow2.f32 %v1319_v40  ;;  %vm952_vm13 = vweird.f32 %v1835_v63 }
  0xbe   : > { %1357 = vst [vmem:[%s1899_s27] sm:$0xff] %v1356_v33   ;;  %v1376_v56 = vpack.c.bf16 %v1061_v44, %v1060_v15  ;;  %v831_v57 = vadd.f32 %v1493_v24, %v830_v46  ;;  %v949_v58 = vsub.f32 1.0, %v948_v48  ;;  %v1913_v59 = vadd.f32 1.0, %v1497_v50 }
  0xbf   : > { %v1915_v60 = vpop.eup %1498  ;;  %vm1921_vm14 = vcmp.eq.f32.partialorder %v956_v39, 8.507059e+37  ;;  %v1926_v61 = vadd.f32 %v429_v21, %v1677_v20  ;;  %v1929_v62 = vadd.f32 %v371_v43, %v1677_v20  ;;  %vm953_vm15 = vweird.f32 %v1495_v38  ;;  %v431_v17 = vpop.f32.mrf.mxu3 }
  0xc0   : > { %1436 = vst [vmem:[%s1899_s27 + $0x20] sm:$0xff] %v1376_v56   ;;  %v835_v1 = vsel %vm834_vm12, %v1493_v24, %v831_v57  ;;  %v950_v2 = vmul.f32 %v1495_v38, %v949_v58  ;;  %v603_v55 = vmul.f32 %v1915_v60, %v1876_v26  ;;  %v959_v6 = vor.u32 1.1754944e-38, %v958_v41  ;;  %vm954_vm0 = vmor %vm952_vm13, %vm953_vm15 }
  0xc1   : > { %v840_v5 = vsel %vm1907_vm11, %v839_v54, %v835_v1  ;;  %1502 = vrcp.f32 %v1913_v59  ;;  %v1938_v7 = vadd.f32 %v391_v34, %v1677_v20  ;;  %v1942_v13 = vadd.f32 %v411_v0, %v1677_v20  ;;  %v414_v34 = vpop.f32.mrf.mxu2 }
  0xc2   : > { %v1069_v10 = vmul.f32 %v840_v5, %v1710_v45  ;;  %v951_v49 = vadd.f32 %v1495_v38, %v950_v2  ;;  %v604_v11 = vsub.f32 1.0, %v603_v55  ;;  %v1076_v15 = vmul.f32 %v945_v35, %v1691_v30  ;;  %v376_v55 = vpop.f32.mrf.mxu0 }
  0xc3   : > { %v1501_v14 = vpop.eup %1500  ;;  %v611_v16 = vand.u32 2147483647, %v1876_v26  ;;  %v1327_v23 = vmul.f32 -1.442695, %v1926_v61  ;;  %v1304_v12 = vmul.f32 -1.442695, %v1929_v62  ;;  %v1962_v31 = vadd.f32 %v431_v17, %v1677_v20 }
  0xc4   : > { %v1396_v45 = vpack.c.bf16 %v1069_v10, %v1882_v32  ;;  %v955_v18 = vsel %vm954_vm0, %v1495_v38, %v951_v49  ;;  %v605_v19 = vmul.f32 %v1915_v60, %v604_v11  ;;  %v613_v24 = vand.u32 2147483648, %v1876_v26  ;;  %v394_v36 = vpop.f32.mrf.mxu1 }
  0xc5   : > { %v960_v30 = vsel %vm1921_vm14, %v959_v6, %v955_v18  ;;  %v1955_v22 = vadd.f32 1.0, %v1501_v14  ;;  %1504 = vpow2.f32 %v1327_v23  ;;  %v1312_v63 = vmul.f32 -1.442695, %v1938_v7 }
  0xc6   : > { %1440 = vst [vmem:[%s1899_s27 + $0x40] sm:$0xff] %v1396_v45   ;;  %v1077_v27 = vmul.f32 %v960_v30, %v1713_v47  ;;  %1506 = vpow2.f32 %v1304_v12  ;;  %v1320_v28 = vmul.f32 -1.442695, %v1942_v13  ;;  %v606_v8 = vadd.f32 %v1915_v60, %v605_v19 }
  0xc7   : > { %v1964_v32 = vpop.eup %1502  ;;  %vm607_vm1 = vweird.f32 %v1876_v26  ;;  %vm608_vm2 = vweird.f32 %v1915_v60  ;;  %1508 = vrcp.f32 %v1955_v22  ;;  %vm1972_vm3 = vcmp.eq.f32.partialorder %v611_v16, 8.507059e+37 }
  0xc8   : > { %v1416_v25 = vpack.c.bf16 %v1077_v27, %v1076_v15  ;;  %v723_v47 = vmul.f32 %v1964_v32, %v1913_v59  ;;  %v731_v35 = vand.u32 2147483647, %v1913_v59  ;;  %1510 = vpow2.f32 %v1312_v63  ;;  %vm1978_vm4 = vmor %vm607_vm1, %vm608_vm2 }
  0xc9   : > { %v614_v26 = vor.u32 1.1754944e-38, %v613_v24  ;;  %1512 = vpow2.f32 %v1320_v28  ;;  %v1328_v38 = vmul.f32 -1.442695, %v1962_v31  ;;  %v610_v39 = vsel %vm1978_vm4, %v1915_v60, %v606_v8  ;;  %v434_v60 = vpop.f32.mrf.mxu3 }
  0xca   : > { %1444 = vst [vmem:[%s1899_s27 + $0x60] sm:$0xff] %v1416_v25   ;;  %v724_v29 = vsub.f32 1.0, %v723_v47  ;;  %v733_v40 = vand.u32 2147483648, %v1913_v59  ;;  %v851_v43 = vand.u32 2147483647, %v1955_v22  ;;  %v1989_v33 = vadd.f32 %v374_v51, %v1677_v20  ;;  %v379_v6 = vpop.f32.mrf.mxu0 }
  0xcb   : > { %v1505_v9 = vpop.eup %1504  ;;  %v853_v48 = vand.u32 2147483648, %v1955_v22  ;;  %1514 = vpow2.f32 %v1328_v38  ;;  %vm727_vm5 = vweird.f32 %v1913_v59  ;;  %vm728_vm6 = vweird.f32 %v1964_v32 }
  0xcc   : > { %v1507_v44 = vpop.eup %1506  ;;  %v725_v46 = vmul.f32 %v1964_v32, %v724_v29  ;;  %v1993_v50 = vadd.f32 1.0, %v1505_v9  ;;  %vm1997_vm7 = vcmp.eq.f32.partialorder %v731_v35, 8.507059e+37  ;;  %v615_v56 = vsel %vm1972_vm3, %v614_v26, %v610_v39  ;;  %vm2017_vm8 = vmor %vm727_vm5, %vm728_vm6  ;;  %v396_v24 = vpop.f32.mrf.mxu1 }
  0xcd   : > { %v1509_v52 = vpop.eup %1508  ;;  %v2001_v41 = vadd.f32 1.0, %v1507_v44  ;;  %v734_v0 = vor.u32 1.1754944e-38, %v733_v40  ;;  %v1305_v1 = vmul.f32 -1.442695, %v1989_v33  ;;  %v2011_v2 = vadd.f32 %v394_v36, %v1677_v20 }
  0xce   : > { %v726_v57 = vadd.f32 %v1964_v32, %v725_v46  ;;  %v843_v58 = vmul.f32 %v1509_v52, %v1955_v22  ;;  %1516 = vrcp.f32 %v1993_v50  ;;  %v1511_v53 = vpop.eup %1510  ;;  %vm847_vm9 = vweird.f32 %v1955_v22 }
  0xcf   : > { %1518 = vrcp.f32 %v2001_v41  ;;  %v1513_v5 = vpop.eup %1512  ;;  %vm2022_vm10 = vcmp.eq.f32.partialorder %v851_v43, 8.507059e+37  ;;  %v854_v11 = vor.u32 1.1754944e-38, %v853_v48  ;;  %v2027_v14 = vmul.f32 %v615_v56, %v1738_v3 }
  0xd0   : > { %v844_v10 = vsub.f32 1.0, %v843_v58  ;;  %v730_v15 = vsel %vm2017_vm8, %v1964_v32, %v726_v57  ;;  %v2033_v59 = vadd.f32 %v414_v34, %v1677_v20  ;;  %v2036_v16 = vadd.f32 %v434_v60, %v1677_v20 }
  0xd1   : > { %v1515_v23 = vpop.eup %1514  ;;  %vm848_vm11 = vweird.f32 %v1509_v52  ;;  %v2038_v17 = vadd.f32 1.0, %v1511_v53  ;;  %v2041_v45 = vadd.f32 %v376_v55, %v1677_v20  ;;  %v973_v3 = vand.u32 2147483648, %v1993_v50 }
  0xd2   : > { %v845_v12 = vmul.f32 %v1509_v52, %v844_v10  ;;  %v2044_v18 = vadd.f32 1.0, %v1513_v5  ;;  %1520 = vpow2.f32 %v1305_v1  ;;  %v1313_v19 = vmul.f32 -1.442695, %v2011_v2  ;;  %vm849_vm12 = vmor %vm847_vm9, %vm848_vm11 }
  0xd3   : > { %v735_v63 = vsel %vm1997_vm7, %v734_v0, %v730_v15  ;;  %v626_v27 = vand.u32 2147483647, %v2001_v41  ;;  %1522 = vrcp.f32 %v2038_v17  ;;  %v628_v8 = vand.u32 2147483648, %v2001_v41 }
  0xd4   : > { %v2047_v30 = vpop.eup %1516  ;;  %v846_v51 = vadd.f32 %v1509_v52, %v845_v12  ;;  %1524 = vrcp.f32 %v2044_v18  ;;  %v2059_v25 = vadd.f32 1.0, %v1515_v23  ;;  %v971_v21 = vand.u32 2147483647, %v1993_v50 }
  0xd5   : > { %v1519_v28 = vpop.eup %1518  ;;  %v963_v32 = vmul.f32 %v2047_v30, %v1993_v50  ;;  %v2064_v36 = vadd.f32 %v396_v24, %v1677_v20  ;;  %vm622_vm13 = vweird.f32 %v2001_v41  ;;  %v746_v22 = vand.u32 2147483647, %v2038_v17 }
  0xd6   : > { %v850_v47 = vsel %vm849_vm12, %v1509_v52, %v846_v51  ;;  %v618_v35 = vmul.f32 %v1519_v28, %v2001_v41  ;;  %v748_v26 = vand.u32 2147483648, %v2038_v17  ;;  %v2070_v29 = vmul.f32 %v735_v63, %v1741_v4 }
  0xd7   : > { %v964_v37 = vsub.f32 1.0, %v963_v32  ;;  %v855_v38 = vsel %vm2022_vm10, %v854_v11, %v850_v47  ;;  %vm967_vm14 = vweird.f32 %v1993_v50  ;;  %v2075_v9 = vor.u32 1.1754944e-38, %v973_v3 }
  0xd8   : > { %v619_v39 = vsub.f32 1.0, %v618_v35  ;;  %v1521_v40 = vpop.eup %1520  ;;  %vm2077_vm15 = vcmp.eq.f32.partialorder %v626_v27, 8.507059e+37  ;;  %v629_v44 = vor.u32 1.1754944e-38, %v628_v8  ;;  %vm742_vm0 = vweird.f32 %v2038_v17 }
  0xd9   : > { %1526 = vrcp.f32 %v2059_v25  ;;  %v1523_v4 = vpop.eup %1522  ;;  %v965_v46 = vmul.f32 %v2047_v30, %v964_v37  ;;  %vm968_vm1 = vweird.f32 %v2047_v30  ;;  %vm623_vm2 = vweird.f32 %v1519_v28 }
  0xda   : > { %v620_v48 = vmul.f32 %v1519_v28, %v619_v39  ;;  %v1525_v52 = vpop.eup %1524  ;;  %v2086_v54 = vmul.f32 %v855_v38, %v1800_v42  ;;  %v738_v56 = vmul.f32 %v1523_v4, %v2038_v17  ;;  %vm2089_vm3 = vcmp.eq.f32.partialorder %v746_v22, 8.507059e+37  ;;  %vm624_vm5 = vmor %vm622_vm13, %vm623_vm2 }
  0xdb   : > { %v749_v58 = vor.u32 1.1754944e-38, %v748_v26  ;;  %vm862_vm4 = vweird.f32 %v2044_v18  ;;  %v858_v60 = vmul.f32 %v1525_v52, %v2044_v18  ;;  %v866_v53 = vand.u32 2147483647, %v2044_v18  ;;  %vm2117_vm9 = vmor %vm967_vm14, %vm968_vm1 }
  0xdc   : > { %v621_v34 = vadd.f32 %v1519_v28, %v620_v48  ;;  %v868_v0 = vand.u32 2147483648, %v2044_v18  ;;  %v739_v42 = vsub.f32 1.0, %v738_v56  ;;  %v986_v1 = vand.u32 2147483647, %v2059_v25 }
  0xdd   : > { %v2100_v55 = vadd.f32 1.0, %v1521_v40  ;;  %1528 = vpow2.f32 %v1313_v19  ;;  %v966_v5 = vadd.f32 %v2047_v30, %v965_v46  ;;  %vm2103_vm6 = vcmp.eq.f32.partialorder %v971_v21, 8.507059e+37 }
  0xde   : > { %v625_v10 = vsel %vm624_vm5, %v1519_v28, %v621_v34  ;;  %v859_v49 = vsub.f32 1.0, %v858_v60  ;;  %v1321_v11 = vmul.f32 -1.442695, %v2033_v59  ;;  %v740_v23 = vmul.f32 %v1523_v4, %v739_v42 }
  0xdf   : > { %v1527_v15 = vpop.eup %1526  ;;  %v630_v41 = vsel %vm2077_vm15, %v629_v44, %v625_v10  ;;  %vm743_vm7 = vweird.f32 %v1523_v4  ;;  %1530 = vrcp.f32 %v2100_v55  ;;  %vm863_vm8 = vweird.f32 %v1525_v52 }
  0xe0   : > { %v1055_v12 = vmul.f32 %v630_v41, %v1929_v62  ;;  %v860_v3 = vmul.f32 %v1525_v52, %v859_v49  ;;  %v978_v19 = vmul.f32 %v1527_v15, %v2059_v25  ;;  %v741_v63 = vadd.f32 %v1523_v4, %v740_v23  ;;  %vm744_vm11 = vmor %vm742_vm0, %vm743_vm7 }
  0xe1   : > { %vm2121_vm10 = vcmp.eq.f32.partialorder %v866_v53, 8.507059e+37  ;;  %v869_v27 = vor.u32 1.1754944e-38, %v868_v0  ;;  %v988_v62 = vand.u32 2147483648, %v2059_v25  ;;  %1532 = vpow2.f32 %v1321_v11  ;;  %vm864_vm12 = vmor %vm862_vm4, %vm863_vm8 }
  0xe2   : > { %v1361_v28 = vpack.c.bf16 %v1055_v12, %v2027_v14  ;;  %v861_v32 = vadd.f32 %v1525_v52, %v860_v3  ;;  %v979_v50 = vsub.f32 1.0, %v978_v19  ;;  %v970_v47 = vsel %vm2117_vm9, %v2047_v30, %v966_v5 }
  0xe3   : > { %v1529_v8 = vpop.eup %1528  ;;  %v745_v21 = vsel %vm744_vm11, %v1523_v4, %v741_v63  ;;  %vm983_vm13 = vweird.f32 %v1527_v15  ;;  %v1329_v35 = vmul.f32 -1.442695, %v2036_v16  ;;  %v1306_v18 = vmul.f32 -1.442695, %v2041_v45 }
  0xe4   : > { %1433 = vst [vmem:[%s1899_s27 + $0x8] sm:$0xff] %v1361_v28   ;;  %v750_v14 = vsel %vm2089_vm3, %v749_v58, %v745_v21  ;;  %v865_v17 = vsel %vm864_vm12, %v1525_v52, %v861_v32  ;;  %v980_v37 = vmul.f32 %v1527_v15, %v979_v50  ;;  %v2139_v22 = vadd.f32 1.0, %v1529_v8  ;;  %v416_v58 = vpop.f32.mrf.mxu2  ;;  %v399_v8 = vpop.f32.mrf.mxu1 }
  0xe5   : > { %v2141_v26 = vpop.eup %1530  ;;  %v1063_v30 = vmul.f32 %v750_v14, %v1938_v7  ;;  %v870_v38 = vsel %vm2121_vm10, %v869_v27, %v865_v17  ;;  %1534 = vpow2.f32 %v1329_v35  ;;  %vm982_vm14 = vweird.f32 %v2059_v25 }
  0xe6   : > { %v1071_v39 = vmul.f32 %v870_v38, %v1942_v13  ;;  %v981_v40 = vadd.f32 %v1527_v15, %v980_v37  ;;  %v633_v43 = vmul.f32 %v2141_v26, %v2100_v55  ;;  %v975_v7 = vsel %vm2103_vm6, %v2075_v9, %v970_v47  ;;  %vm984_vm15 = vmor %vm982_vm14, %vm983_vm13 }
  0xe7   : > { %v1381_v44 = vpack.c.bf16 %v1063_v30, %v2070_v29  ;;  %v989_v4 = vor.u32 1.1754944e-38, %v988_v62  ;;  %1536 = vrcp.f32 %v2139_v22  ;;  %v1533_v46 = vpop.eup %1532  ;;  %vm987_vm0 = vcmp.eq.f32.partialorder %v986_v1, 8.507059e+37 }
  0xe8   : > { %v1401_v13 = vpack.c.bf16 %v1071_v39, %v2086_v54  ;;  %v985_v48 = vsel %vm984_vm15, %v1527_v15, %v981_v40  ;;  %v634_v25 = vsub.f32 1.0, %v633_v43  ;;  %v2159_v56 = vadd.f32 1.0, %v1533_v46 }
  0xe9   : > { %1437 = vst [vmem:[%s1899_s27 + $0x28] sm:$0xff] %v1381_v44   ;;  %v990_v52 = vsel %vm987_vm0, %v989_v4, %v985_v48  ;;  %1538 = vpow2.f32 %v1306_v18  ;;  %v1078_v9 = vmul.f32 %v975_v7, %v1926_v61  ;;  %v1314_v57 = vmul.f32 -1.442695, %v2064_v36  ;;  %v436_v61 = vpop.f32.mrf.mxu3 }
  0xea   : > { %1441 = vst [vmem:[%s1899_s27 + $0x48] sm:$0xff] %v1401_v13   ;;  %v1079_v29 = vmul.f32 %v990_v52, %v1962_v31  ;;  %v635_v54 = vmul.f32 %v2141_v26, %v634_v25  ;;  %v2172_v42 = vadd.f32 %v416_v58, %v1677_v20  ;;  %vm637_vm1 = vweird.f32 %v2100_v55 }
  0xeb   : > { %v1535_v34 = vpop.eup %1534  ;;  %1540 = vpow2.f32 %v1314_v57  ;;  %vm638_vm2 = vweird.f32 %v2141_v26  ;;  %v2184_v15 = vadd.f32 %v436_v61, %v1677_v20  ;;  %v641_v41 = vand.u32 2147483647, %v2100_v55 }
  0xec   : > { %v1421_v60 = vpack.c.bf16 %v1079_v29, %v1078_v9  ;;  %1542 = vrcp.f32 %v2159_v56  ;;  %v2169_v0 = vadd.f32 1.0, %v1535_v34  ;;  %v636_v5 = vadd.f32 %v2141_v26, %v635_v54  ;;  %vm2198_vm3 = vmor %vm637_vm1, %vm638_vm2 }
  0xed   : > { %v2166_v53 = vpop.eup %1536  ;;  %v1322_v11 = vmul.f32 -1.442695, %v2172_v42  ;;  %v643_v23 = vand.u32 2147483648, %v2100_v55  ;;  %v761_v3 = vand.u32 2147483647, %v2139_v22  ;;  %v2192_v19 = vadd.f32 %v379_v6, %v1677_v20 }
  0xee   : > { %1445 = vst [vmem:[%s1899_s27 + $0x68] sm:$0xff] %v1421_v60   ;;  %v753_v31 = vmul.f32 %v2166_v53, %v2139_v22  ;;  %1544 = vrcp.f32 %v2169_v0  ;;  %v763_v51 = vand.u32 2147483648, %v2139_v22  ;;  %v640_v62 = vsel %vm2198_vm3, %v2141_v26, %v636_v5  ;;  %v419_v60 = vpop.f32.mrf.mxu2 }
  0xef   : > { %v1539_v1 = vpop.eup %1538  ;;  %v1330_v32 = vmul.f32 -1.442695, %v2184_v15  ;;  %vm642_vm4 = vcmp.eq.f32.partialorder %v641_v41, 8.507059e+37  ;;  %v644_v50 = vor.u32 1.1754944e-38, %v643_v23  ;;  %vm757_vm5 = vweird.f32 %v2139_v22 }
  0xf0   : > { %v754_v10 = vsub.f32 1.0, %v753_v31  ;;  %v2180_v49 = vadd.f32 1.0, %v1539_v1  ;;  %v883_v55 = vand.u32 2147483648, %v2159_v56  ;;  %vm2212_vm6 = vcmp.eq.f32.partialorder %v761_v3, 8.507059e+37 }
  0xf1   : > { %v1541_v12 = vpop.eup %1540  ;;  %v1307_v35 = vmul.f32 -1.442695, %v2192_v19  ;;  %v645_v17 = vsel %vm642_vm4, %v644_v50, %v640_v62  ;;  %vm758_vm7 = vweird.f32 %v2166_v53  ;;  %v764_v37 = vor.u32 1.1754944e-38, %v763_v51  ;;  %v439_v61 = vpop.f32.mrf.mxu3 }
  0xf2   : > { %1546 = vrcp.f32 %v2180_v49  ;;  %v2194_v24 = vpop.eup %1542  ;;  %v2203_v27 = vadd.f32 1.0, %v1541_v12  ;;  %v755_v28 = vmul.f32 %v2166_v53, %v754_v10  ;;  %v881_v26 = vand.u32 2147483647, %v2159_v56  ;;  %vm2244_vm8 = vmor %vm757_vm5, %vm758_vm7 }
  0xf3   : > { %1548 = vpow2.f32 %v1322_v11  ;;  %v873_v21 = vmul.f32 %v2194_v24, %v2159_v56  ;;  %v656_v18 = vand.u32 2147483647, %v2180_v49  ;;  %v2227_v39 = vadd.f32 %v399_v8, %v1677_v20 }
  0xf4   : > { %1550 = vrcp.f32 %v2203_v27  ;;  %v2220_v14 = vpop.eup %1544  ;;  %v756_v38 = vadd.f32 %v2166_v53, %v755_v28  ;;  %v2229_v40 = vor.u32 1.1754944e-38, %v883_v55  ;;  %v1001_v43 = vand.u32 2147483647, %v2169_v0 }
  0xf5   : > { %1552 = vpow2.f32 %v1330_v32  ;;  %v658_v44 = vand.u32 2147483648, %v2180_v49  ;;  %v874_v46 = vsub.f32 1.0, %v873_v21  ;;  %v993_v13 = vmul.f32 %v2220_v14, %v2169_v0 }
  0xf6   : > { %1554 = vpow2.f32 %v1307_v35  ;;  %v1315_v48 = vmul.f32 -1.442695, %v2227_v39  ;;  %v2238_v25 = vmul.f32 %v645_v17, %v1989_v33  ;;  %v1003_v9 = vand.u32 2147483648, %v2169_v0 }
  0xf7   : > { %v760_v34 = vsel %vm2244_vm8, %v2166_v53, %v756_v38  ;;  %vm877_vm9 = vweird.f32 %v2159_v56  ;;  %vm878_vm10 = vweird.f32 %v2194_v24  ;;  %vm652_vm11 = vweird.f32 %v2180_v49 }
  0xf8   : > { %v1547_v30 = vpop.eup %1546  ;;  %vm2257_vm12 = vcmp.eq.f32.partialorder %v656_v18, 8.507059e+37  ;;  %1556 = vpow2.f32 %v1315_v48  ;;  %v875_v53 = vmul.f32 %v2194_v24, %v874_v46  ;;  %v994_v1 = vsub.f32 1.0, %v993_v13 }
  0xf9   : > { %v648_v7 = vmul.f32 %v1547_v30, %v2180_v49  ;;  %v1549_v4 = vpop.eup %1548  ;;  %vm653_vm13 = vweird.f32 %v1547_v30  ;;  %vm998_vm14 = vweird.f32 %v2220_v14  ;;  %v659_v5 = vor.u32 1.1754944e-38, %v658_v44  ;;  %v401_v44 = vpop.f32.mrf.mxu1 }
  0xfa   : > { %v2249_v57 = vadd.f32 1.0, %v1549_v4  ;;  %v1551_v58 = vpop.eup %1550  ;;  %v765_v6 = vsel %vm2212_vm6, %v764_v37, %v760_v34  ;;  %v776_v41 = vand.u32 2147483647, %v2203_v27  ;;  %vm997_vm15 = vweird.f32 %v2169_v0  ;;  %vm654_vm0 = vmor %vm652_vm11, %vm653_vm13 }
  0xfb   : > { %v649_v29 = vsub.f32 1.0, %v648_v7  ;;  %v768_v54 = vmul.f32 %v1551_v58, %v2203_v27  ;;  %v1553_v31 = vpop.eup %1552  ;;  %v778_v12 = vand.u32 2147483648, %v2203_v27  ;;  %v2276_v63 = vadd.f32 %v419_v60, %v1677_v20  ;;  %vm2301_vm6 = vmor %vm877_vm9, %vm878_vm10  ;;  %v381_v7 = vpop.f32.mrf.mxu0 }
  0xfc   : > { %1558 = vrcp.f32 %v2249_v57  ;;  %v1555_v23 = vpop.eup %1554  ;;  %v2273_v3 = vadd.f32 1.0, %v1553_v31  ;;  %v2279_v51 = vadd.f32 %v439_v61, %v1677_v20  ;;  %vm2281_vm1 = vcmp.eq.f32.partialorder %v881_v26, 8.507059e+37  ;;  %vm2334_vm9 = vmor %vm997_vm15, %vm998_vm14 }
  0xfd   : > { %v650_v22 = vmul.f32 %v1547_v30, %v649_v29  ;;  %v769_v11 = vsub.f32 1.0, %v768_v54  ;;  %vm773_vm2 = vweird.f32 %v1551_v58  ;;  %v2285_v50 = vadd.f32 1.0, %v1555_v23 }
  0xfe   : > { %v876_v49 = vadd.f32 %v2194_v24, %v875_v53  ;;  %v995_v55 = vmul.f32 %v2220_v14, %v994_v1  ;;  %1560 = vrcp.f32 %v2273_v3  ;;  %v1557_v47 = vpop.eup %1556  ;;  %v1064_v21 = vmul.f32 %v765_v6, %v2011_v2 }
  0xff   : > { %v651_v10 = vadd.f32 %v1547_v30, %v650_v22  ;;  %v770_v32 = vmul.f32 %v1551_v58, %v769_v11  ;;  %vm772_vm3 = vweird.f32 %v2203_v27  ;;  %vm777_vm5 = vcmp.eq.f32.partialorder %v776_v41, 8.507059e+37 }
 0x100   : > { %vm774_vm4 = vmor %vm772_vm3, %vm773_vm2  ;;  %v779_v26 = vor.u32 1.1754944e-38, %v778_v12  ;;  %1562 = vrcp.f32 %v2285_v50  ;;  %v1331_v18 = vmul.f32 -1.442695, %v2279_v51  ;;  %v880_v4 = vsel %vm2301_vm6, %v2194_v24, %v876_v49 }
 0x101   : > { %v655_v28 = vsel %vm654_vm0, %v1547_v30, %v651_v10  ;;  %v771_v17 = vadd.f32 %v1551_v58, %v770_v32  ;;  %v1323_v30 = vmul.f32 -1.442695, %v2276_v63  ;;  %v996_v46 = vadd.f32 %v2220_v14, %v995_v55 }
 0x102   : > { %v660_v8 = vsel %vm2257_vm12, %v659_v5, %v655_v28  ;;  %v1559_v37 = vpop.eup %1558  ;;  %v896_v13 = vand.u32 2147483647, %v2249_v57  ;;  %vm2315_vm7 = vcmp.eq.f32.partialorder %v1001_v43, 8.507059e+37  ;;  %v898_v29 = vand.u32 2147483648, %v2249_v57 }
 0x103   : > { %v1057_v35 = vmul.f32 %v660_v8, %v2041_v45  ;;  %v775_v27 = vsel %vm774_vm4, %v1551_v58, %v771_v17  ;;  %v888_v38 = vmul.f32 %v1559_v37, %v2249_v57  ;;  %v2322_v58 = vadd.f32 1.0, %v1557_v47  ;;  %v421_v17 = vpop.f32.mrf.mxu2 }
 0x104   : > { %v780_v56 = vsel %vm777_vm5, %v779_v26, %v775_v27  ;;  %v1561_v24 = vpop.eup %1560  ;;  %vm893_vm8 = vweird.f32 %v1559_v37  ;;  %1564 = vpow2.f32 %v1323_v30  ;;  %v2325_v34 = vadd.f32 %v381_v7, %v1677_v20 }
 0x105   : > { %v1366_v45 = vpack.c.bf16 %v1057_v35, %v2238_v25  ;;  %v1065_v25 = vmul.f32 %v780_v56, %v2064_v36  ;;  %v889_v52 = vsub.f32 1.0, %v888_v38  ;;  %v2328_v43 = vadd.f32 %v401_v44, %v1677_v20 }
 0x106   : > { %v1008_v54 = vmul.f32 %v1561_v24, %v2273_v3  ;;  %1566 = vpow2.f32 %v1331_v18  ;;  %v2339_v60 = vpop.eup %1562  ;;  %v885_v61 = vsel %vm2281_vm1, %v2229_v40, %v880_v4  ;;  %v1000_v31 = vsel %vm2334_vm9, %v2220_v14, %v996_v46 }
 0x107   : > { %1434 = vst [vmem:[%s1899_s27 + $0x10] sm:$0xff] %v1366_v45   ;;  %v1386_v33 = vpack.c.bf16 %v1065_v25, %v1064_v21  ;;  %v890_v22 = vmul.f32 %v1559_v37, %v889_v52  ;;  %vm892_vm10 = vweird.f32 %v2249_v57  ;;  %1568 = vrcp.f32 %v2322_v58 }
 0x108   : > { %vm897_vm11 = vcmp.eq.f32.partialorder %v896_v13, 8.507059e+37  ;;  %v1009_v1 = vsub.f32 1.0, %v1008_v54  ;;  %v1016_v5 = vand.u32 2147483647, %v2273_v3  ;;  %vm894_vm12 = vmor %vm892_vm10, %vm893_vm8  ;;  %v899_v6 = vor.u32 1.1754944e-38, %v898_v29 }
 0x109   : > { %1438 = vst [vmem:[%s1899_s27 + $0x30] sm:$0xff] %v1386_v33   ;;  %v891_v53 = vadd.f32 %v1559_v37, %v890_v22  ;;  %v1018_v10 = vand.u32 2147483648, %v2273_v3  ;;  %v1308_v40 = vmul.f32 -1.442695, %v2325_v34  ;;  %v1316_v11 = vmul.f32 -1.442695, %v2328_v43 }
 0x10a   : > { %v1010_v41 = vmul.f32 %v1561_v24, %v1009_v1  ;;  %vm1013_vm13 = vweird.f32 %v1561_v24  ;;  %v663_v57 = vmul.f32 %v2339_v60, %v2285_v50  ;;  %v1565_v23 = vpop.eup %1564  ;;  %v1072_v12 = vmul.f32 %v885_v61, %v2033_v59 }
 0x10b   : > { %v895_v14 = vsel %vm894_vm12, %v1559_v37, %v891_v53  ;;  %v1004_v62 = vor.u32 1.1754944e-38, %v1003_v9  ;;  %1570 = vpow2.f32 %v1308_v40  ;;  %vm1012_vm14 = vweird.f32 %v2273_v3 }
 0x10c   : > { %v900_v28 = vsel %vm897_vm11, %v899_v6, %v895_v14  ;;  %v1567_v32 = vpop.eup %1566  ;;  %v1011_v55 = vadd.f32 %v1561_v24, %v1010_v41  ;;  %1572 = vpow2.f32 %v1316_v11  ;;  %vm1014_vm15 = vmor %vm1012_vm14, %vm1013_vm13  ;;  %vm1017_vm0 = vcmp.eq.f32.partialorder %v1016_v5, 8.507059e+37 }
 0x10d   : > { %v1073_v49 = vmul.f32 %v900_v28, %v2172_v42  ;;  %v2362_v8 = vpop.eup %1568  ;;  %v1005_v47 = vsel %vm2315_vm7, %v1004_v62, %v1000_v31  ;;  %v1019_v59 = vor.u32 1.1754944e-38, %v1018_v10  ;;  %v664_v21 = vsub.f32 1.0, %v663_v57  ;;  %v441_v42 = vpop.f32.mrf.mxu3 }
 0x10e   : > { %v1015_v9 = vsel %vm1014_vm15, %v1561_v24, %v1011_v55  ;;  %v2366_v35 = vadd.f32 1.0, %v1565_v23  ;;  %v783_v3 = vmul.f32 %v2362_v8, %v2322_v58  ;;  %v1080_v26 = vmul.f32 %v1005_v47, %v2036_v16 }
 0x10f   : > { %v1406_v0 = vpack.c.bf16 %v1073_v49, %v1072_v12  ;;  %v1020_v37 = vsel %vm1017_vm0, %v1019_v59, %v1015_v9  ;;  %v2373_v2 = vadd.f32 1.0, %v1567_v32  ;;  %v2376_v27 = vadd.f32 %v421_v17, %v1677_v20 }
 0x110   : > { %v1081_v30 = vmul.f32 %v1020_v37, %v2184_v15  ;;  %v2379_v38 = vadd.f32 %v441_v42, %v1677_v20  ;;  %v665_v44 = vmul.f32 %v2339_v60, %v664_v21  ;;  %1574 = vrcp.f32 %v2366_v35 }
 0x111   : > { %1442 = vst [vmem:[%s1899_s27 + $0x50] sm:$0xff] %v1406_v0   ;;  %v1571_v45 = vpop.eup %1570  ;;  %v784_v16 = vsub.f32 1.0, %v783_v3  ;;  %1576 = vrcp.f32 %v2373_v2  ;;  %vm667_vm1 = vweird.f32 %v2285_v50  ;;  %v673_v15 = vand.u32 2147483648, %v2285_v50 }
 0x112   : > { %v1573_v18 = vpop.eup %1572  ;;  %v1426_v7 = vpack.c.bf16 %v1081_v30, %v1080_v26  ;;  %v2383_v4 = vadd.f32 1.0, %v1571_v45  ;;  %v1324_v20 = vmul.f32 -1.442695, %v2376_v27  ;;  %v666_v56 = vadd.f32 %v2339_v60, %v665_v44 }
 0x113   : > { %v2385_v46 = vadd.f32 1.0, %v1573_v18  ;;  %vm668_vm2 = vweird.f32 %v2339_v60  ;;  %v1332_v13 = vmul.f32 -1.442695, %v2379_v38  ;;  %v785_v48 = vmul.f32 %v2362_v8, %v784_v16 }
 0x114   : > { %1446 = vst [vmem:[%s1899_s27 + $0x70] sm:$0xff] %v1426_v7   ;;  %1578 = vrcp.f32 %v2383_v4  ;;  %v671_v52 = vand.u32 2147483647, %v2285_v50  ;;  %vm2401_vm3 = vmor %vm667_vm1, %vm668_vm2  ;;  %v791_v24 = vand.u32 2147483647, %v2322_v58  ;;  %v793_v36 = vand.u32 2147483648, %v2322_v58 }
 0x115   : > { %1580 = vrcp.f32 %v2385_v46  ;;  %v670_v22 = vsel %vm2401_vm3, %v2339_v60, %v666_v56  ;;  %v674_v54 = vor.u32 1.1754944e-38, %v673_v15  ;;  %v786_v50 = vadd.f32 %v2362_v8, %v785_v48 }
 0x116   : > { %v2398_v25 = vpop.eup %1574  ;;  %1582 = vpow2.f32 %v1324_v20  ;;  %vm787_vm4 = vweird.f32 %v2322_v58  ;;  %vm788_vm5 = vweird.f32 %v2362_v8  ;;  %vm672_vm6 = vcmp.eq.f32.partialorder %v671_v52, 8.507059e+37 }
 0x117   : > { %v2407_v33 = vpop.eup %1576  ;;  %1584 = vpow2.f32 %v1332_v13  ;;  %v903_v31 = vmul.f32 %v2398_v25, %v2366_v35  ;;  %v675_v5 = vsel %vm672_vm6, %v674_v54, %v670_v22  ;;  %vm2418_vm7 = vcmp.eq.f32.partialorder %v791_v24, 8.507059e+37  ;;  %vm2423_vm8 = vmor %vm787_vm4, %vm788_vm5 }
 0x118   : > { %v794_v60 = vor.u32 1.1754944e-38, %v793_v36  ;;  %v1023_v58 = vmul.f32 %v2407_v33, %v2373_v2  ;;  %vm682_vm9 = vweird.f32 %v2383_v4  ;;  %v686_v14 = vand.u32 2147483647, %v2383_v4 }
 0x119   : > { %v790_v57 = vsel %vm2423_vm8, %v2362_v8, %v786_v50  ;;  %v904_v23 = vsub.f32 1.0, %v903_v31  ;;  %v688_v12 = vand.u32 2147483648, %v2383_v4  ;;  %v808_v49 = vand.u32 2147483648, %v2385_v46 }
 0x11a   : > { %v1579_v61 = vpop.eup %1578  ;;  %v806_v59 = vand.u32 2147483647, %v2385_v46  ;;  %v1024_v9 = vsub.f32 1.0, %v1023_v58  ;;  %vm802_vm12 = vweird.f32 %v2385_v46  ;;  %v795_v8 = vsel %vm2418_vm7, %v794_v60, %v790_v57 }
 0x11b   : > { %v1581_v53 = vpop.eup %1580  ;;  %v678_v1 = vmul.f32 %v1579_v61, %v2383_v4  ;;  %vm683_vm10 = vweird.f32 %v1579_v61  ;;  %v689_v17 = vor.u32 1.1754944e-38, %v688_v12  ;;  %v905_v37 = vmul.f32 %v2398_v25, %v904_v23 }
 0x11c   : > { %v798_v10 = vmul.f32 %v1581_v53, %v2385_v46  ;;  %v1583_v41 = vpop.eup %1582  ;;  %vm803_vm11 = vweird.f32 %v1581_v53  ;;  %vm684_vm13 = vmor %vm682_vm9, %vm683_vm10  ;;  %vm687_vm14 = vcmp.eq.f32.partialorder %v686_v14, 8.507059e+37  ;;  %v809_v26 = vor.u32 1.1754944e-38, %v808_v49 }
 0x11d   : > { %v679_v11 = vsub.f32 1.0, %v678_v1  ;;  %v1585_v28 = vpop.eup %1584  ;;  %v2436_v55 = vadd.f32 1.0, %v1583_v41  ;;  %vm804_vm15 = vmor %vm802_vm12, %vm803_vm11  ;;  %v911_v30 = vand.u32 2147483647, %v2366_v35  ;;  %vm807_vm0 = vcmp.eq.f32.partialorder %v806_v59, 8.507059e+37 }
 0x11e   : > { %v799_v62 = vsub.f32 1.0, %v798_v10  ;;  %v2439_v0 = vadd.f32 1.0, %v1585_v28  ;;  %v1058_v7 = vmul.f32 %v675_v5, %v2192_v19  ;;  %v1025_v44 = vmul.f32 %v2407_v33, %v1024_v9 }
 0x11f   : > { %v680_v32 = vmul.f32 %v1579_v61, %v679_v11  ;;  %1586 = vrcp.f32 %v2436_v55  ;;  %v1066_v46 = vmul.f32 %v795_v8, %v2227_v39  ;;  %v913_v15 = vand.u32 2147483648, %v2366_v35 }
 0x120   : > { %v800_v47 = vmul.f32 %v1581_v53, %v799_v62  ;;  %1588 = vrcp.f32 %v2439_v0  ;;  %v906_v13 = vadd.f32 %v2398_v25, %v905_v37  ;;  %vm908_vm1 = vweird.f32 %v2398_v25 }
 0x121   : > { %v681_v21 = vadd.f32 %v1579_v61, %v680_v32  ;;  %vm907_vm2 = vweird.f32 %v2366_v35  ;;  %vm2461_vm3 = vcmp.eq.f32.partialorder %v911_v30, 8.507059e+37  ;;  %v1026_v39 = vadd.f32 %v2407_v33, %v1025_v44 }
 0x122   : > { %v801_v42 = vadd.f32 %v1581_v53, %v800_v47  ;;  %vm1028_vm4 = vweird.f32 %v2407_v33  ;;  %vm2469_vm5 = vmor %vm907_vm2, %vm908_vm1  ;;  %v914_v36 = vor.u32 1.1754944e-38, %v913_v15  ;;  %v1031_v35 = vand.u32 2147483647, %v2373_v2 }
 0x123   : > { %v685_v3 = vsel %vm684_vm13, %v1579_v61, %v681_v21  ;;  %v1033_v22 = vand.u32 2147483648, %v2373_v2  ;;  %v910_v61 = vsel %vm2469_vm5, %v2398_v25, %v906_v13  ;;  %vm1027_vm6 = vweird.f32 %v2373_v2 }
 0x124   : > { %v690_v45 = vsel %vm687_vm14, %v689_v17, %v685_v3  ;;  %v805_v18 = vsel %vm804_vm15, %v1581_v53, %v801_v42  ;;  %v928_v50 = vand.u32 2147483648, %v2436_v55  ;;  %vm2481_vm7 = vmor %vm1027_vm6, %vm1028_vm4  ;;  %v926_v5 = vand.u32 2147483647, %v2436_v55 }
 0x125   : > { %v1059_v4 = vmul.f32 %v690_v45, %v2325_v34  ;;  %v810_v16 = vsel %vm807_vm0, %v809_v26, %v805_v18  ;;  %v1587_v56 = vpop.eup %1586  ;;  %v1048_v6 = vand.u32 2147483648, %v2439_v0  ;;  %v1030_v60 = vsel %vm2481_vm7, %v2407_v33, %v1026_v39 }
 0x126   : > { %v1067_v20 = vmul.f32 %v810_v16, %v2328_v43  ;;  %v1589_v19 = vpop.eup %1588  ;;  %v918_v34 = vmul.f32 %v1587_v56, %v2436_v55  ;;  %vm923_vm8 = vweird.f32 %v1587_v56  ;;  %v1046_v2 = vand.u32 2147483647, %v2439_v0 }
 0x127   : > { %v1371_v48 = vpack.c.bf16 %v1059_v4, %v1058_v7  ;;  %v1038_v43 = vmul.f32 %v1589_v19, %v2439_v0  ;;  %vm1043_vm9 = vweird.f32 %v1589_v19  ;;  %vm1032_vm10 = vcmp.eq.f32.partialorder %v1031_v35, 8.507059e+37 }
 0x128   : > { %v1391_v52 = vpack.c.bf16 %v1067_v20, %v1066_v46  ;;  %v919_v54 = vsub.f32 1.0, %v918_v34  ;;  %v1034_v10 = vor.u32 1.1754944e-38, %v1033_v22  ;;  %vm922_vm11 = vweird.f32 %v2436_v55 }
 0x129   : > { %1435 = vst [vmem:[%s1899_s27 + $0x18] sm:$0xff] %v1371_v48   ;;  %v1039_v31 = vsub.f32 1.0, %v1038_v43  ;;  %v915_v58 = vsel %vm2461_vm3, %v914_v36, %v910_v61  ;;  %vm924_vm12 = vmor %vm922_vm11, %vm923_vm8  ;;  %v929_v11 = vor.u32 1.1754944e-38, %v928_v50  ;;  %vm1042_vm13 = vweird.f32 %v2439_v0 }
 0x12a   : > { %1439 = vst [vmem:[%s1899_s27 + $0x38] sm:$0xff] %v1391_v52   ;;  %v920_v1 = vmul.f32 %v1587_v56, %v919_v54  ;;  %v1035_v41 = vsel %vm1032_vm10, %v1034_v10, %v1030_v60  ;;  %vm927_vm14 = vcmp.eq.f32.partialorder %v926_v5, 8.507059e+37  ;;  %vm1044_vm15 = vmor %vm1042_vm13, %vm1043_vm9  ;;  %v1049_v57 = vor.u32 1.1754944e-38, %v1048_v6 }
 0x12b   : > { %v1040_v25 = vmul.f32 %v1589_v19, %v1039_v31  ;;  %vm1047_vm0 = vcmp.eq.f32.partialorder %v1046_v2, 8.507059e+37  ;;  %v1074_v62 = vmul.f32 %v915_v58, %v2276_v63  ;;  %v1082_v49 = vmul.f32 %v1035_v41, %v2279_v51 }
 0x12c   : > { %v921_v40 = vadd.f32 %v1587_v56, %v920_v1 }
 0x12d   : > { %v1041_v14 = vadd.f32 %v1589_v19, %v1040_v25 }
 0x12e   : > { %v925_v33 = vsel %vm924_vm12, %v1587_v56, %v921_v40 }
 0x12f   : > { %v930_v23 = vsel %vm927_vm14, %v929_v11, %v925_v33  ;;  %v1045_v12 = vsel %vm1044_vm15, %v1589_v19, %v1041_v14 }
 0x130   : > { %v1075_v28 = vmul.f32 %v930_v23, %v2376_v27  ;;  %v1050_v32 = vsel %vm1047_vm0, %v1049_v57, %v1045_v12 }
 0x131   : > { %v1083_v55 = vmul.f32 %v1050_v32, %v2379_v38 }
 0x132   : > { %v1411_v47 = vpack.c.bf16 %v1075_v28, %v1074_v62 }
 0x133   : > { %v1431_v59 = vpack.c.bf16 %v1083_v55, %v1082_v49 }
 0x134   : > { %1443 = vst [vmem:[%s1899_s27 + $0x58] sm:$0xff] %v1411_v47  }
 0x135   : > { %1447 = vst [vmem:[%s1899_s27 + $0x78] sm:$0xff] %v1431_v59  }
 0x136 PF: > { %s13_s12 = sadd.s32 1, %s1596_s12  }
 0x137   : > { %p10_p4 = scmp.ge.s32.totalorder %s13_s12, 4  }
 0x139   :  { %12 = sbr.rel (!%p10_p4) target bundleno = 1 (0x1), region = 62 }

// kernel: hms_hbac_spec_forward.6
= control target key start
LH: loop header
LB: loop body
LE: loop exit
PB: predicated region body
PF: predicated region fallthrough
CT: control target
= control target key end

     0   :  { %s2534_s12 = smov 0   ;;  %s3981_s0 = inlined_call_operand.vmem [shape: bf16[512,128], index: 0, kind: input, shape index: {}]   ;;  %s3982_s1 = inlined_call_operand.vmem [shape: bf16[128,256], index: 1, kind: input, shape index: {}]   ;;  %s3983_s2 = inlined_call_operand.vmem [shape: bf16[1,256], index: 2, kind: input, shape index: {}]   ;;  %s3984_s3 = inlined_call_operand.vmem [shape: bf16[512,256], index: 3, kind: output, shape index: {}]  }
   0x1 LB: > { %s1989_s13 = sadd.s32 4294967295, %s2512_s12   ;;  %p1993_p0 = scmp.ge.s32.totalorder %s2512_s12, 1  ;;  %s2512_s12 = sphi %s2534_s12, %s13_s12  }
   0x2   : > { %p138_p1 = scmp.lt.s32.totalorder %s2512_s12, 3 }
   0x4   : > { %p139_p2 = pnand %p1993_p0, %p138_p1 }
   0x5   : > { %s1994_s29 = sshll.u32 (!%p139_p2), %s1989_s13, 5 }
   0x6   : > { %142 = sbr.rel (%p139_p2) target bundleno = 483 (0x1e3), region = 32  ;;  %p164_p3 = scmp.lt.s32.totalorder (!%p139_p2), %s1994_s29, 63 }
   0xb   : > { %v2121_v0 = vld [vmem:[%s3982_s1 + $0x70] sm:$0xf]  ;;  %v2225_v1 = vld [vmem:[%s3982_s1 + $0x74] sm:$0xf0]  ;;  %v2224_v2 = vld [vmem:[%s3982_s1 + $0x74] sm:$0xf] }
   0xc   : > { %v2122_v3 = vor.u32 %v2225_v1, %v2121_v0  ;;  %v2123_v4 = vld [vmem:[%s3982_s1 + $0x78] sm:$0xf0]  ;;  %v2113_v5 = vld [vmem:[%s3982_s1 + $0x60] sm:$0xf]  ;;  %v2223_v6 = vld [vmem:[%s3982_s1 + $0x64] sm:$0xf0] }
   0xd   : > { %v2126_v7 = vor.u32 %v2224_v2, %v2123_v4  ;;  %v2222_v8 = vld [vmem:[%s3982_s1 + $0x64] sm:$0xf]  ;;  %v2115_v9 = vld [vmem:[%s3982_s1 + $0x68] sm:$0xf0]  ;;  %v2114_v10 = vor.u32 %v2223_v6, %v2113_v5  ;;  %v2105_v12 = vld [vmem:[%s3982_s1 + $0x50] sm:$0xf] }
   0xe   : > { %409 = vmatpush.bf16.msra.mxu0 %v2122_v3  ;;  %2226 = vmatpush.bf16.msra.mxu2 %v2122_v3  ;;  %v2118_v11 = vor.u32 %v2222_v8, %v2115_v9  ;;  %v2221_v13 = vld [vmem:[%s3982_s1 + $0x54] sm:$0xf0]  ;;  %v2220_v14 = vld [vmem:[%s3982_s1 + $0x54] sm:$0xf]  ;;  %v2107_v15 = vld [vmem:[%s3982_s1 + $0x58] sm:$0xf0] }
   0xf   : > { %498 = vmatpush.bf16.msra.mxu1 %v2126_v7  ;;  %2234 = vmatpush.bf16.msra.mxu3 %v2126_v7  ;;  %v2106_v16 = vor.u32 %v2221_v13, %v2105_v12  ;;  %v2110_v17 = vor.u32 %v2220_v14, %v2107_v15  ;;  %v2097_v18 = vld [vmem:[%s3982_s1 + $0x40] sm:$0xf]  ;;  %v2219_v19 = vld [vmem:[%s3982_s1 + $0x44] sm:$0xf0]  ;;  %v2218_v20 = vld [vmem:[%s3982_s1 + $0x44] sm:$0xf] }
  0x10   : > { %v2099_v21 = vld [vmem:[%s3982_s1 + $0x48] sm:$0xf0]  ;;  %v2098_v22 = vor.u32 %v2219_v19, %v2097_v18  ;;  %v2089_v24 = vld [vmem:[%s3982_s1 + $0x30] sm:$0xf]  ;;  %v2217_v25 = vld [vmem:[%s3982_s1 + $0x34] sm:$0xf0] }
  0x11   : > { %v2102_v23 = vor.u32 %v2218_v20, %v2099_v21  ;;  %v2216_v26 = vld [vmem:[%s3982_s1 + $0x34] sm:$0xf]  ;;  %v2091_v27 = vld [vmem:[%s3982_s1 + $0x38] sm:$0xf0]  ;;  %v2090_v28 = vor.u32 %v2217_v25, %v2089_v24  ;;  %v2081_v30 = vld [vmem:[%s3982_s1 + $0x20] sm:$0xf] }
  0x12   : > { %410 = vmatpush.bf16.msra.mxu0 %v2114_v10  ;;  %2227 = vmatpush.bf16.msra.mxu2 %v2114_v10  ;;  %v2094_v29 = vor.u32 %v2216_v26, %v2091_v27  ;;  %v2215_v31 = vld [vmem:[%s3982_s1 + $0x24] sm:$0xf0]  ;;  %v2214_v32 = vld [vmem:[%s3982_s1 + $0x24] sm:$0xf]  ;;  %v2083_v33 = vld [vmem:[%s3982_s1 + $0x28] sm:$0xf0] }
  0x13   : > { %499 = vmatpush.bf16.msra.mxu1 %v2118_v11  ;;  %2235 = vmatpush.bf16.msra.mxu3 %v2118_v11  ;;  %v2082_v34 = vor.u32 %v2215_v31, %v2081_v30  ;;  %v2086_v35 = vor.u32 %v2214_v32, %v2083_v33  ;;  %v2073_v36 = vld [vmem:[%s3982_s1 + $0x10] sm:$0xf]  ;;  %v2213_v37 = vld [vmem:[%s3982_s1 + $0x14] sm:$0xf0]  ;;  %s4096_s29 = smov (!%p164_p3, %s1994_s29), 63 }
  0x14   : > { %v2212_v38 = vld [vmem:[%s3982_s1 + $0x14] sm:$0xf]  ;;  %v2075_v39 = vld [vmem:[%s3982_s1 + $0x18] sm:$0xf0]  ;;  %v2074_v40 = vor.u32 %v2213_v37, %v2073_v36  ;;  %v2065_v42 = vld [vmem:[%s3982_s1] sm:$0xf] }
  0x15   : > { %v2078_v41 = vor.u32 %v2212_v38, %v2075_v39  ;;  %v2211_v43 = vld [vmem:[%s3982_s1 + $0x4] sm:$0xf0]  ;;  %s1995_s24 = sshll.u32 %s4096_s29, 2  ;;  %v2210_v44 = vld [vmem:[%s3982_s1 + $0x4] sm:$0xf]  ;;  %s2193_s8 = sshll.u32 %s4096_s29, 3 }
  0x16   : > { %411 = vmatpush.bf16.msra.mxu0 %v2106_v16  ;;  %2228 = vmatpush.bf16.msra.mxu2 %v2106_v16  ;;  %v2067_v45 = vld [vmem:[%s3982_s1 + $0x8] sm:$0xf0]  ;;  %v2066_v46 = vor.u32 %v2211_v43, %v2065_v42  ;;  %s2646_s5 = scalar_lea.vmem %s3981_s0, %s1995_s24  ;;  %v224_v0 = vld [vmem:[%s3983_s2] sm:$0x3]  ;;  %s2786_s9 = scalar_lea.vmem %s3984_s3, %s2193_s8 }
  0x17   : > { %500 = vmatpush.bf16.msra.mxu1 %v2110_v17  ;;  %2236 = vmatpush.bf16.msra.mxu3 %v2110_v17  ;;  %v2070_v47 = vor.u32 %v2210_v44, %v2067_v45  ;;  %v2194_v48 = vld [vmem:[%s2646_s5] sm:$0xff]  ;;  %v2195_v50 = vld [vmem:[%s2646_s5 + $0x8] sm:$0xff]  ;;  %v2196_v52 = vld [vmem:[%s2646_s5 + $0x10] sm:$0xff]  ;;  %v225_v1 = vunpack.c.l.bf16 %v224_v0 }
  0x18   : > { %v2202_v49 = vld [vmem:[%s2646_s5 + $0x40] sm:$0xff]  ;;  %v2203_v51 = vld [vmem:[%s2646_s5 + $0x48] sm:$0xff]  ;;  %v2204_v53 = vld [vmem:[%s2646_s5 + $0x50] sm:$0xff] }
  0x19   : > { %v2197_v54 = vld [vmem:[%s2646_s5 + $0x18] sm:$0xff]  ;;  %v2198_v56 = vld [vmem:[%s2646_s5 + $0x20] sm:$0xff]  ;;  %v2199_v58 = vld [vmem:[%s2646_s5 + $0x28] sm:$0xff]  ;;  %v227_v2 = vperm.slane %v225_v1, 0  ;;  %v228_v3 = vperm.slane %v225_v1, 2 }
  0x1a   : > { %412 = vmatpush.bf16.msra.mxu0 %v2098_v22  ;;  %2229 = vmatpush.bf16.msra.mxu2 %v2098_v22  ;;  %v2205_v55 = vld [vmem:[%s2646_s5 + $0x58] sm:$0xff]  ;;  %v2206_v57 = vld [vmem:[%s2646_s5 + $0x60] sm:$0xff]  ;;  %v2207_v59 = vld [vmem:[%s2646_s5 + $0x68] sm:$0xff] }
  0x1b   : > { %501 = vmatpush.bf16.msra.mxu1 %v2102_v23  ;;  %2237 = vmatpush.bf16.msra.mxu3 %v2102_v23  ;;  %v2200_v60 = vld [vmem:[%s2646_s5 + $0x30] sm:$0xff]  ;;  %v2201_v62 = vld [vmem:[%s2646_s5 + $0x38] sm:$0xff]  ;;  %v2667_v4 = vperm.slane %v227_v2, 0  ;;  %v2669_v5 = vperm.slane %v228_v3, 0 }
  0x1c   : > { %v2208_v61 = vld [vmem:[%s2646_s5 + $0x70] sm:$0xff]  ;;  %v2209_v63 = vld [vmem:[%s2646_s5 + $0x78] sm:$0xff] }
  0x1e   : > { %413 = vmatpush.bf16.msra.mxu0 %v2090_v28  ;;  %2230 = vmatpush.bf16.msra.mxu2 %v2090_v28 }
  0x1f   : > { %502 = vmatpush.bf16.msra.mxu1 %v2094_v29  ;;  %2238 = vmatpush.bf16.msra.mxu3 %v2094_v29 }
  0x22   : > { %414 = vmatpush.bf16.msra.mxu0 %v2082_v34  ;;  %2231 = vmatpush.bf16.msra.mxu2 %v2082_v34 }
  0x23   : > { %503 = vmatpush.bf16.msra.mxu1 %v2086_v35  ;;  %2239 = vmatpush.bf16.msra.mxu3 %v2086_v35 }
  0x26   : > { %415 = vmatpush.bf16.msra.mxu0 %v2074_v40  ;;  %2232 = vmatpush.bf16.msra.mxu2 %v2074_v40 }
  0x27   : > { %504 = vmatpush.bf16.msra.mxu1 %v2078_v41  ;;  %2240 = vmatpush.bf16.msra.mxu3 %v2078_v41 }
  0x2a   : > { %416 = vmatpush.bf16.msra.mxu0 %v2066_v46  ;;  %2233 = vmatpush.bf16.msra.mxu2 %v2066_v46 }
  0x2b   : > { %505 = vmatpush.bf16.msra.mxu1 %v2070_v47  ;;  %2241 = vmatpush.bf16.msra.mxu3 %v2070_v47 }
  0x2d   : > { %417 = vmatmul.bf16.vlgmr.msra.gmra.mxu0 %v2194_v48  ;;  %457 = vmatmul.bf16.vlgmr.msra.gmra.mxu2 %v2202_v49 }
  0x2e   : > { %506 = vmatmul.bf16.vlgmr.msra.gmra.mxu1 %v2194_v48  ;;  %546 = vmatmul.bf16.vlgmr.msra.gmra.mxu3 %v2202_v49 }
  0x3d   : > { %422 = vmatmul.bf16.gmra.mxu0 %v2195_v50  ;;  %462 = vmatmul.bf16.gmra.mxu2 %v2203_v51 }
  0x3e   : > { %511 = vmatmul.bf16.gmra.mxu1 %v2195_v50  ;;  %551 = vmatmul.bf16.gmra.mxu3 %v2203_v51 }
  0x4d   : > { %427 = vmatmul.bf16.gmra.mxu0 %v2196_v52  ;;  %467 = vmatmul.bf16.gmra.mxu2 %v2204_v53 }
  0x4e   : > { %516 = vmatmul.bf16.gmra.mxu1 %v2196_v52  ;;  %556 = vmatmul.bf16.gmra.mxu3 %v2204_v53 }
  0x5d   : > { %432 = vmatmul.bf16.gmra.mxu0 %v2197_v54  ;;  %472 = vmatmul.bf16.gmra.mxu2 %v2205_v55 }
  0x5e   : > { %521 = vmatmul.bf16.gmra.mxu1 %v2197_v54  ;;  %561 = vmatmul.bf16.gmra.mxu3 %v2205_v55 }
  0x6d   : > { %437 = vmatmul.bf16.gmra.mxu0 %v2198_v56  ;;  %477 = vmatmul.bf16.gmra.mxu2 %v2206_v57 }
  0x6e   : > { %526 = vmatmul.bf16.gmra.mxu1 %v2198_v56  ;;  %566 = vmatmul.bf16.gmra.mxu3 %v2206_v57 }
  0x7d   : > { %442 = vmatmul.bf16.gmra.mxu0 %v2199_v58  ;;  %482 = vmatmul.bf16.gmra.mxu2 %v2207_v59 }
  0x7e   : > { %531 = vmatmul.bf16.gmra.mxu1 %v2199_v58  ;;  %571 = vmatmul.bf16.gmra.mxu3 %v2207_v59 }
  0x8d   : > { %447 = vmatmul.bf16.gmra.mxu0 %v2200_v60  ;;  %487 = vmatmul.bf16.gmra.mxu2 %v2208_v61 }
  0x8e   : > { %536 = vmatmul.bf16.gmra.mxu1 %v2200_v60  ;;  %576 = vmatmul.bf16.gmra.mxu3 %v2208_v61 }
  0x9d   : > { %452 = vmatmul.bf16.gmra.mxu0 %v2201_v62  ;;  %492 = vmatmul.bf16.gmra.mxu2 %v2209_v63 }
  0x9e   : > { %541 = vmatmul.bf16.gmra.mxu1 %v2201_v62  ;;  %581 = vmatmul.bf16.gmra.mxu3 %v2209_v63 }
  0xaa   : > { %v418_v6 = vpop.f32.mrf.mxu0 }
  0xab   : > { %v2672_v7 = vadd.f32 %v418_v6, %v2667_v4  ;;  %v507_v8 = vpop.f32.mrf.mxu1 }
  0xac   : > { %v2675_v9 = vadd.f32 %v507_v8, %v2669_v5 }
  0xad   : > { %v2127_v10 = vmul.f32 -1.442695, %v2672_v7 }
  0xae   : > { %v2128_v11 = vmul.f32 -1.442695, %v2675_v9 }
  0xaf   : > { %2250 = vpow2.f32 %v2127_v10 }
  0xb0   : > { %2252 = vpow2.f32 %v2128_v11  ;;  %v458_v12 = vpop.f32.mrf.mxu2 }
  0xb1   : > { %v2680_v13 = vadd.f32 %v458_v12, %v2667_v4  ;;  %v547_v14 = vpop.f32.mrf.mxu3 }
  0xb2   : > { %v2683_v15 = vadd.f32 %v547_v14, %v2669_v5  ;;  %v420_v16 = vpop.f32.mrf.mxu0 }
  0xb3   : > { %v2159_v17 = vmul.f32 -1.442695, %v2680_v13  ;;  %v2687_v18 = vadd.f32 %v420_v16, %v2667_v4  ;;  %v509_v19 = vpop.f32.mrf.mxu1 }
  0xb4   : > { %v2160_v20 = vmul.f32 -1.442695, %v2683_v15  ;;  %v2691_v21 = vadd.f32 %v509_v19, %v2669_v5 }
  0xb5   : > { %v2251_v22 = vpop.eup %2250  ;;  %2254 = vpow2.f32 %v2159_v17  ;;  %v2129_v23 = vmul.f32 -1.442695, %v2687_v18 }
  0xb6   : > { %v2253_v24 = vpop.eup %2252  ;;  %v2694_v25 = vadd.f32 1.0, %v2251_v22  ;;  %2256 = vpow2.f32 %v2160_v20  ;;  %v2130_v26 = vmul.f32 -1.442695, %v2691_v21 }
  0xb7   : > { %v2697_v27 = vadd.f32 1.0, %v2253_v24  ;;  %2258 = vpow2.f32 %v2129_v23 }
  0xb8   : > { %2260 = vrcp.f32 %v2694_v25  ;;  %v460_v28 = vpop.f32.mrf.mxu2  ;;  %v854_v30 = vand.u32 2147483648, %v2694_v25  ;;  %v852_v34 = vand.u32 2147483647, %v2694_v25  ;;  %vm848_vm0 = vweird.f32 %v2694_v25 }
  0xb9   : > { %2262 = vrcp.f32 %v2697_v27  ;;  %v549_v29 = vpop.f32.mrf.mxu3  ;;  %v2703_v31 = vadd.f32 %v460_v28, %v2667_v4  ;;  %v869_v35 = vand.u32 2147483648, %v2697_v27  ;;  %v867_v37 = vand.u32 2147483647, %v2697_v27 }
  0xba   : > { %2264 = vpow2.f32 %v2130_v26  ;;  %v423_v32 = vpop.f32.mrf.mxu0  ;;  %v2711_v39 = vadd.f32 %v549_v29, %v2669_v5  ;;  %v855_v45 = vor.u32 1.1754944e-38, %v854_v30  ;;  %vm863_vm1 = vweird.f32 %v2697_v27 }
  0xbb   : > { %v2255_v33 = vpop.eup %2254  ;;  %v2714_v40 = vadd.f32 %v423_v32, %v2667_v4  ;;  %v512_v41 = vpop.f32.mrf.mxu1  ;;  %v2161_v46 = vmul.f32 -1.442695, %v2703_v31  ;;  %vm2723_vm2 = vcmp.eq.f32.partialorder %v852_v34, 8.507059e+37  ;;  %v870_v50 = vor.u32 1.1754944e-38, %v869_v35 }
  0xbc   : > { %v2257_v36 = vpop.eup %2256  ;;  %v2708_v38 = vadd.f32 1.0, %v2255_v33  ;;  %v2729_v51 = vadd.f32 %v512_v41, %v2669_v5  ;;  %vm2732_vm3 = vcmp.eq.f32.partialorder %v867_v37, 8.507059e+37  ;;  %v2738_v56 = vmul.f32 -1.442695, %v2711_v39 }
  0xbd   : > { %v2259_v42 = vpop.eup %2258  ;;  %v2717_v43 = vadd.f32 1.0, %v2257_v36  ;;  %v2741_v57 = vmul.f32 -1.442695, %v2714_v40 }
  0xbe   : > { %v2261_v44 = vpop.eup %2260  ;;  %2266 = vrcp.f32 %v2708_v38  ;;  %v1334_v55 = vand.u32 2147483648, %v2708_v38  ;;  %v1332_v59 = vand.u32 2147483647, %v2708_v38  ;;  %v2745_v61 = vadd.f32 1.0, %v2259_v42 }
  0xbf   : > { %v2263_v47 = vpop.eup %2262  ;;  %v844_v48 = vmul.f32 %v2261_v44, %v2694_v25  ;;  %2268 = vrcp.f32 %v2717_v43  ;;  %v1347_v60 = vand.u32 2147483647, %v2717_v43  ;;  %v1349_v63 = vand.u32 2147483648, %v2717_v43 }
  0xc0   : > { %v2265_v52 = vpop.eup %2264  ;;  %v859_v53 = vmul.f32 %v2263_v47, %v2697_v27  ;;  %2270 = vpow2.f32 %v2161_v46  ;;  %vm849_vm4 = vweird.f32 %v2261_v44  ;;  %vm1328_vm5 = vweird.f32 %v2708_v38 }
  0xc1   : > { %v845_v58 = vsub.f32 1.0, %v844_v48  ;;  %v2748_v0 = vadd.f32 1.0, %v2265_v52  ;;  %2272 = vrcp.f32 %v2745_v61  ;;  %vm864_vm6 = vweird.f32 %v2263_v47  ;;  %vm850_vm9 = vmor %vm848_vm0, %vm849_vm4 }
  0xc2   : > { %v860_v62 = vsub.f32 1.0, %v859_v53  ;;  %v1335_v6 = vor.u32 1.1754944e-38, %v1334_v55  ;;  %vm1343_vm7 = vweird.f32 %v2717_v43  ;;  %vm2754_vm8 = vcmp.eq.f32.partialorder %v1332_v59, 8.507059e+37  ;;  %vm865_vm11 = vmor %vm863_vm1, %vm864_vm6  ;;  %v463_v55 = vpop.f32.mrf.mxu2 }
  0xc3   : > { %v846_v1 = vmul.f32 %v2261_v44, %v845_v58  ;;  %2274 = vrcp.f32 %v2748_v0  ;;  %v2760_v14 = vmul.f32 -1.442695, %v2729_v51  ;;  %vm2765_vm10 = vcmp.eq.f32.partialorder %v1347_v60, 8.507059e+37 }
  0xc4   : > { %v2267_v2 = vpop.eup %2266  ;;  %v861_v3 = vmul.f32 %v2263_v47, %v860_v62  ;;  %v1350_v20 = vor.u32 1.1754944e-38, %v1349_v63  ;;  %v882_v24 = vand.u32 2147483647, %v2745_v61  ;;  %v884_v26 = vand.u32 2147483648, %v2745_v61 }
  0xc5   : > { %v2269_v8 = vpop.eup %2268  ;;  %v847_v10 = vadd.f32 %v2261_v44, %v846_v1  ;;  %v1324_v11 = vmul.f32 %v2267_v2, %v2708_v38  ;;  %vm878_vm12 = vweird.f32 %v2745_v61  ;;  %vm1329_vm13 = vweird.f32 %v2267_v2  ;;  %v552_v1 = vpop.f32.mrf.mxu3 }
  0xc6   : > { %v862_v16 = vadd.f32 %v2263_v47, %v861_v3  ;;  %v1339_v17 = vmul.f32 %v2269_v8, %v2717_v43  ;;  %v2271_v25 = vpop.eup %2270  ;;  %vm1344_vm14 = vweird.f32 %v2269_v8  ;;  %vm2788_vm15 = vcmp.eq.f32.partialorder %v882_v24, 8.507059e+37  ;;  %vm1330_vm0 = vmor %vm1328_vm5, %vm1329_vm13 }
  0xc7   : > { %v851_v22 = vsel %vm850_vm9, %v2261_v44, %v847_v10  ;;  %v1325_v23 = vsub.f32 1.0, %v1324_v11  ;;  %v2273_v32 = vpop.eup %2272  ;;  %v885_v44 = vor.u32 1.1754944e-38, %v884_v26  ;;  %vm1345_vm1 = vmor %vm1343_vm7, %vm1344_vm14  ;;  %v897_v43 = vand.u32 2147483647, %v2748_v0 }
  0xc8   : > { %v856_v28 = vsel %vm2723_vm2, %v855_v45, %v851_v22  ;;  %v866_v29 = vsel %vm865_vm11, %v2263_v47, %v862_v16  ;;  %v1340_v30 = vsub.f32 1.0, %v1339_v17  ;;  %v874_v37 = vmul.f32 %v2273_v32, %v2745_v61 }
  0xc9   : > { %v1803_v33 = vmul.f32 %v856_v28, %v2672_v7  ;;  %v871_v27 = vsel %vm2732_vm3, %v870_v50, %v866_v29  ;;  %v1326_v34 = vmul.f32 %v2267_v2, %v1325_v23  ;;  %v2275_v41 = vpop.eup %2274  ;;  %v2792_v45 = vadd.f32 1.0, %v2271_v25 }
  0xca   : > { %v1804_v35 = vmul.f32 %v871_v27, %v2675_v9  ;;  %v1341_v36 = vmul.f32 %v2269_v8, %v1340_v30  ;;  %v875_v47 = vsub.f32 1.0, %v874_v37  ;;  %v889_v48 = vmul.f32 %v2275_v41, %v2748_v0  ;;  %v465_v27 = vpop.f32.mrf.mxu2 }
  0xcb   : > { %v1327_v42 = vadd.f32 %v2267_v2, %v1326_v34  ;;  %vm879_vm2 = vweird.f32 %v2273_v32  ;;  %v899_v50 = vand.u32 2147483648, %v2748_v0  ;;  %2276 = vrcp.f32 %v2792_v45 }
  0xcc   : > { %v1867_v9 = vpack.c.bf16 %v1804_v35, %v1803_v33  ;;  %v1342_v46 = vadd.f32 %v2269_v8, %v1341_v36  ;;  %v876_v38 = vmul.f32 %v2273_v32, %v875_v47  ;;  %v890_v54 = vsub.f32 1.0, %v889_v48  ;;  %vm880_vm4 = vmor %vm878_vm12, %vm879_vm2  ;;  %v514_v33 = vpop.f32.mrf.mxu1 }
  0xcd   : > { %v1331_v49 = vsel %vm1330_vm0, %v2267_v2, %v1327_v42  ;;  %vm894_vm3 = vweird.f32 %v2275_v41  ;;  %2278 = vpow2.f32 %v2738_v56  ;;  %v425_v2 = vpop.f32.mrf.mxu0  ;;  %vm893_vm5 = vweird.f32 %v2748_v0  ;;  %v554_v7 = vpop.f32.mrf.mxu3 }
  0xce   : > { %1899 = vst [vmem:[%s2786_s9] sm:$0xff] %v1867_v9  ;;  %v1336_v52 = vsel %vm2754_vm8, %v1335_v6, %v1331_v49  ;;  %v1346_v53 = vsel %vm1345_vm1, %v2269_v8, %v1342_v46  ;;  %v877_v62 = vadd.f32 %v2273_v32, %v876_v38  ;;  %v891_v63 = vmul.f32 %v2275_v41, %v890_v54  ;;  %vm895_vm6 = vmor %vm893_vm5, %vm894_vm3 }
  0xcf   : > { %v1835_v58 = vmul.f32 %v1336_v52, %v2680_v13  ;;  %v1351_v59 = vsel %vm2765_vm10, %v1350_v20, %v1346_v53  ;;  %v900_v13 = vor.u32 1.1754944e-38, %v899_v50  ;;  %2280 = vpow2.f32 %v2741_v57 }
  0xd0   : > { %v1836_v60 = vmul.f32 %v1351_v59, %v2683_v15  ;;  %v2816_v3 = vadd.f32 %v463_v55, %v2667_v4  ;;  %v881_v6 = vsel %vm880_vm4, %v2273_v32, %v877_v62  ;;  %v892_v8 = vadd.f32 %v2275_v41, %v891_v63 }
  0xd1   : > { %2282 = vpow2.f32 %v2760_v14  ;;  %v2277_v56 = vpop.eup %2276  ;;  %v886_v10 = vsel %vm2788_vm15, %v885_v44, %v881_v6  ;;  %v2824_v0 = vadd.f32 %v552_v1, %v2669_v5  ;;  %v2827_v57 = vadd.f32 %v425_v2, %v2667_v4 }
  0xd2   : > { %v1883_v15 = vpack.c.bf16 %v1836_v60, %v1835_v58  ;;  %v2163_v61 = vmul.f32 -1.442695, %v2816_v3  ;;  %v1805_v11 = vmul.f32 %v886_v10, %v2687_v18  ;;  %v896_v12 = vsel %vm895_vm6, %v2275_v41, %v892_v8 }
  0xd3   : > { %vm898_vm7 = vcmp.eq.f32.partialorder %v897_v43, 8.507059e+37  ;;  %v1354_v14 = vmul.f32 %v2277_v56, %v2792_v45  ;;  %v2164_v17 = vmul.f32 -1.442695, %v2824_v0  ;;  %v2133_v19 = vmul.f32 -1.442695, %v2827_v57  ;;  %v2279_v20 = vpop.eup %2278 }
  0xd4   : > { %1915 = vst [vmem:[%s2786_s9 + $0x80] sm:$0xff] %v1883_v15  ;;  %v901_v16 = vsel %vm898_vm7, %v900_v13, %v896_v12  ;;  %2284 = vpow2.f32 %v2163_v61  ;;  %v1362_v24 = vand.u32 2147483647, %v2792_v45  ;;  %vm1359_vm8 = vweird.f32 %v2277_v56 }
  0xd5   : > { %v1806_v22 = vmul.f32 %v901_v16, %v2691_v21  ;;  %v1355_v23 = vsub.f32 1.0, %v1354_v14  ;;  %v2281_v26 = vpop.eup %2280  ;;  %v1364_v18 = vand.u32 2147483648, %v2792_v45  ;;  %v2837_v25 = vadd.f32 1.0, %v2279_v20  ;;  %v428_v44 = vpop.f32.mrf.mxu0 }
  0xd6   : > { %2286 = vpow2.f32 %v2164_v17  ;;  %v2839_v32 = vadd.f32 1.0, %v2281_v26  ;;  %vm1358_vm9 = vweird.f32 %v2792_v45  ;;  %vm2850_vm11 = vcmp.eq.f32.partialorder %v1362_v24, 8.507059e+37 }
  0xd7   : > { %v2283_v28 = vpop.eup %2282  ;;  %v1868_v29 = vpack.c.bf16 %v1806_v22, %v1805_v11  ;;  %v1356_v30 = vmul.f32 %v2277_v56, %v1355_v23  ;;  %2288 = vpow2.f32 %v2133_v19  ;;  %vm2846_vm10 = vmor %vm1358_vm9, %vm1359_vm8  ;;  %v1365_v37 = vor.u32 1.1754944e-38, %v1364_v18 }
  0xd8   : > { %2290 = vrcp.f32 %v2837_v25  ;;  %v2854_v41 = vadd.f32 1.0, %v2283_v28  ;;  %v2857_v42 = vadd.f32 %v514_v33, %v2669_v5  ;;  %v1377_v9 = vand.u32 2147483647, %v2837_v25 }
  0xd9   : > { %1900 = vst [vmem:[%s2786_s9 + $0x8] sm:$0xff] %v1868_v29  ;;  %v1357_v21 = vadd.f32 %v2277_v56, %v1356_v30  ;;  %2292 = vrcp.f32 %v2839_v32  ;;  %v1379_v46 = vand.u32 2147483648, %v2837_v25  ;;  %v912_v49 = vand.u32 2147483647, %v2839_v32 }
  0xda   : > { %v2285_v34 = vpop.eup %2284  ;;  %v914_v50 = vand.u32 2147483648, %v2839_v32  ;;  %2294 = vrcp.f32 %v2854_v41  ;;  %v2869_v52 = vadd.f32 %v465_v27, %v2667_v4  ;;  %vm1373_vm12 = vweird.f32 %v2837_v25 }
  0xdb   : > { %v1361_v45 = vsel %vm2846_vm10, %v2277_v56, %v1357_v21  ;;  %v2863_v47 = vadd.f32 1.0, %v2285_v34  ;;  %v2874_v38 = vadd.f32 %v554_v7, %v2669_v5  ;;  %v2877_v54 = vadd.f32 %v428_v44, %v2667_v4 }
  0xdc   : > { %v2287_v48 = vpop.eup %2286  ;;  %v1366_v58 = vsel %vm2850_vm11, %v1365_v37, %v1361_v45  ;;  %vm908_vm13 = vweird.f32 %v2839_v32  ;;  %v2134_v43 = vmul.f32 -1.442695, %v2857_v42  ;;  %vm2886_vm14 = vcmp.eq.f32.partialorder %v1377_v9, 8.507059e+37 }
  0xdd   : > { %v2289_v53 = vpop.eup %2288  ;;  %2296 = vrcp.f32 %v2863_v47  ;;  %v2882_v59 = vadd.f32 1.0, %v2287_v48  ;;  %v1380_v1 = vor.u32 1.1754944e-38, %v1379_v46  ;;  %v927_v2 = vand.u32 2147483647, %v2854_v41 }
  0xde   : > { %v2291_v55 = vpop.eup %2290  ;;  %v929_v13 = vand.u32 2147483648, %v2854_v41  ;;  %vm2893_vm15 = vcmp.eq.f32.partialorder %v912_v49, 8.507059e+37  ;;  %v915_v8 = vor.u32 1.1754944e-38, %v914_v50  ;;  %vm923_vm0 = vweird.f32 %v2854_v41 }
  0xdf   : > { %v2293_v60 = vpop.eup %2292  ;;  %v1369_v62 = vmul.f32 %v2291_v55, %v2837_v25  ;;  %v1392_v56 = vand.u32 2147483647, %v2863_v47  ;;  %v1837_v10 = vmul.f32 %v1366_v58, %v2703_v31  ;;  %v1394_v11 = vand.u32 2147483648, %v2863_v47 }
  0xe0   : > { %v904_v15 = vmul.f32 %v2293_v60, %v2839_v32  ;;  %2298 = vrcp.f32 %v2882_v59  ;;  %v2295_v12 = vpop.eup %2294  ;;  %vm1374_vm1 = vweird.f32 %v2291_v55  ;;  %vm1388_vm2 = vweird.f32 %v2863_v47 }
  0xe1   : > { %v1370_v61 = vsub.f32 1.0, %v1369_v62  ;;  %v2903_v16 = vadd.f32 1.0, %v2289_v53  ;;  %2300 = vpow2.f32 %v2134_v43  ;;  %v919_v20 = vmul.f32 %v2295_v12, %v2854_v41  ;;  %vm1375_vm6 = vmor %vm1373_vm12, %vm1374_vm1 }
  0xe2   : > { %v905_v14 = vsub.f32 1.0, %v904_v15  ;;  %vm2906_vm3 = vcmp.eq.f32.partialorder %v927_v2, 8.507059e+37  ;;  %v930_v31 = vor.u32 1.1754944e-38, %v929_v13  ;;  %vm909_vm4 = vweird.f32 %v2293_v60 }
  0xe3   : > { %v2297_v17 = vpop.eup %2296  ;;  %v1371_v19 = vmul.f32 %v2291_v55, %v1370_v61  ;;  %vm2911_vm5 = vcmp.eq.f32.partialorder %v1392_v56, 8.507059e+37  ;;  %v920_v28 = vsub.f32 1.0, %v919_v20  ;;  %v1395_v29 = vor.u32 1.1754944e-38, %v1394_v11  ;;  %vm910_vm8 = vmor %vm908_vm13, %vm909_vm4  ;;  %v468_v11 = vpop.f32.mrf.mxu2 }
  0xe4   : > { %v906_v23 = vmul.f32 %v2293_v60, %v905_v14  ;;  %v1384_v24 = vmul.f32 %v2297_v17, %v2863_v47  ;;  %2302 = vrcp.f32 %v2903_v16  ;;  %vm1403_vm7 = vweird.f32 %v2882_v59 }
  0xe5   : > { %v1372_v18 = vadd.f32 %v2291_v55, %v1371_v19  ;;  %v1407_v21 = vand.u32 2147483647, %v2882_v59  ;;  %v1409_v27 = vand.u32 2147483648, %v2882_v59  ;;  %v921_v36 = vmul.f32 %v2295_v12, %v920_v28  ;;  %v557_v19 = vpop.f32.mrf.mxu3 }
  0xe6   : > { %v907_v30 = vadd.f32 %v2293_v60, %v906_v23  ;;  %v1385_v33 = vsub.f32 1.0, %v1384_v24  ;;  %v2299_v34 = vpop.eup %2298  ;;  %vm924_vm9 = vweird.f32 %v2295_v12  ;;  %vm1389_vm10 = vweird.f32 %v2297_v17 }
  0xe7   : > { %v1376_v35 = vsel %vm1375_vm6, %v2291_v55, %v1372_v18  ;;  %v2301_v37 = vpop.eup %2300  ;;  %v1399_v45 = vmul.f32 %v2299_v34, %v2882_v59  ;;  %v922_v48 = vadd.f32 %v2295_v12, %v921_v36  ;;  %v2165_v32 = vmul.f32 -1.442695, %v2869_v52  ;;  %vm925_vm11 = vmor %vm923_vm0, %vm924_vm9  ;;  %v517_v55 = vpop.f32.mrf.mxu1 }
  0xe8   : > { %v1381_v25 = vsel %vm2886_vm14, %v1380_v1, %v1376_v35  ;;  %v911_v7 = vsel %vm910_vm8, %v2293_v60, %v907_v30  ;;  %v1386_v44 = vmul.f32 %v2297_v17, %v1385_v33  ;;  %vm1404_vm12 = vweird.f32 %v2299_v34  ;;  %vm1390_vm13 = vmor %vm1388_vm2, %vm1389_vm10  ;;  %v430_v18 = vpop.f32.mrf.mxu0 }
  0xe9   : > { %v1838_v9 = vmul.f32 %v1381_v25, %v2711_v39  ;;  %v916_v46 = vsel %vm2893_vm15, %v915_v8, %v911_v7  ;;  %v1400_v50 = vsub.f32 1.0, %v1399_v45  ;;  %v2166_v53 = vmul.f32 -1.442695, %v2874_v38  ;;  %vm1405_vm15 = vmor %vm1403_vm7, %vm1404_vm12 }
  0xea   : > { %v1387_v49 = vadd.f32 %v2297_v17, %v1386_v44  ;;  %v2935_v58 = vpop.eup %2302  ;;  %v1807_v39 = vmul.f32 %v916_v46, %v2714_v40  ;;  %v926_v60 = vsel %vm925_vm11, %v2295_v12, %v922_v48  ;;  %v2941_v62 = vadd.f32 1.0, %v2301_v37 }
  0xeb   : > { %v1884_v43 = vpack.c.bf16 %v1838_v9, %v1837_v10  ;;  %v931_v41 = vsel %vm2906_vm3, %v930_v31, %v926_v60  ;;  %v1401_v1 = vmul.f32 %v2299_v34, %v1400_v50  ;;  %v934_v2 = vmul.f32 %v2935_v58, %v2903_v16 }
  0xec   : > { %v1391_v63 = vsel %vm1390_vm13, %v2297_v17, %v1387_v49  ;;  %v1808_v13 = vmul.f32 %v931_v41, %v2729_v51  ;;  %vm2951_vm14 = vcmp.eq.f32.partialorder %v1407_v21, 8.507059e+37  ;;  %2304 = vrcp.f32 %v2941_v62 }
  0xed   : > { %1916 = vst [vmem:[%s2786_s9 + $0x88] sm:$0xff] %v1884_v43  ;;  %v1396_v40 = vsel %vm2911_vm5, %v1395_v29, %v1391_v63  ;;  %v1402_v47 = vadd.f32 %v2299_v34, %v1401_v1  ;;  %v1410_v6 = vor.u32 1.1754944e-38, %v1409_v27  ;;  %v935_v8 = vsub.f32 1.0, %v934_v2 }
  0xee   : > { %v942_v56 = vand.u32 2147483647, %v2903_v16  ;;  %v1869_v10 = vpack.c.bf16 %v1808_v13, %v1807_v39  ;;  %v1839_v61 = vmul.f32 %v1396_v40, %v2816_v3  ;;  %v944_v51 = vand.u32 2147483648, %v2903_v16 }
  0xef   : > { %2306 = vpow2.f32 %v2165_v32  ;;  %v1406_v12 = vsel %vm1405_vm15, %v2299_v34, %v1402_v47  ;;  %v936_v14 = vmul.f32 %v2935_v58, %v935_v8  ;;  %v2135_v17 = vmul.f32 -1.442695, %v2877_v54 }
  0xf0   : > { %2308 = vpow2.f32 %v2166_v53  ;;  %1901 = vst [vmem:[%s2786_s9 + $0x10] sm:$0xff] %v1869_v10  ;;  %v1411_v20 = vsel %vm2951_vm14, %v1410_v6, %v1406_v12  ;;  %vm939_vm0 = vweird.f32 %v2935_v58  ;;  %v2969_v3 = vadd.f32 %v517_v55, %v2669_v5  ;;  %v470_v53 = vpop.f32.mrf.mxu2 }
  0xf1   : > { %v1840_v59 = vmul.f32 %v1411_v20, %v2824_v0  ;;  %v937_v22 = vadd.f32 %v2935_v58, %v936_v14  ;;  %2310 = vpow2.f32 %v2135_v17  ;;  %v2974_v31 = vadd.f32 %v468_v11, %v2667_v4  ;;  %v559_v17 = vpop.f32.mrf.mxu3  ;;  %v433_v11 = vpop.f32.mrf.mxu0 }
  0xf2   : > { %v2305_v23 = vpop.eup %2304  ;;  %vm938_vm1 = vweird.f32 %v2903_v16  ;;  %v2136_v24 = vmul.f32 -1.442695, %v2969_v3  ;;  %v2979_v26 = vadd.f32 %v557_v19, %v2669_v5  ;;  %vm2985_vm3 = vcmp.eq.f32.partialorder %v942_v56, 8.507059e+37  ;;  %v519_v16 = vpop.f32.mrf.mxu1 }
  0xf3   : > { %v1885_v28 = vpack.c.bf16 %v1840_v59, %v1839_v61  ;;  %vm2981_vm2 = vmor %vm938_vm1, %vm939_vm0  ;;  %v945_v30 = vor.u32 1.1754944e-38, %v944_v51  ;;  %v949_v33 = vmul.f32 %v2305_v23, %v2941_v62  ;;  %v957_v34 = vand.u32 2147483647, %v2941_v62 }
  0xf4   : > { %v941_v27 = vsel %vm2981_vm2, %v2935_v58, %v937_v22  ;;  %2312 = vpow2.f32 %v2136_v24  ;;  %v2167_v35 = vmul.f32 -1.442695, %v2974_v31  ;;  %v959_v25 = vand.u32 2147483648, %v2941_v62 }
  0xf5   : > { %v2307_v21 = vpop.eup %2306  ;;  %1917 = vst [vmem:[%s2786_s9 + $0x90] sm:$0xff] %v1885_v28  ;;  %v950_v37 = vsub.f32 1.0, %v949_v33  ;;  %v3000_v44 = vadd.f32 %v430_v18, %v2667_v4  ;;  %v2168_v9 = vmul.f32 -1.442695, %v2979_v26  ;;  %v3006_v46 = vadd.f32 %v519_v16, %v2669_v5 }
  0xf6   : > { %v2309_v36 = vpop.eup %2308  ;;  %v2997_v7 = vadd.f32 1.0, %v2307_v21  ;;  %2314 = vpow2.f32 %v2167_v35  ;;  %v946_v32 = vsel %vm2985_vm3, %v945_v30, %v941_v27  ;;  %vm954_vm4 = vweird.f32 %v2305_v23 }
  0xf7   : > { %v3002_v45 = vadd.f32 1.0, %v2309_v36  ;;  %v2311_v48 = vpop.eup %2310  ;;  %v951_v49 = vmul.f32 %v2305_v23, %v950_v37  ;;  %vm953_vm5 = vweird.f32 %v2941_v62  ;;  %vm3012_vm6 = vcmp.eq.f32.partialorder %v957_v34, 8.507059e+37 }
  0xf8   : > { %2316 = vrcp.f32 %v2997_v7  ;;  %v960_v58 = vor.u32 1.1754944e-38, %v959_v25  ;;  %v3017_v43 = vadd.f32 1.0, %v2311_v48  ;;  %v2137_v39 = vmul.f32 -1.442695, %v3000_v44  ;;  %vm955_vm7 = vmor %vm953_vm5, %vm954_vm4 }
  0xf9   : > { %2318 = vrcp.f32 %v3002_v45  ;;  %v952_v55 = vadd.f32 %v2305_v23, %v951_v49  ;;  %v1809_v41 = vmul.f32 %v946_v32, %v2827_v57  ;;  %v1422_v63 = vand.u32 2147483647, %v2997_v7 }
  0xfa   : > { %v2313_v60 = vpop.eup %2312  ;;  %v1424_v62 = vand.u32 2147483648, %v2997_v7  ;;  %2320 = vpow2.f32 %v2168_v9  ;;  %v2138_v2 = vmul.f32 -1.442695, %v3006_v46  ;;  %v3026_v13 = vadd.f32 %v470_v53, %v2667_v4 }
  0xfb   : > { %v956_v1 = vsel %vm955_vm7, %v2305_v23, %v952_v55  ;;  %2322 = vrcp.f32 %v3017_v43  ;;  %vm1418_vm8 = vweird.f32 %v2997_v7  ;;  %v1437_v57 = vand.u32 2147483647, %v3002_v45 }
  0xfc   : > { %v2315_v40 = vpop.eup %2314  ;;  %v961_v15 = vsel %vm3012_vm6, %v960_v58, %v956_v1  ;;  %v1439_v47 = vand.u32 2147483648, %v3002_v45  ;;  %v3033_v6 = vadd.f32 1.0, %v2313_v60  ;;  %vm1433_vm9 = vweird.f32 %v3002_v45 }
  0xfd   : > { %v1810_v56 = vmul.f32 %v961_v15, %v2857_v42  ;;  %v3037_v10 = vadd.f32 1.0, %v2315_v40  ;;  %2324 = vpow2.f32 %v2137_v39  ;;  %vm3040_vm10 = vcmp.eq.f32.partialorder %v1422_v63, 8.507059e+37 }
  0xfe   : > { %v2317_v8 = vpop.eup %2316  ;;  %v1425_v12 = vor.u32 1.1754944e-38, %v1424_v62  ;;  %v972_v14 = vand.u32 2147483647, %v3017_v43  ;;  %v974_v20 = vand.u32 2147483648, %v3017_v43  ;;  %2326 = vrcp.f32 %v3033_v6 }
  0xff   : > { %v2319_v61 = vpop.eup %2318  ;;  %v1414_v51 = vmul.f32 %v2317_v8, %v2997_v7  ;;  %v1870_v19 = vpack.c.bf16 %v1810_v56, %v1809_v41  ;;  %vm3048_vm11 = vcmp.eq.f32.partialorder %v1437_v57, 8.507059e+37  ;;  %v1440_v24 = vor.u32 1.1754944e-38, %v1439_v47 }
 0x100   : > { %v1429_v42 = vmul.f32 %v2319_v61, %v3002_v45  ;;  %v2321_v59 = vpop.eup %2320  ;;  %v3053_v18 = vmul.f32 -1.442695, %v3026_v13  ;;  %vm968_vm12 = vweird.f32 %v3017_v43  ;;  %2328 = vrcp.f32 %v3037_v10 }
 0x101   : > { %v1415_v22 = vsub.f32 1.0, %v1414_v51  ;;  %v2323_v28 = vpop.eup %2322  ;;  %1902 = vst [vmem:[%s2786_s9 + $0x18] sm:$0xff] %v1870_v19  ;;  %v3059_v0 = vadd.f32 %v559_v17, %v2669_v5  ;;  %vm1419_vm13 = vweird.f32 %v2317_v8  ;;  %vm3062_vm14 = vcmp.eq.f32.partialorder %v972_v14, 8.507059e+37 }
 0x102   : > { %v1430_v29 = vsub.f32 1.0, %v1429_v42  ;;  %v964_v33 = vmul.f32 %v2323_v28, %v3017_v43  ;;  %vm1434_vm15 = vweird.f32 %v2319_v61  ;;  %v975_v34 = vor.u32 1.1754944e-38, %v974_v20  ;;  %vm1420_vm1 = vmor %vm1418_vm8, %vm1419_vm13 }
 0x103   : > { %v1416_v30 = vmul.f32 %v2317_v8, %v1415_v22  ;;  %v2325_v21 = vpop.eup %2324  ;;  %vm983_vm0 = vweird.f32 %v3033_v6  ;;  %v987_v37 = vand.u32 2147483647, %v3033_v6  ;;  %v3068_v25 = vadd.f32 1.0, %v2321_v59  ;;  %vm1435_vm3 = vmor %vm1433_vm9, %vm1434_vm15 }
 0x104   : > { %v1431_v27 = vmul.f32 %v2319_v61, %v1430_v29  ;;  %v965_v36 = vsub.f32 1.0, %v964_v33  ;;  %v2327_v9 = vpop.eup %2326  ;;  %vm969_vm2 = vweird.f32 %v2323_v28  ;;  %v989_v32 = vand.u32 2147483648, %v3033_v6 }
 0x105   : > { %v1417_v35 = vadd.f32 %v2317_v8, %v1416_v30  ;;  %2330 = vpow2.f32 %v2138_v2  ;;  %v979_v53 = vmul.f32 %v2327_v9, %v3033_v6  ;;  %v3076_v55 = vadd.f32 1.0, %v2325_v21  ;;  %vm970_vm4 = vmor %vm968_vm12, %vm969_vm2 }
 0x106   : > { %v1432_v48 = vadd.f32 %v2319_v61, %v1431_v27  ;;  %v966_v50 = vmul.f32 %v2323_v28, %v965_v36  ;;  %v2329_v58 = vpop.eup %2328  ;;  %v1452_v60 = vand.u32 2147483647, %v3037_v10  ;;  %2332 = vrcp.f32 %v3068_v25 }
 0x107   : > { %v1421_v49 = vsel %vm1420_vm1, %v2317_v8, %v1417_v35  ;;  %v980_v62 = vsub.f32 1.0, %v979_v53  ;;  %vm3089_vm5 = vcmp.eq.f32.partialorder %v987_v37, 8.507059e+37  ;;  %v1444_v40 = vmul.f32 %v2329_v58, %v3037_v10  ;;  %v473_v37 = vpop.f32.mrf.mxu2 }
 0x108   : > { %v1426_v39 = vsel %vm3040_vm10, %v1425_v12, %v1421_v49  ;;  %v1436_v7 = vsel %vm1435_vm3, %v2319_v61, %v1432_v48  ;;  %v967_v63 = vadd.f32 %v2323_v28, %v966_v50  ;;  %vm1448_vm6 = vweird.f32 %v3037_v10 }
 0x109   : > { %v1841_v41 = vmul.f32 %v1426_v39, %v2869_v52  ;;  %v1441_v45 = vsel %vm3048_vm11, %v1440_v24, %v1436_v7  ;;  %v981_v15 = vmul.f32 %v2327_v9, %v980_v62  ;;  %vm984_vm7 = vweird.f32 %v2327_v9  ;;  %v562_v7 = vpop.f32.mrf.mxu3 }
 0x10a   : > { %v1842_v1 = vmul.f32 %v1441_v45, %v2874_v38  ;;  %v971_v52 = vsel %vm970_vm4, %v2323_v28, %v967_v63  ;;  %2334 = vrcp.f32 %v3076_v55  ;;  %v1445_v47 = vsub.f32 1.0, %v1444_v40  ;;  %vm985_vm10 = vmor %vm983_vm0, %vm984_vm7 }
 0x10b   : > { %v2331_v57 = vpop.eup %2330  ;;  %v976_v43 = vsel %vm3062_vm14, %v975_v34, %v971_v52  ;;  %v1454_v8 = vand.u32 2147483648, %v3037_v10  ;;  %v982_v56 = vadd.f32 %v2327_v9, %v981_v15  ;;  %v990_v61 = vor.u32 1.1754944e-38, %v989_v32 }
 0x10c   : > { %v1886_v38 = vpack.c.bf16 %v1842_v1, %v1841_v41  ;;  %vm1449_vm8 = vweird.f32 %v2329_v58  ;;  %vm3099_vm9 = vcmp.eq.f32.partialorder %v1452_v60, 8.507059e+37  ;;  %v2333_v12 = vpop.eup %2332  ;;  %v1446_v14 = vmul.f32 %v2329_v58, %v1445_v47  ;;  %v435_v1 = vpop.f32.mrf.mxu0 }
 0x10d   : > { %v1467_v17 = vand.u32 2147483647, %v3068_v25  ;;  %v1469_v19 = vand.u32 2147483648, %v3068_v25  ;;  %v3108_v42 = vadd.f32 1.0, %v2331_v57  ;;  %v1811_v20 = vmul.f32 %v976_v43, %v2877_v54  ;;  %vm1450_vm11 = vmor %vm1448_vm6, %vm1449_vm8 }
 0x10e   : > { %1918 = vst [vmem:[%s2786_s9 + $0x98] sm:$0xff] %v1886_v38  ;;  %v986_v59 = vsel %vm985_vm10, %v2327_v9, %v982_v56  ;;  %v1459_v22 = vmul.f32 %v2333_v12, %v3068_v25  ;;  %2336 = vpow2.f32 %v3053_v18  ;;  %v1447_v24 = vadd.f32 %v2329_v58, %v1446_v14 }
 0x10f   : > { %v991_v23 = vsel %vm3089_vm5, %v990_v61, %v986_v59  ;;  %v1455_v6 = vor.u32 1.1754944e-38, %v1454_v8  ;;  %v2170_v28 = vmul.f32 -1.442695, %v3059_v0  ;;  %vm1463_vm12 = vweird.f32 %v3068_v25 }
 0x110   : > { %v3116_v29 = vpop.eup %2334  ;;  %v1812_v30 = vmul.f32 %v991_v23, %v2969_v3  ;;  %v1460_v54 = vsub.f32 1.0, %v1459_v22  ;;  %2338 = vrcp.f32 %v3108_v42  ;;  %v1451_v18 = vsel %vm1450_vm11, %v2329_v58, %v1447_v24  ;;  %v522_v3 = vpop.f32.mrf.mxu1 }
 0x111   : > { %vm3124_vm13 = vcmp.eq.f32.partialorder %v1467_v17, 8.507059e+37  ;;  %v1470_v16 = vor.u32 1.1754944e-38, %v1469_v19  ;;  %v994_v21 = vmul.f32 %v3116_v29, %v3076_v55  ;;  %vm1464_vm14 = vweird.f32 %v2333_v12  ;;  %v475_v23 = vpop.f32.mrf.mxu2 }
 0x112   : > { %v1871_v27 = vpack.c.bf16 %v1812_v30, %v1811_v20  ;;  %v1461_v34 = vmul.f32 %v2333_v12, %v1460_v54  ;;  %vm998_vm15 = vweird.f32 %v3076_v55  ;;  %v1456_v10 = vsel %vm3099_vm9, %v1455_v6, %v1451_v18  ;;  %vm1465_vm0 = vmor %vm1463_vm12, %vm1464_vm14 }
 0x113   : > { %v995_v35 = vsub.f32 1.0, %v994_v21  ;;  %v1002_v36 = vand.u32 2147483647, %v3076_v55  ;;  %2340 = vpow2.f32 %v2170_v28  ;;  %v1004_v32 = vand.u32 2147483648, %v3076_v55 }
 0x114   : > { %v2337_v9 = vpop.eup %2336  ;;  %1903 = vst [vmem:[%s2786_s9 + $0x20] sm:$0xff] %v1871_v27  ;;  %v1462_v48 = vadd.f32 %v2333_v12, %v1461_v34  ;;  %v3137_v49 = vadd.f32 %v433_v11, %v2667_v4  ;;  %v3140_v50 = vadd.f32 %v522_v3, %v2669_v5  ;;  %vm999_vm1 = vweird.f32 %v3116_v29 }
 0x115   : > { %v996_v53 = vmul.f32 %v3116_v29, %v995_v35  ;;  %v1017_v58 = vand.u32 2147483647, %v3108_v42  ;;  %v3147_v39 = vadd.f32 1.0, %v2337_v9  ;;  %v1843_v41 = vmul.f32 %v1456_v10, %v2974_v31  ;;  %vm3162_vm2 = vmor %vm998_vm15, %vm999_vm1 }
 0x116   : > { %v2339_v60 = vpop.eup %2338  ;;  %v1466_v45 = vsel %vm1465_vm0, %v2333_v12, %v1462_v48  ;;  %v1019_v63 = vand.u32 2147483648, %v3108_v42  ;;  %v2139_v62 = vmul.f32 -1.442695, %v3137_v49  ;;  %v2140_v52 = vmul.f32 -1.442695, %v3140_v50 }
 0x117   : > { %v1471_v25 = vsel %vm3124_vm13, %v1470_v16, %v1466_v45  ;;  %v997_v2 = vadd.f32 %v3116_v29, %v996_v53  ;;  %v1009_v40 = vmul.f32 %v2339_v60, %v3108_v42  ;;  %2342 = vrcp.f32 %v3147_v39 }
 0x118   : > { %v1844_v15 = vmul.f32 %v1471_v25, %v2979_v26  ;;  %v3168_v57 = vadd.f32 %v473_v37, %v2667_v4  ;;  %v3171_v38 = vadd.f32 %v562_v7, %v2669_v5  ;;  %2344 = vpow2.f32 %v2139_v62  ;;  %v524_v11 = vpop.f32.mrf.mxu1  ;;  %v564_v25 = vpop.f32.mrf.mxu3 }
 0x119   : > { %v2341_v43 = vpop.eup %2340  ;;  %v1001_v26 = vsel %vm3162_vm2, %v3116_v29, %v997_v2  ;;  %v1010_v47 = vsub.f32 1.0, %v1009_v40  ;;  %v3177_v55 = vadd.f32 %v435_v1, %v2667_v4  ;;  %vm1003_vm3 = vcmp.eq.f32.partialorder %v1002_v36, 8.507059e+37 }
 0x11a   : > { %v1887_v8 = vpack.c.bf16 %v1844_v15, %v1843_v41  ;;  %v1005_v56 = vor.u32 1.1754944e-38, %v1004_v32  ;;  %v3179_v61 = vadd.f32 1.0, %v2341_v43  ;;  %vm1013_vm4 = vweird.f32 %v3108_v42 }
 0x11b   : > { %v1011_v51 = vmul.f32 %v2339_v60, %v1010_v47  ;;  %vm1014_vm5 = vweird.f32 %v2339_v60  ;;  %2346 = vpow2.f32 %v2140_v52  ;;  %vm3183_vm6 = vcmp.eq.f32.partialorder %v1017_v58, 8.507059e+37 }
 0x11c   : > { %1919 = vst [vmem:[%s2786_s9 + $0xa0] sm:$0xff] %v1887_v8  ;;  %v1006_v12 = vsel %vm1003_vm3, %v1005_v56, %v1001_v26  ;;  %v1020_v17 = vor.u32 1.1754944e-38, %v1019_v63  ;;  %2348 = vrcp.f32 %v3179_v61  ;;  %v2171_v20 = vmul.f32 -1.442695, %v3168_v57  ;;  %vm1015_vm7 = vmor %vm1013_vm4, %vm1014_vm5 }
 0x11d   : > { %v1012_v19 = vadd.f32 %v2339_v60, %v1011_v51  ;;  %v2172_v59 = vmul.f32 -1.442695, %v3171_v38  ;;  %v2141_v22 = vmul.f32 -1.442695, %v3177_v55  ;;  %v2343_v24 = vpop.eup %2342  ;;  %vm1478_vm8 = vweird.f32 %v3147_v39 }
 0x11e   : > { %v1482_v6 = vand.u32 2147483647, %v3147_v39  ;;  %v1484_v28 = vand.u32 2147483648, %v3147_v39  ;;  %v3197_v29 = vadd.f32 %v524_v11, %v2669_v5  ;;  %v2345_v30 = vpop.eup %2344  ;;  %v1813_v54 = vmul.f32 %v1006_v12, %v3000_v44 }
 0x11f   : > { %v1016_v18 = vsel %vm1015_vm7, %v2339_v60, %v1012_v19  ;;  %v1474_v33 = vmul.f32 %v2343_v24, %v3147_v39  ;;  %2350 = vpow2.f32 %v2171_v20  ;;  %v3203_v16 = vadd.f32 1.0, %v2345_v30 }
 0x120   : > { %v1021_v42 = vsel %vm3183_vm6, %v1020_v17, %v1016_v18  ;;  %2352 = vpow2.f32 %v2172_v59  ;;  %v3206_v21 = vadd.f32 %v475_v23, %v2667_v4  ;;  %v2142_v44 = vmul.f32 -1.442695, %v3197_v29 }
 0x121   : > { %v2347_v3 = vpop.eup %2346  ;;  %v1814_v27 = vmul.f32 %v1021_v42, %v3006_v46  ;;  %v1475_v34 = vsub.f32 1.0, %v1474_v33  ;;  %2354 = vpow2.f32 %v2141_v22  ;;  %vm3210_vm9 = vcmp.eq.f32.partialorder %v1482_v6, 8.507059e+37 }
 0x122   : > { %v2349_v10 = vpop.eup %2348  ;;  %v1485_v36 = vor.u32 1.1754944e-38, %v1484_v28  ;;  %v1497_v37 = vand.u32 2147483647, %v3179_v61  ;;  %2356 = vrcp.f32 %v3203_v16  ;;  %vm1479_vm10 = vweird.f32 %v2343_v24 }
 0x123   : > { %v1872_v9 = vpack.c.bf16 %v1814_v27, %v1813_v54  ;;  %v1476_v48 = vmul.f32 %v2343_v24, %v1475_v34  ;;  %v1489_v46 = vmul.f32 %v2349_v10, %v3179_v61  ;;  %v1499_v32 = vand.u32 2147483648, %v3179_v61  ;;  %vm1480_vm11 = vmor %vm1478_vm8, %vm1479_vm10 }
 0x124   : > { %v1034_v53 = vand.u32 2147483648, %v3203_v16  ;;  %v3219_v58 = vadd.f32 1.0, %v2347_v3  ;;  %v2173_v7 = vmul.f32 -1.442695, %v3206_v21  ;;  %v1032_v63 = vand.u32 2147483647, %v3203_v16 }
 0x125   : > { %v2351_v60 = vpop.eup %2350  ;;  %1904 = vst [vmem:[%s2786_s9 + $0x28] sm:$0xff] %v1872_v9  ;;  %v1477_v41 = vadd.f32 %v2343_v24, %v1476_v48  ;;  %v1490_v45 = vsub.f32 1.0, %v1489_v46  ;;  %2358 = vpow2.f32 %v2142_v44  ;;  %vm1493_vm12 = vweird.f32 %v3179_v61 }
 0x126   : > { %v2353_v62 = vpop.eup %2352  ;;  %vm1494_vm13 = vweird.f32 %v2349_v10  ;;  %vm3227_vm14 = vcmp.eq.f32.partialorder %v1497_v37, 8.507059e+37  ;;  %2360 = vrcp.f32 %v3219_v58  ;;  %v3232_v15 = vadd.f32 1.0, %v2351_v60 }
 0x127   : > { %v2355_v2 = vpop.eup %2354  ;;  %v1481_v40 = vsel %vm1480_vm11, %v2343_v24, %v1477_v41  ;;  %v1491_v52 = vmul.f32 %v2349_v10, %v1490_v45  ;;  %v3234_v31 = vadd.f32 1.0, %v2353_v62  ;;  %v1500_v26 = vor.u32 1.1754944e-38, %v1499_v32  ;;  %vm1495_vm1 = vmor %vm1493_vm12, %vm1494_vm13  ;;  %v438_v62 = vpop.f32.mrf.mxu0 }
 0x128   : > { %v2357_v43 = vpop.eup %2356  ;;  %v1486_v39 = vsel %vm3210_vm9, %v1485_v36, %v1481_v40  ;;  %vm1028_vm15 = vweird.f32 %v3203_v16  ;;  %v1035_v47 = vor.u32 1.1754944e-38, %v1034_v53  ;;  %vm3240_vm0 = vcmp.eq.f32.partialorder %v1032_v63, 8.507059e+37 }
 0x129   : > { %v1492_v8 = vadd.f32 %v2349_v10, %v1491_v52  ;;  %v1024_v56 = vmul.f32 %v2357_v43, %v3203_v16  ;;  %2362 = vpow2.f32 %v2173_v7  ;;  %v3245_v11 = vadd.f32 %v564_v25, %v2669_v5 }
 0x12a   : > { %v1047_v12 = vand.u32 2147483647, %v3219_v58  ;;  %v1049_v14 = vand.u32 2147483648, %v3219_v58  ;;  %2364 = vrcp.f32 %v3232_v15  ;;  %v3253_v17 = vadd.f32 1.0, %v2355_v2 }
 0x12b   : > { %v2359_v19 = vpop.eup %2358  ;;  %v1845_v20 = vmul.f32 %v1486_v39, %v3026_v13  ;;  %v1496_v59 = vsel %vm1495_vm1, %v2349_v10, %v1492_v8  ;;  %v1025_v22 = vsub.f32 1.0, %v1024_v56  ;;  %2366 = vrcp.f32 %v3234_v31  ;;  %v527_v8 = vpop.f32.mrf.mxu1 }
 0x12c   : > { %v2361_v23 = vpop.eup %2360  ;;  %v1501_v61 = vsel %vm3227_vm14, %v1500_v26, %v1496_v59  ;;  %vm1029_vm2 = vweird.f32 %v2357_v43  ;;  %vm1043_vm3 = vweird.f32 %v3219_v58  ;;  %v1514_v24 = vand.u32 2147483648, %v3232_v15 }
 0x12d   : > { %v1846_v6 = vmul.f32 %v1501_v61, %v3059_v0  ;;  %v1026_v28 = vmul.f32 %v2357_v43, %v1025_v22  ;;  %v1039_v30 = vmul.f32 %v2361_v23, %v3219_v58  ;;  %v1512_v13 = vand.u32 2147483647, %v3232_v15  ;;  %vm1030_vm5 = vmor %vm1028_vm15, %vm1029_vm2 }
 0x12e   : > { %vm3264_vm4 = vcmp.eq.f32.partialorder %v1047_v12, 8.507059e+37  ;;  %v1050_v18 = vor.u32 1.1754944e-38, %v1049_v14  ;;  %v1527_v33 = vand.u32 2147483647, %v3234_v31  ;;  %2368 = vrcp.f32 %v3253_v17 }
 0x12f   : > { %v2363_v42 = vpop.eup %2362  ;;  %v1888_v3 = vpack.c.bf16 %v1846_v6, %v1845_v20  ;;  %v1027_v27 = vadd.f32 %v2357_v43, %v1026_v28  ;;  %v1040_v34 = vsub.f32 1.0, %v1039_v30  ;;  %v1529_v0 = vand.u32 2147483648, %v3234_v31 }
 0x130   : > { %v2365_v44 = vpop.eup %2364  ;;  %vm1508_vm6 = vweird.f32 %v3232_v15  ;;  %v1515_v10 = vor.u32 1.1754944e-38, %v1514_v24  ;;  %vm1523_vm7 = vweird.f32 %v3234_v31  ;;  %v3276_v35 = vadd.f32 1.0, %v2359_v19 }
 0x131   : > { %v2367_v36 = vpop.eup %2366  ;;  %1920 = vst [vmem:[%s2786_s9 + $0xa8] sm:$0xff] %v1888_v3  ;;  %v1031_v37 = vsel %vm1030_vm5, %v2357_v43, %v1027_v27  ;;  %v1041_v9 = vmul.f32 %v2361_v23, %v1040_v34  ;;  %vm1044_vm8 = vweird.f32 %v2361_v23  ;;  %v1504_v48 = vmul.f32 %v2365_v44, %v3232_v15 }
 0x132   : > { %vm3280_vm9 = vcmp.eq.f32.partialorder %v1512_v13, 8.507059e+37  ;;  %v1036_v16 = vsel %vm3240_vm0, %v1035_v47, %v1031_v37  ;;  %v1519_v32 = vmul.f32 %v2367_v36, %v3234_v31  ;;  %vm3287_vm10 = vcmp.eq.f32.partialorder %v1527_v33, 8.507059e+37  ;;  %vm1045_vm12 = vmor %vm1043_vm3, %vm1044_vm8 }
 0x133   : > { %v1062_v7 = vand.u32 2147483647, %v3253_v17  ;;  %v1042_v60 = vadd.f32 %v2361_v23, %v1041_v9  ;;  %v1505_v41 = vsub.f32 1.0, %v1504_v48  ;;  %v1530_v45 = vor.u32 1.1754944e-38, %v1529_v0 }
 0x134   : > { %vm1058_vm11 = vweird.f32 %v3253_v17  ;;  %v3293_v63 = vadd.f32 1.0, %v2363_v42  ;;  %v2369_v1 = vpop.eup %2368  ;;  %vm1509_vm13 = vweird.f32 %v2365_v44  ;;  %v1520_v25 = vsub.f32 1.0, %v1519_v32 }
 0x135   : > { %v1064_v2 = vand.u32 2147483648, %v3253_v17  ;;  %2370 = vrcp.f32 %v3276_v35  ;;  %v1815_v40 = vmul.f32 %v1036_v16, %v3137_v49  ;;  %v1046_v52 = vsel %vm1045_vm12, %v2361_v23, %v1042_v60  ;;  %vm1510_vm15 = vmor %vm1508_vm6, %vm1509_vm13  ;;  %v478_v23 = vpop.f32.mrf.mxu2  ;;  %v529_v60 = vpop.f32.mrf.mxu1 }
 0x136   : > { %v1506_v43 = vmul.f32 %v2365_v44, %v1505_v41  ;;  %v1054_v39 = vmul.f32 %v2369_v1, %v3253_v17  ;;  %v1051_v26 = vsel %vm3264_vm4, %v1050_v18, %v1046_v52  ;;  %v1521_v47 = vmul.f32 %v2367_v36, %v1520_v25 }
 0x137   : > { %vm1524_vm14 = vweird.f32 %v2367_v36  ;;  %v1077_v58 = vand.u32 2147483647, %v3276_v35  ;;  %v1816_v56 = vmul.f32 %v1051_v26, %v3140_v50  ;;  %2372 = vrcp.f32 %v3293_v63 }
 0x138   : > { %v1507_v51 = vadd.f32 %v2365_v44, %v1506_v43  ;;  %v1055_v12 = vsub.f32 1.0, %v1054_v39  ;;  %v1522_v49 = vadd.f32 %v2367_v36, %v1521_v47  ;;  %vm3309_vm0 = vcmp.eq.f32.partialorder %v1062_v7, 8.507059e+37  ;;  %vm1525_vm1 = vmor %vm1523_vm7, %vm1524_vm14 }
 0x139   : > { %v1065_v19 = vor.u32 1.1754944e-38, %v1064_v2  ;;  %v1079_v20 = vand.u32 2147483648, %v3276_v35  ;;  %v1873_v59 = vpack.c.bf16 %v1816_v56, %v1815_v40  ;;  %vm1059_vm2 = vweird.f32 %v2369_v1 }
 0x13a   : > { %v1511_v22 = vsel %vm1510_vm15, %v2365_v44, %v1507_v51  ;;  %v1056_v50 = vmul.f32 %v2369_v1, %v1055_v12  ;;  %v1526_v24 = vsel %vm1525_vm1, %v2367_v36, %v1522_v49  ;;  %vm1073_vm3 = vweird.f32 %v3276_v35  ;;  %vm1060_vm5 = vmor %vm1058_vm11, %vm1059_vm2  ;;  %v567_v44 = vpop.f32.mrf.mxu3 }
 0x13b   : > { %v2371_v61 = vpop.eup %2370  ;;  %v1516_v15 = vsel %vm3280_vm9, %v1515_v10, %v1511_v22  ;;  %v2174_v6 = vmul.f32 -1.442695, %v3245_v11  ;;  %1905 = vst [vmem:[%s2786_s9 + $0x30] sm:$0xff] %v1873_v59  ;;  %v1531_v30 = vsel %vm3287_vm10, %v1530_v45, %v1526_v24  ;;  %vm3325_vm4 = vcmp.eq.f32.partialorder %v1077_v58, 8.507059e+37  ;;  %v440_v10 = vpop.f32.mrf.mxu0 }
 0x13c   : > { %v1847_v28 = vmul.f32 %v1516_v15, %v3168_v57  ;;  %v1057_v31 = vadd.f32 %v2369_v1, %v1056_v50  ;;  %v1069_v13 = vmul.f32 %v2371_v61, %v3276_v35  ;;  %v1848_v18 = vmul.f32 %v1531_v30, %v3171_v38 }
 0x13d   : > { %v1080_v33 = vor.u32 1.1754944e-38, %v1079_v20  ;;  %v1542_v42 = vand.u32 2147483647, %v3293_v63  ;;  %2374 = vpow2.f32 %v2174_v6  ;;  %v2373_v57 = vpop.eup %2372  ;;  %v3334_v34 = vadd.f32 %v438_v62, %v2667_v4  ;;  %v480_v39 = vpop.f32.mrf.mxu2 }
 0x13e   : > { %v1061_v3 = vsel %vm1060_vm5, %v2369_v1, %v1057_v31  ;;  %v1070_v27 = vsub.f32 1.0, %v1069_v13  ;;  %v3337_v0 = vadd.f32 %v527_v8, %v2669_v5  ;;  %v1889_v38 = vpack.c.bf16 %v1848_v18, %v1847_v28 }
 0x13f   : > { %v1066_v17 = vsel %vm3309_vm0, %v1065_v19, %v1061_v3  ;;  %v1534_v36 = vmul.f32 %v2373_v57, %v3293_v63  ;;  %v1544_v37 = vand.u32 2147483648, %v3293_v63  ;;  %vm1074_vm6 = vweird.f32 %v2371_v61 }
 0x140   : > { %v1071_v9 = vmul.f32 %v2371_v61, %v1070_v27  ;;  %v2143_v48 = vmul.f32 -1.442695, %v3334_v34  ;;  %v2144_v46 = vmul.f32 -1.442695, %v3337_v0  ;;  %1921 = vst [vmem:[%s2786_s9 + $0xb0] sm:$0xff] %v1889_v38  ;;  %v3347_v32 = vadd.f32 %v478_v23, %v2667_v4  ;;  %vm1075_vm8 = vmor %vm1073_vm3, %vm1074_vm6 }
 0x141   : > { %v1535_v16 = vsub.f32 1.0, %v1534_v36  ;;  %v3350_v53 = vadd.f32 %v567_v44, %v2669_v5  ;;  %v3353_v7 = vadd.f32 %v440_v10, %v2667_v4  ;;  %v1817_v41 = vmul.f32 %v1066_v17, %v3177_v55 }
 0x142   : > { %v1072_v45 = vadd.f32 %v2371_v61, %v1071_v9  ;;  %vm1539_vm7 = vweird.f32 %v2373_v57  ;;  %2376 = vpow2.f32 %v2143_v48  ;;  %v2175_v25 = vmul.f32 -1.442695, %v3347_v32  ;;  %v569_v49 = vpop.f32.mrf.mxu3 }
 0x143   : > { %v2375_v62 = vpop.eup %2374  ;;  %v1536_v1 = vmul.f32 %v2373_v57, %v1535_v16  ;;  %2378 = vpow2.f32 %v2144_v46  ;;  %v2176_v2 = vmul.f32 -1.442695, %v3350_v53  ;;  %v2145_v43 = vmul.f32 -1.442695, %v3353_v7  ;;  %v443_v54 = vpop.f32.mrf.mxu0 }
 0x144   : > { %v1076_v40 = vsel %vm1075_vm8, %v2371_v61, %v1072_v45  ;;  %v3360_v52 = vadd.f32 1.0, %v2375_v62  ;;  %v3364_v55 = vadd.f32 %v529_v60, %v2669_v5  ;;  %vm1538_vm9 = vweird.f32 %v3293_v63 }
 0x145   : > { %v1081_v26 = vsel %vm3325_vm4, %v1080_v33, %v1076_v40  ;;  %v1537_v35 = vadd.f32 %v2373_v57, %v1536_v1  ;;  %2380 = vpow2.f32 %v2175_v25  ;;  %vm1540_vm10 = vmor %vm1538_vm9, %vm1539_vm7  ;;  %v1545_v8 = vor.u32 1.1754944e-38, %v1544_v37 }
 0x146   : > { %v1818_v47 = vmul.f32 %v1081_v26, %v3197_v29  ;;  %2382 = vrcp.f32 %v3360_v52  ;;  %v3373_v56 = vadd.f32 %v480_v39, %v2667_v4  ;;  %vm1543_vm11 = vcmp.eq.f32.partialorder %v1542_v42, 8.507059e+37 }
 0x147   : > { %v1541_v58 = vsel %vm1540_vm10, %v2373_v57, %v1537_v35  ;;  %2384 = vpow2.f32 %v2176_v2  ;;  %v2146_v63 = vmul.f32 -1.442695, %v3364_v55  ;;  %v1557_v19 = vand.u32 2147483647, %v3360_v52 }
 0x148   : > { %v2377_v51 = vpop.eup %2376  ;;  %v1874_v12 = vpack.c.bf16 %v1818_v47, %v1817_v41  ;;  %2386 = vpow2.f32 %v2145_v43  ;;  %v1546_v29 = vsel %vm1543_vm11, %v1545_v8, %v1541_v58  ;;  %v1559_v20 = vand.u32 2147483648, %v3360_v52 }
 0x149   : > { %v2379_v14 = vpop.eup %2378  ;;  %v3378_v59 = vadd.f32 1.0, %v2377_v51  ;;  %v2177_v23 = vmul.f32 -1.442695, %v3373_v56  ;;  %v3386_v61 = vadd.f32 %v569_v49, %v2669_v5  ;;  %v3389_v24 = vmul.f32 %v1546_v29, %v3206_v21 }
 0x14a   : > { %1906 = vst [vmem:[%s2786_s9 + $0x38] sm:$0xff] %v1874_v12  ;;  %v3381_v22 = vadd.f32 1.0, %v2379_v14  ;;  %vm1553_vm12 = vweird.f32 %v3360_v52  ;;  %vm3394_vm13 = vcmp.eq.f32.partialorder %v1557_v19, 8.507059e+37  ;;  %v1560_v31 = vor.u32 1.1754944e-38, %v1559_v20 }
 0x14b   : > { %v2381_v50 = vpop.eup %2380  ;;  %2388 = vrcp.f32 %v3378_v59  ;;  %v1092_v13 = vand.u32 2147483647, %v3378_v59  ;;  %v1094_v21 = vand.u32 2147483648, %v3378_v59  ;;  %v2178_v44 = vmul.f32 -1.442695, %v3386_v61 }
 0x14c   : > { %v2383_v15 = vpop.eup %2382  ;;  %2390 = vrcp.f32 %v3381_v22  ;;  %v1109_v33 = vand.u32 2147483648, %v3381_v22  ;;  %v3401_v42 = vadd.f32 1.0, %v2381_v50  ;;  %v1107_v27 = vand.u32 2147483647, %v3381_v22  ;;  %v445_v50 = vpop.f32.mrf.mxu0 }
 0x14d   : > { %v2385_v6 = vpop.eup %2384  ;;  %v1549_v28 = vmul.f32 %v2383_v15, %v3360_v52  ;;  %2392 = vpow2.f32 %v2146_v63  ;;  %vm1088_vm14 = vweird.f32 %v3378_v59  ;;  %v3412_v38 = vadd.f32 %v443_v54, %v2667_v4 }
 0x14e   : > { %v2387_v18 = vpop.eup %2386  ;;  %v3403_v57 = vadd.f32 1.0, %v2385_v6  ;;  %2394 = vpow2.f32 %v2177_v23  ;;  %vm1554_vm15 = vweird.f32 %v2383_v15  ;;  %vm1103_vm0 = vweird.f32 %v3381_v22 }
 0x14f   : > { %v1550_v3 = vsub.f32 1.0, %v1549_v28  ;;  %2396 = vrcp.f32 %v3401_v42  ;;  %v3409_v10 = vadd.f32 1.0, %v2387_v18  ;;  %vm3417_vm1 = vcmp.eq.f32.partialorder %v1092_v13, 8.507059e+37  ;;  %vm1555_vm3 = vmor %vm1553_vm12, %vm1554_vm15 }
 0x150   : > { %2398 = vrcp.f32 %v3403_v57  ;;  %v1095_v46 = vor.u32 1.1754944e-38, %v1094_v21  ;;  %v1110_v16 = vor.u32 1.1754944e-38, %v1109_v33  ;;  %v1574_v60 = vand.u32 2147483648, %v3401_v42 }
 0x151   : > { %v2389_v17 = vpop.eup %2388  ;;  %v1551_v36 = vmul.f32 %v2383_v15, %v1550_v3  ;;  %vm3423_vm2 = vcmp.eq.f32.partialorder %v1107_v27, 8.507059e+37  ;;  %v1572_v25 = vand.u32 2147483647, %v3401_v42  ;;  %2400 = vpow2.f32 %v2178_v44 }
 0x152   : > { %v2391_v37 = vpop.eup %2390  ;;  %v1084_v9 = vmul.f32 %v2389_v17, %v3378_v59  ;;  %v1587_v40 = vand.u32 2147483647, %v3403_v57  ;;  %2402 = vrcp.f32 %v3409_v10  ;;  %v3434_v43 = vmul.f32 -1.442695, %v3412_v38 }
 0x153   : > { %v2393_v41 = vpop.eup %2392  ;;  %v1552_v45 = vadd.f32 %v2383_v15, %v1551_v36  ;;  %v1099_v62 = vmul.f32 %v2391_v37, %v3381_v22  ;;  %vm1089_vm4 = vweird.f32 %v2389_v17  ;;  %vm1568_vm5 = vweird.f32 %v3401_v42  ;;  %v532_v22 = vpop.f32.mrf.mxu1 }
 0x154   : > { %v1085_v2 = vsub.f32 1.0, %v1084_v9  ;;  %v2395_v39 = vpop.eup %2394  ;;  %v1575_v8 = vor.u32 1.1754944e-38, %v1574_v60  ;;  %vm1583_vm6 = vweird.f32 %v3403_v57  ;;  %v3440_v51 = vadd.f32 1.0, %v2393_v41  ;;  %vm1090_vm10 = vmor %vm1088_vm14, %vm1089_vm4 }
 0x155   : > { %v1556_v26 = vsel %vm1555_vm3, %v2383_v15, %v1552_v45  ;;  %v1100_v35 = vsub.f32 1.0, %v1099_v62  ;;  %v2397_v47 = vpop.eup %2396  ;;  %vm1104_vm7 = vweird.f32 %v2391_v37  ;;  %vm3444_vm8 = vcmp.eq.f32.partialorder %v1572_v25, 8.507059e+37  ;;  %v483_v45 = vpop.f32.mrf.mxu2 }
 0x156   : > { %v1561_v58 = vsel %vm3394_vm13, %v1560_v31, %v1556_v26  ;;  %v1086_v52 = vmul.f32 %v2389_v17, %v1085_v2  ;;  %v2399_v12 = vpop.eup %2398  ;;  %v1564_v14 = vmul.f32 %v2397_v47, %v3401_v42  ;;  %vm3449_vm9 = vcmp.eq.f32.partialorder %v1587_v40, 8.507059e+37  ;;  %vm1105_vm12 = vmor %vm1103_vm0, %vm1104_vm7 }
 0x157   : > { %v1850_v63 = vmul.f32 %v1561_v58, %v3245_v11  ;;  %v1101_v49 = vmul.f32 %v2391_v37, %v1100_v35  ;;  %v1579_v20 = vmul.f32 %v2399_v12, %v3403_v57  ;;  %v1589_v23 = vand.u32 2147483648, %v3403_v57  ;;  %v2401_v15 = vpop.eup %2400 }
 0x158   : > { %v1087_v19 = vadd.f32 %v2389_v17, %v1086_v52  ;;  %v1122_v11 = vand.u32 2147483647, %v3409_v10  ;;  %v1565_v30 = vsub.f32 1.0, %v1564_v14  ;;  %vm1118_vm11 = vweird.f32 %v3409_v10  ;;  %v2403_v13 = vpop.eup %2402 }
 0x159   : > { %v1890_v6 = vpack.c.bf16 %v1850_v63, %v3389_v24  ;;  %v1102_v28 = vadd.f32 %v2391_v37, %v1101_v49  ;;  %v1124_v31 = vand.u32 2147483648, %v3409_v10  ;;  %vm1569_vm13 = vweird.f32 %v2397_v47  ;;  %v572_v49 = vpop.f32.mrf.mxu3 }
 0x15a   : > { %v1091_v54 = vsel %vm1090_vm10, %v2389_v17, %v1087_v19  ;;  %v1580_v18 = vsub.f32 1.0, %v1579_v20  ;;  %2404 = vrcp.f32 %v3440_v51  ;;  %v1566_v21 = vmul.f32 %v2397_v47, %v1565_v30  ;;  %vm1570_vm15 = vmor %vm1568_vm5, %vm1569_vm13 }
 0x15b   : > { %1922 = vst [vmem:[%s2786_s9 + $0xb8] sm:$0xff] %v1890_v6  ;;  %v1096_v59 = vsel %vm3417_vm1, %v1095_v46, %v1091_v54  ;;  %v1106_v24 = vsel %vm1105_vm12, %v2391_v37, %v1102_v28  ;;  %v1114_v33 = vmul.f32 %v2403_v13, %v3409_v10  ;;  %vm1584_vm14 = vweird.f32 %v2399_v12 }
 0x15c   : > { %v1819_v3 = vmul.f32 %v1096_v59, %v3334_v34  ;;  %v1111_v27 = vsel %vm3423_vm2, %v1110_v16, %v1106_v24  ;;  %v1581_v44 = vmul.f32 %v2399_v12, %v1580_v18  ;;  %v1567_v36 = vadd.f32 %v2397_v47, %v1566_v21  ;;  %vm1585_vm1 = vmor %vm1583_vm6, %vm1584_vm14 }
 0x15d   : > { %v1820_v17 = vmul.f32 %v1111_v27, %v3337_v0  ;;  %v1590_v9 = vor.u32 1.1754944e-38, %v1589_v23  ;;  %v1115_v60 = vsub.f32 1.0, %v1114_v33  ;;  %vm1119_vm0 = vweird.f32 %v2403_v13  ;;  %v534_v23 = vpop.f32.mrf.mxu1 }
 0x15e   : > { %v1582_v37 = vadd.f32 %v2399_v12, %v1581_v44  ;;  %v1137_v34 = vand.u32 2147483647, %v3440_v51  ;;  %v3477_v48 = vadd.f32 1.0, %v2395_v39  ;;  %v1571_v16 = vsel %vm1570_vm15, %v2397_v47, %v1567_v36  ;;  %vm1120_vm2 = vmor %vm1118_vm11, %vm1119_vm0 }
 0x15f   : > { %v1875_v46 = vpack.c.bf16 %v1820_v17, %v1819_v3  ;;  %v1116_v0 = vmul.f32 %v2403_v13, %v1115_v60  ;;  %v3481_v41 = vadd.f32 1.0, %v2401_v15  ;;  %v1576_v42 = vsel %vm3444_vm8, %v1575_v8, %v1571_v16 }
 0x160   : > { %v2405_v62 = vpop.eup %2404  ;;  %v1586_v1 = vsel %vm1585_vm1, %v2399_v12, %v1582_v37  ;;  %v1139_v25 = vand.u32 2147483648, %v3440_v51  ;;  %2406 = vrcp.f32 %v3477_v48  ;;  %v1851_v2 = vmul.f32 %v1576_v42, %v3347_v32 }
 0x161   : > { %1907 = vst [vmem:[%s2786_s9 + $0x40] sm:$0xff] %v1875_v46  ;;  %v1591_v57 = vsel %vm3449_vm9, %v1590_v9, %v1586_v1  ;;  %v1117_v40 = vadd.f32 %v2403_v13, %v1116_v0  ;;  %v1129_v39 = vmul.f32 %v2405_v62, %v3440_v51  ;;  %vm1123_vm3 = vcmp.eq.f32.partialorder %v1122_v11, 8.507059e+37 }
 0x162   : > { %v1852_v26 = vmul.f32 %v1591_v57, %v3350_v53  ;;  %v1125_v35 = vor.u32 1.1754944e-38, %v1124_v31  ;;  %vm1133_vm4 = vweird.f32 %v3440_v51  ;;  %v1604_v32 = vand.u32 2147483648, %v3477_v48  ;;  %v485_v51 = vpop.f32.mrf.mxu2 }
 0x163   : > { %v1121_v47 = vsel %vm1120_vm2, %v2403_v13, %v1117_v40  ;;  %v1130_v58 = vsub.f32 1.0, %v1129_v39  ;;  %2408 = vrcp.f32 %v3481_v41  ;;  %vm3499_vm5 = vcmp.eq.f32.partialorder %v1137_v34, 8.507059e+37 }
 0x164   : > { %v1891_v52 = vpack.c.bf16 %v1852_v26, %v1851_v2  ;;  %v1126_v8 = vsel %vm1123_vm3, %v1125_v35, %v1121_v47  ;;  %v1140_v53 = vor.u32 1.1754944e-38, %v1139_v25  ;;  %vm1134_vm6 = vweird.f32 %v2405_v62  ;;  %v574_v2 = vpop.f32.mrf.mxu3 }
 0x165   : > { %v1131_v10 = vmul.f32 %v2405_v62, %v1130_v58  ;;  %vm1598_vm7 = vweird.f32 %v3477_v48  ;;  %v1602_v63 = vand.u32 2147483647, %v3477_v48  ;;  %v1821_v29 = vmul.f32 %v1126_v8, %v3353_v7  ;;  %vm1135_vm8 = vmor %vm1133_vm4, %vm1134_vm6 }
 0x166   : > { %v2407_v14 = vpop.eup %2406  ;;  %1923 = vst [vmem:[%s2786_s9 + $0xc0] sm:$0xff] %v1891_v52  ;;  %2410 = vpow2.f32 %v3434_v43  ;;  %v3509_v19 = vadd.f32 %v532_v22, %v2669_v5  ;;  %v3512_v20 = vadd.f32 %v483_v45, %v2667_v4  ;;  %v1605_v6 = vor.u32 1.1754944e-38, %v1604_v32 }
 0x167   : > { %v1132_v11 = vadd.f32 %v2405_v62, %v1131_v10  ;;  %v1594_v15 = vmul.f32 %v2407_v14, %v3477_v48  ;;  %v1617_v28 = vand.u32 2147483647, %v3481_v41  ;;  %v1619_v7 = vand.u32 2147483648, %v3481_v41 }
 0x168   : > { %v2148_v43 = vmul.f32 -1.442695, %v3509_v19  ;;  %v2179_v30 = vmul.f32 -1.442695, %v3512_v20  ;;  %v3523_v31 = vadd.f32 %v572_v49, %v2669_v5  ;;  %v3526_v59 = vadd.f32 %v445_v50, %v2667_v4 }
 0x169   : > { %v2409_v13 = vpop.eup %2408  ;;  %v1136_v54 = vsel %vm1135_vm8, %v2405_v62, %v1132_v11  ;;  %v1595_v18 = vsub.f32 1.0, %v1594_v15  ;;  %v3529_v24 = vadd.f32 %v534_v23, %v2669_v5  ;;  %vm1599_vm9 = vweird.f32 %v2407_v14 }
 0x16a   : > { %v1141_v21 = vsel %vm3499_vm5, %v1140_v53, %v1136_v54  ;;  %v1609_v33 = vmul.f32 %v2409_v13, %v3481_v41  ;;  %2412 = vpow2.f32 %v2148_v43  ;;  %v2180_v44 = vmul.f32 -1.442695, %v3523_v31  ;;  %vm1600_vm10 = vmor %vm1598_vm7, %vm1599_vm9 }
 0x16b   : > { %v1822_v3 = vmul.f32 %v1141_v21, %v3364_v55  ;;  %v1596_v27 = vmul.f32 %v2407_v14, %v1595_v18  ;;  %2414 = vpow2.f32 %v2179_v30  ;;  %v2149_v36 = vmul.f32 -1.442695, %v3526_v59 }
 0x16c   : > { %v2411_v22 = vpop.eup %2410  ;;  %v1610_v17 = vsub.f32 1.0, %v1609_v33  ;;  %v2150_v9 = vmul.f32 -1.442695, %v3529_v24  ;;  %v3539_v60 = vadd.f32 %v485_v51, %v2667_v4  ;;  %2416 = vpow2.f32 %v2180_v44  ;;  %v448_v51 = vpop.f32.mrf.mxu0 }
 0x16d   : > { %v1876_v37 = vpack.c.bf16 %v1822_v3, %v1821_v29  ;;  %v1597_v34 = vadd.f32 %v2407_v14, %v1596_v27  ;;  %v3541_v46 = vadd.f32 1.0, %v2411_v22  ;;  %vm1614_vm11 = vweird.f32 %v2409_v13 }
 0x16e   : > { %v1611_v55 = vmul.f32 %v2409_v13, %v1610_v17  ;;  %2418 = vpow2.f32 %v2149_v36  ;;  %v2181_v16 = vmul.f32 -1.442695, %v3539_v60  ;;  %vm1603_vm12 = vcmp.eq.f32.partialorder %v1602_v63, 8.507059e+37 }
 0x16f   : > { %1908 = vst [vmem:[%s2786_s9 + $0x48] sm:$0xff] %v1876_v37  ;;  %v1601_v0 = vsel %vm1600_vm10, %v2407_v14, %v1597_v34  ;;  %2420 = vrcp.f32 %v3541_v46  ;;  %vm1613_vm13 = vweird.f32 %v3481_v41  ;;  %vm1618_vm15 = vcmp.eq.f32.partialorder %v1617_v28, 8.507059e+37 }
 0x170   : > { %v2413_v45 = vpop.eup %2412  ;;  %v1606_v62 = vsel %vm1603_vm12, %v1605_v6, %v1601_v0  ;;  %v1612_v42 = vadd.f32 %v2409_v13, %v1611_v55  ;;  %2422 = vpow2.f32 %v2150_v9  ;;  %vm1615_vm14 = vmor %vm1613_vm13, %vm1614_vm11  ;;  %v1620_v48 = vor.u32 1.1754944e-38, %v1619_v7 }
 0x171   : > { %v2415_v1 = vpop.eup %2414  ;;  %v3550_v25 = vadd.f32 1.0, %v2413_v45  ;;  %v1853_v57 = vmul.f32 %v1606_v62, %v3373_v56  ;;  %2424 = vpow2.f32 %v2181_v16  ;;  %v1152_v58 = vand.u32 2147483647, %v3541_v46 }
 0x172   : > { %v1616_v40 = vsel %vm1615_vm14, %v2409_v13, %v1612_v42  ;;  %v3553_v39 = vadd.f32 1.0, %v2415_v1  ;;  %v2417_v26 = vpop.eup %2416  ;;  %v3560_v32 = vadd.f32 %v574_v2, %v2669_v5  ;;  %v1154_v52 = vand.u32 2147483648, %v3541_v46 }
 0x173   : > { %v1621_v35 = vsel %vm1618_vm15, %v1620_v48, %v1616_v40  ;;  %2426 = vrcp.f32 %v3550_v25  ;;  %v3563_v8 = vadd.f32 1.0, %v2417_v26  ;;  %v1167_v63 = vand.u32 2147483647, %v3550_v25 }
 0x174   : > { %v2419_v47 = vpop.eup %2418  ;;  %v1854_v41 = vmul.f32 %v1621_v35, %v3386_v61  ;;  %2428 = vrcp.f32 %v3553_v39  ;;  %v1169_v61 = vand.u32 2147483648, %v3550_v25  ;;  %vm1148_vm0 = vweird.f32 %v3541_v46 }
 0x175   : > { %v2421_v56 = vpop.eup %2420  ;;  %v1632_v49 = vand.u32 2147483647, %v3553_v39  ;;  %v1634_v14 = vand.u32 2147483648, %v3553_v39  ;;  %2430 = vrcp.f32 %v3563_v8  ;;  %vm3573_vm1 = vcmp.eq.f32.partialorder %v1152_v58, 8.507059e+37 }
 0x176   : > { %v2423_v12 = vpop.eup %2422  ;;  %v1892_v53 = vpack.c.bf16 %v1854_v41, %v1853_v57  ;;  %v1144_v10 = vmul.f32 %v2421_v56, %v3541_v46  ;;  %v3577_v11 = vadd.f32 1.0, %v2419_v47  ;;  %v2182_v15 = vmul.f32 -1.442695, %v3560_v32 }
 0x177   : > { %v2425_v29 = vpop.eup %2424  ;;  %v1155_v28 = vor.u32 1.1754944e-38, %v1154_v52  ;;  %vm1163_vm2 = vweird.f32 %v3550_v25  ;;  %vm1628_vm3 = vweird.f32 %v3553_v39  ;;  %v3582_v7 = vadd.f32 1.0, %v2423_v12 }
 0x178   : > { %1924 = vst [vmem:[%s2786_s9 + $0xc8] sm:$0xff] %v1892_v53  ;;  %v1145_v50 = vsub.f32 1.0, %v1144_v10  ;;  %vm1149_vm4 = vweird.f32 %v2421_v56  ;;  %vm3585_vm5 = vcmp.eq.f32.partialorder %v1167_v63, 8.507059e+37  ;;  %v1170_v18 = vor.u32 1.1754944e-38, %v1169_v61 }
 0x179   : > { %v2427_v6 = vpop.eup %2426  ;;  %vm3590_vm6 = vcmp.eq.f32.partialorder %v1632_v49, 8.507059e+37  ;;  %v1635_v3 = vor.u32 1.1754944e-38, %v1634_v14  ;;  %v1647_v27 = vand.u32 2147483647, %v3563_v8  ;;  %2432 = vrcp.f32 %v3577_v11  ;;  %vm1150_vm8 = vmor %vm1148_vm0, %vm1149_vm4 }
 0x17a   : > { %v2429_v43 = vpop.eup %2428  ;;  %v1146_v30 = vmul.f32 %v2421_v56, %v1145_v50  ;;  %v1159_v13 = vmul.f32 %v2427_v6, %v3550_v25  ;;  %vm1643_vm7 = vweird.f32 %v3563_v8  ;;  %v1649_v17 = vand.u32 2147483648, %v3563_v8 }
 0x17b   : > { %v1624_v21 = vmul.f32 %v2429_v43, %v3553_v39  ;;  %2434 = vpow2.f32 %v2182_v15  ;;  %v2431_v36 = vpop.eup %2430  ;;  %v3602_v37 = vadd.f32 1.0, %v2425_v29  ;;  %v3605_v34 = vadd.f32 %v448_v51, %v2667_v4  ;;  %v488_v15 = vpop.f32.mrf.mxu2 }
 0x17c   : > { %v1147_v44 = vadd.f32 %v2421_v56, %v1146_v30  ;;  %v1160_v22 = vsub.f32 1.0, %v1159_v13  ;;  %2436 = vrcp.f32 %v3582_v7  ;;  %vm1164_vm9 = vweird.f32 %v2427_v6  ;;  %v577_v51 = vpop.f32.mrf.mxu3 }
 0x17d   : > { %v1625_v9 = vsub.f32 1.0, %v1624_v21  ;;  %v1639_v0 = vmul.f32 %v2431_v36, %v3563_v8  ;;  %vm1629_vm10 = vweird.f32 %v2429_v43  ;;  %vm3610_vm11 = vcmp.eq.f32.partialorder %v1647_v27, 8.507059e+37  ;;  %vm1165_vm13 = vmor %vm1163_vm2, %vm1164_vm9 }
 0x17e   : > { %v1151_v55 = vsel %vm1150_vm8, %v2421_v56, %v1147_v44  ;;  %v1161_v16 = vmul.f32 %v2427_v6, %v1160_v22  ;;  %v1650_v48 = vor.u32 1.1754944e-38, %v1649_v17  ;;  %vm1178_vm12 = vweird.f32 %v3577_v11  ;;  %vm1630_vm15 = vmor %vm1628_vm3, %vm1629_vm10  ;;  %v537_v56 = vpop.f32.mrf.mxu1  ;;  %v450_v22 = vpop.f32.mrf.mxu0 }
 0x17f   : > { %v1156_v45 = vsel %vm3573_vm1, %v1155_v28, %v1151_v55  ;;  %v1626_v62 = vmul.f32 %v2429_v43, %v1625_v9  ;;  %v1640_v1 = vsub.f32 1.0, %v1639_v0  ;;  %v2433_v2 = vpop.eup %2432  ;;  %vm1644_vm14 = vweird.f32 %v2431_v36 }
 0x180   : > { %v1162_v42 = vadd.f32 %v2427_v6, %v1161_v16  ;;  %v1182_v40 = vand.u32 2147483647, %v3577_v11  ;;  %2438 = vrcp.f32 %v3602_v37  ;;  %v1823_v35 = vmul.f32 %v1156_v45, %v3412_v38  ;;  %vm1645_vm1 = vmor %vm1643_vm7, %vm1644_vm14 }
 0x181   : > { %v1627_v57 = vadd.f32 %v2429_v43, %v1626_v62  ;;  %v2435_v26 = vpop.eup %2434  ;;  %v1641_v41 = vmul.f32 %v2431_v36, %v1640_v1  ;;  %v1174_v58 = vmul.f32 %v2433_v2, %v3577_v11  ;;  %v1184_v53 = vand.u32 2147483648, %v3577_v11 }
 0x182   : > { %v1166_v47 = vsel %vm1165_vm13, %v2427_v6, %v1162_v42  ;;  %v2437_v25 = vpop.eup %2436  ;;  %vm1193_vm0 = vweird.f32 %v3582_v7  ;;  %vm1179_vm2 = vweird.f32 %v2433_v2  ;;  %v1197_v49 = vand.u32 2147483647, %v3582_v7 }
 0x183   : > { %v1171_v52 = vsel %vm3585_vm5, %v1170_v18, %v1166_v47  ;;  %v1631_v12 = vsel %vm1630_vm15, %v2429_v43, %v1627_v57  ;;  %v1642_v39 = vadd.f32 %v2431_v36, %v1641_v41  ;;  %v1175_v63 = vsub.f32 1.0, %v1174_v58  ;;  %vm1180_vm4 = vmor %vm1178_vm12, %vm1179_vm2  ;;  %v490_v58 = vpop.f32.mrf.mxu2 }
 0x184   : > { %v1824_v38 = vmul.f32 %v1171_v52, %v3509_v19  ;;  %v1636_v10 = vsel %vm3590_vm6, %v1635_v3, %v1631_v12  ;;  %v1189_v61 = vmul.f32 %v2437_v25, %v3582_v7  ;;  %v1199_v14 = vand.u32 2147483648, %v3582_v7 }
 0x185   : > { %v1855_v19 = vmul.f32 %v1636_v10, %v3512_v20  ;;  %v1646_v50 = vsel %vm1645_vm1, %v2431_v36, %v1642_v39  ;;  %v1176_v23 = vmul.f32 %v2433_v2, %v1175_v63  ;;  %vm3642_vm3 = vcmp.eq.f32.partialorder %v1182_v40, 8.507059e+37  ;;  %v579_v10 = vpop.f32.mrf.mxu3 }
 0x186   : > { %v1877_v29 = vpack.c.bf16 %v1824_v38, %v1823_v35  ;;  %v3638_v6 = vpop.eup %2438  ;;  %v1651_v8 = vsel %vm3610_vm11, %v1650_v48, %v1646_v50  ;;  %v1190_v43 = vsub.f32 1.0, %v1189_v61  ;;  %v3646_v30 = vadd.f32 1.0, %v2435_v26  ;;  %v539_v45 = vpop.f32.mrf.mxu1 }
 0x187   : > { %v1856_v13 = vmul.f32 %v1651_v8, %v3523_v31  ;;  %v1177_v54 = vadd.f32 %v2433_v2, %v1176_v23  ;;  %v1185_v20 = vor.u32 1.1754944e-38, %v1184_v53  ;;  %v1654_v18 = vmul.f32 %v3638_v6, %v3602_v37 }
 0x188   : > { %1909 = vst [vmem:[%s2786_s9 + $0x50] sm:$0xff] %v1877_v29  ;;  %v1191_v21 = vmul.f32 %v2437_v25, %v1190_v43  ;;  %vm1194_vm5 = vweird.f32 %v2437_v25  ;;  %vm3655_vm6 = vcmp.eq.f32.partialorder %v1197_v49, 8.507059e+37  ;;  %2440 = vrcp.f32 %v3646_v30 }
 0x189   : > { %v1893_v31 = vpack.c.bf16 %v1856_v13, %v1855_v19  ;;  %v1181_v3 = vsel %vm1180_vm4, %v2433_v2, %v1177_v54  ;;  %v1200_v27 = vor.u32 1.1754944e-38, %v1199_v14  ;;  %v1655_v44 = vsub.f32 1.0, %v1654_v18  ;;  %vm1195_vm7 = vmor %vm1193_vm0, %vm1194_vm5  ;;  %v453_v19 = vpop.f32.mrf.mxu0 }
 0x18a   : > { %v1186_v17 = vsel %vm3642_vm3, %v1185_v20, %v1181_v3  ;;  %v1192_v36 = vadd.f32 %v2437_v25, %v1191_v21  ;;  %v1662_v11 = vand.u32 2147483647, %v3602_v37  ;;  %v2151_v9 = vmul.f32 -1.442695, %v3605_v34 }
 0x18b   : > { %1925 = vst [vmem:[%s2786_s9 + $0xd0] sm:$0xff] %v1893_v31  ;;  %v1656_v55 = vmul.f32 %v3638_v6, %v1655_v44  ;;  %vm1659_vm8 = vweird.f32 %v3638_v6  ;;  %v1664_v16 = vand.u32 2147483648, %v3602_v37  ;;  %v3671_v0 = vadd.f32 %v537_v56, %v2669_v5 }
 0x18c   : > { %v1825_v62 = vmul.f32 %v1186_v17, %v3526_v59  ;;  %v1196_v46 = vsel %vm1195_vm7, %v2437_v25, %v1192_v36  ;;  %2442 = vpow2.f32 %v2151_v9  ;;  %v3675_v42 = vadd.f32 %v488_v15, %v2667_v4 }
 0x18d   : > { %v1201_v7 = vsel %vm3655_vm6, %v1200_v27, %v1196_v46  ;;  %v1657_v1 = vadd.f32 %v3638_v6, %v1656_v55  ;;  %v2152_v48 = vmul.f32 -1.442695, %v3671_v0  ;;  %v3682_v2 = vadd.f32 %v577_v51, %v2669_v5 }
 0x18e   : > { %v2441_v57 = vpop.eup %2440  ;;  %v1826_v40 = vmul.f32 %v1201_v7, %v3529_v24  ;;  %vm1658_vm9 = vweird.f32 %v3602_v37  ;;  %v2183_v59 = vmul.f32 -1.442695, %v3675_v42  ;;  %v3688_v26 = vadd.f32 %v450_v22, %v2667_v4  ;;  %v542_v8 = vpop.f32.mrf.mxu1 }
 0x18f   : > { %vm3690_vm10 = vcmp.eq.f32.partialorder %v1662_v11, 8.507059e+37  ;;  %v1669_v47 = vmul.f32 %v2441_v57, %v3646_v30  ;;  %2444 = vpow2.f32 %v2152_v48  ;;  %v3696_v41 = vadd.f32 %v539_v45, %v2669_v5  ;;  %vm3700_vm11 = vmor %vm1658_vm9, %vm1659_vm8 }
 0x190   : > { %v1878_v24 = vpack.c.bf16 %v1826_v40, %v1825_v62  ;;  %v1665_v56 = vor.u32 1.1754944e-38, %v1664_v16  ;;  %2446 = vpow2.f32 %v2183_v59  ;;  %v2184_v25 = vmul.f32 -1.442695, %v3682_v2 }
 0x191   : > { %v1661_v52 = vsel %vm3700_vm11, %v3638_v6, %v1657_v1  ;;  %v1670_v12 = vsub.f32 1.0, %v1669_v47  ;;  %v1677_v53 = vand.u32 2147483647, %v3646_v30  ;;  %v2153_v38 = vmul.f32 -1.442695, %v3688_v26 }
 0x192   : > { %v2443_v39 = vpop.eup %2442  ;;  %1910 = vst [vmem:[%s2786_s9 + $0x58] sm:$0xff] %v1878_v24  ;;  %vm1674_vm12 = vweird.f32 %v2441_v57  ;;  %v1679_v63 = vand.u32 2147483648, %v3646_v30  ;;  %2448 = vpow2.f32 %v2184_v25  ;;  %v3713_v61 = vadd.f32 %v490_v58, %v2667_v4 }
 0x193   : > { %v1671_v49 = vmul.f32 %v2441_v57, %v1670_v12  ;;  %v3715_v14 = vadd.f32 1.0, %v2443_v39  ;;  %2450 = vpow2.f32 %v2153_v38  ;;  %v2154_v29 = vmul.f32 -1.442695, %v3696_v41 }
 0x194   : > { %v1666_v50 = vsel %vm3690_vm10, %v1665_v56, %v1661_v52  ;;  %v3721_v23 = vadd.f32 %v579_v10, %v2669_v5  ;;  %vm1673_vm13 = vweird.f32 %v3646_v30  ;;  %vm1678_vm14 = vcmp.eq.f32.partialorder %v1677_v53, 8.507059e+37 }
 0x195   : > { %v2445_v15 = vpop.eup %2444  ;;  %v1672_v6 = vadd.f32 %v2441_v57, %v1671_v49  ;;  %2452 = vrcp.f32 %v3715_v14  ;;  %vm1675_vm15 = vmor %vm1673_vm13, %vm1674_vm12  ;;  %v1680_v43 = vor.u32 1.1754944e-38, %v1679_v63  ;;  %v2185_v54 = vmul.f32 -1.442695, %v3713_v61 }
 0x196   : > { %v2447_v28 = vpop.eup %2446  ;;  %v3726_v13 = vadd.f32 1.0, %v2445_v15  ;;  %v3730_v20 = vadd.f32 %v453_v19, %v2667_v4  ;;  %v1857_v18 = vmul.f32 %v1666_v50, %v3539_v60  ;;  %2454 = vpow2.f32 %v2154_v29 }
 0x197   : > { %v1676_v51 = vsel %vm1675_vm15, %v2441_v57, %v1672_v6  ;;  %v3733_v21 = vadd.f32 1.0, %v2447_v28  ;;  %v2186_v31 = vmul.f32 -1.442695, %v3721_v23  ;;  %v3738_v3 = vadd.f32 %v542_v8, %v2669_v5 }
 0x198   : > { %v2449_v30 = vpop.eup %2448  ;;  %v1681_v33 = vsel %vm1678_vm14, %v1680_v43, %v1676_v51  ;;  %2456 = vrcp.f32 %v3726_v13  ;;  %v1212_v22 = vand.u32 2147483647, %v3715_v14  ;;  %v1214_v60 = vand.u32 2147483648, %v3715_v14 }
 0x199   : > { %v2451_v27 = vpop.eup %2450  ;;  %v1858_v44 = vmul.f32 %v1681_v33, %v3560_v32  ;;  %2458 = vrcp.f32 %v3733_v21  ;;  %v3744_v17 = vadd.f32 1.0, %v2449_v30  ;;  %v2155_v36 = vmul.f32 -1.442695, %v3730_v20 }
 0x19a   : > { %2460 = vpow2.f32 %v2185_v54  ;;  %v1227_v55 = vand.u32 2147483647, %v3726_v13  ;;  %v1229_v16 = vand.u32 2147483648, %v3726_v13  ;;  %v3749_v45 = vadd.f32 1.0, %v2451_v27 }
 0x19b   : > { %v2453_v11 = vpop.eup %2452  ;;  %v1894_v9 = vpack.c.bf16 %v1858_v44, %v1857_v18  ;;  %vm1208_vm0 = vweird.f32 %v3715_v14  ;;  %2462 = vpow2.f32 %v2186_v31  ;;  %v3754_v62 = vmul.f32 -1.442695, %v3738_v3 }
 0x19c   : > { %v1204_v32 = vmul.f32 %v2453_v11, %v3715_v14  ;;  %v2455_v46 = vpop.eup %2454  ;;  %vm3757_vm1 = vcmp.eq.f32.partialorder %v1212_v22, 8.507059e+37  ;;  %v1692_v1 = vand.u32 2147483647, %v3733_v21  ;;  %v1694_v48 = vand.u32 2147483648, %v3733_v21 }
 0x19d   : > { %1926 = vst [vmem:[%s2786_s9 + $0xd8] sm:$0xff] %v1894_v9  ;;  %2464 = vrcp.f32 %v3744_v17  ;;  %v1215_v59 = vor.u32 1.1754944e-38, %v1214_v60  ;;  %vm1223_vm2 = vweird.f32 %v3726_v13  ;;  %vm3767_vm3 = vcmp.eq.f32.partialorder %v1227_v55, 8.507059e+37 }
 0x19e   : > { %v2457_v57 = vpop.eup %2456  ;;  %v1205_v40 = vsub.f32 1.0, %v1204_v32  ;;  %2466 = vrcp.f32 %v3749_v45  ;;  %v1230_v24 = vor.u32 1.1754944e-38, %v1229_v16  ;;  %vm1688_vm4 = vweird.f32 %v3733_v21 }
 0x19f   : > { %v2459_v35 = vpop.eup %2458  ;;  %v1219_v47 = vmul.f32 %v2457_v57, %v3726_v13  ;;  %vm1209_vm5 = vweird.f32 %v2453_v11  ;;  %v1707_v52 = vand.u32 2147483647, %v3744_v17  ;;  %vm3774_vm6 = vcmp.eq.f32.partialorder %v1692_v1, 8.507059e+37 }
 0x1a0   : > { %v2461_v37 = vpop.eup %2460  ;;  %v1206_v56 = vmul.f32 %v2453_v11, %v1205_v40  ;;  %v1684_v25 = vmul.f32 %v2459_v35, %v3733_v21  ;;  %v1695_v38 = vor.u32 1.1754944e-38, %v1694_v48  ;;  %v3778_v10 = vadd.f32 1.0, %v2455_v46  ;;  %vm1210_vm8 = vmor %vm1208_vm0, %vm1209_vm5 }
 0x1a1   : > { %v1220_v12 = vsub.f32 1.0, %v1219_v47  ;;  %v2463_v39 = vpop.eup %2462  ;;  %vm1703_vm7 = vweird.f32 %v3744_v17  ;;  %v1709_v29 = vand.u32 2147483648, %v3744_v17  ;;  %v1242_v19 = vand.u32 2147483647, %v3749_v45 }
 0x1a2   : > { %v1207_v63 = vadd.f32 %v2453_v11, %v1206_v56  ;;  %v1685_v49 = vsub.f32 1.0, %v1684_v25  ;;  %vm1224_vm9 = vweird.f32 %v2457_v57  ;;  %vm1238_vm10 = vweird.f32 %v3749_v45 }
 0x1a3   : > { %v2465_v50 = vpop.eup %2464  ;;  %v1221_v15 = vmul.f32 %v2457_v57, %v1220_v12  ;;  %2468 = vrcp.f32 %v3778_v10  ;;  %v3787_v6 = vadd.f32 1.0, %v2461_v37  ;;  %vm1689_vm11 = vweird.f32 %v2459_v35  ;;  %vm1225_vm13 = vmor %vm1223_vm2, %vm1224_vm9  ;;  %v582_v12 = vpop.f32.mrf.mxu3 }
 0x1a4   : > { %v2467_v8 = vpop.eup %2466  ;;  %v1211_v28 = vsel %vm1210_vm8, %v2453_v11, %v1207_v63  ;;  %v1686_v43 = vmul.f32 %v2459_v35, %v1685_v49  ;;  %v1699_v54 = vmul.f32 %v2465_v50, %v3744_v17  ;;  %vm3790_vm12 = vcmp.eq.f32.partialorder %v1707_v52, 8.507059e+37  ;;  %vm1690_vm14 = vmor %vm1688_vm4, %vm1689_vm11 }
 0x1a5   : > { %v1216_v14 = vsel %vm3757_vm1, %v1215_v59, %v1211_v28  ;;  %v1222_v51 = vadd.f32 %v2457_v57, %v1221_v15  ;;  %v1234_v30 = vmul.f32 %v2467_v8, %v3749_v45  ;;  %v1244_v33 = vand.u32 2147483648, %v3749_v45 }
 0x1a6   : > { %v1687_v31 = vadd.f32 %v2459_v35, %v1686_v43  ;;  %v1700_v27 = vsub.f32 1.0, %v1699_v54  ;;  %v3800_v44 = vadd.f32 1.0, %v2463_v39  ;;  %2470 = vpow2.f32 %v2155_v36 }
 0x1a7   : > { %v1827_v22 = vmul.f32 %v1216_v14, %v3605_v34  ;;  %v1226_v60 = vsel %vm1225_vm13, %v2457_v57, %v1222_v51  ;;  %v1235_v11 = vsub.f32 1.0, %v1234_v30  ;;  %2472 = vrcp.f32 %v3787_v6 }
 0x1a8   : > { %v1231_v9 = vsel %vm3767_vm3, %v1230_v24, %v1226_v60  ;;  %v1691_v55 = vsel %vm1690_vm14, %v2459_v35, %v1687_v31  ;;  %v1701_v13 = vmul.f32 %v2465_v50, %v1700_v27  ;;  %vm1704_vm15 = vweird.f32 %v2465_v50  ;;  %v493_v24 = vpop.f32.mrf.mxu2 }
 0x1a9   : > { %v2469_v16 = vpop.eup %2468  ;;  %v1828_v32 = vmul.f32 %v1231_v9, %v3671_v0  ;;  %v1696_v36 = vsel %vm3774_vm6, %v1695_v38, %v1691_v55  ;;  %v1236_v34 = vmul.f32 %v2467_v8, %v1235_v11  ;;  %vm1239_vm0 = vweird.f32 %v2467_v8  ;;  %vm1705_vm1 = vmor %vm1703_vm7, %vm1704_vm15  ;;  %v544_v9 = vpop.f32.mrf.mxu1 }
 0x1aa   : > { %v1702_v46 = vadd.f32 %v2465_v50, %v1701_v13  ;;  %v1710_v21 = vor.u32 1.1754944e-38, %v1709_v29  ;;  %v1245_v7 = vor.u32 1.1754944e-38, %v1244_v33  ;;  %v1249_v1 = vmul.f32 %v2469_v16, %v3778_v10  ;;  %vm1240_vm2 = vmor %vm1238_vm10, %vm1239_vm0 }
 0x1ab   : > { %v1879_v48 = vpack.c.bf16 %v1828_v32, %v1827_v22  ;;  %v1237_v57 = vadd.f32 %v2467_v8, %v1236_v34  ;;  %v1257_v40 = vand.u32 2147483647, %v3778_v10  ;;  %v1259_v0 = vand.u32 2147483648, %v3778_v10 }
 0x1ac   : > { %v2471_v59 = vpop.eup %2470  ;;  %v1859_v35 = vmul.f32 %v1696_v36, %v3675_v42  ;;  %v1706_v47 = vsel %vm1705_vm1, %v2465_v50, %v1702_v46  ;;  %v1250_v58 = vsub.f32 1.0, %v1249_v1  ;;  %2474 = vrcp.f32 %v3800_v44  ;;  %v584_v46 = vpop.f32.mrf.mxu3 }
 0x1ad   : > { %v2473_v37 = vpop.eup %2472  ;;  %1911 = vst [vmem:[%s2786_s9 + $0x60] sm:$0xff] %v1879_v48  ;;  %v1711_v17 = vsel %vm3790_vm12, %v1710_v21, %v1706_v47  ;;  %v1241_v56 = vsel %vm1240_vm2, %v2467_v8, %v1237_v57  ;;  %vm1243_vm3 = vcmp.eq.f32.partialorder %v1242_v19, 8.507059e+37  ;;  %vm1254_vm4 = vweird.f32 %v2469_v16 }
 0x1ae   : > { %v1860_v25 = vmul.f32 %v1711_v17, %v3682_v2  ;;  %v1246_v52 = vsel %vm1243_vm3, %v1245_v7, %v1241_v56  ;;  %v1251_v42 = vmul.f32 %v2469_v16, %v1250_v58  ;;  %v1714_v45 = vmul.f32 %v2473_v37, %v3787_v6 }
 0x1af   : > { %vm1253_vm5 = vweird.f32 %v3778_v10  ;;  %vm3826_vm6 = vcmp.eq.f32.partialorder %v1257_v40, 8.507059e+37  ;;  %v1260_v38 = vor.u32 1.1754944e-38, %v1259_v0  ;;  %v1724_v29 = vand.u32 2147483648, %v3787_v6 }
 0x1b0   : > { %v1895_v39 = vpack.c.bf16 %v1860_v25, %v1859_v35  ;;  %v1252_v63 = vadd.f32 %v2469_v16, %v1251_v42  ;;  %v1715_v49 = vsub.f32 1.0, %v1714_v45  ;;  %v1829_v2 = vmul.f32 %v1246_v52, %v3688_v26  ;;  %vm1255_vm7 = vmor %vm1253_vm5, %vm1254_vm4  ;;  %v495_v55 = vpop.f32.mrf.mxu2 }
 0x1b1   : > { %v3832_v19 = vadd.f32 1.0, %v2471_v59  ;;  %2476 = vpow2.f32 %v3754_v62  ;;  %v3836_v50 = vadd.f32 %v493_v24, %v2667_v4  ;;  %vm1719_vm8 = vweird.f32 %v2473_v37  ;;  %v455_v62 = vpop.f32.mrf.mxu0 }
 0x1b2   : > { %v2475_v10 = vpop.eup %2474  ;;  %1927 = vst [vmem:[%s2786_s9 + $0xe0] sm:$0xff] %v1895_v39  ;;  %v1256_v15 = vsel %vm1255_vm7, %v2469_v16, %v1252_v63  ;;  %v1716_v8 = vmul.f32 %v2473_v37, %v1715_v49  ;;  %v3840_v28 = vadd.f32 %v582_v12, %v2669_v5  ;;  %v1722_v26 = vand.u32 2147483647, %v3787_v6 }
 0x1b3   : > { %v1261_v43 = vsel %vm3826_vm6, %v1260_v38, %v1256_v15  ;;  %v1729_v54 = vmul.f32 %v2475_v10, %v3800_v44  ;;  %2478 = vrcp.f32 %v3832_v19  ;;  %vm1718_vm9 = vweird.f32 %v3787_v6 }
 0x1b4   : > { %v1830_v18 = vmul.f32 %v1261_v43, %v3696_v41  ;;  %v1717_v14 = vadd.f32 %v2473_v37, %v1716_v8  ;;  %v1737_v51 = vand.u32 2147483647, %v3800_v44  ;;  %vm3850_vm10 = vmor %vm1718_vm9, %vm1719_vm8  ;;  %v1725_v33 = vor.u32 1.1754944e-38, %v1724_v29 }
 0x1b5   : > { %v1730_v31 = vsub.f32 1.0, %v1729_v54  ;;  %v2187_v27 = vmul.f32 -1.442695, %v3836_v50  ;;  %v2188_v22 = vmul.f32 -1.442695, %v3840_v28  ;;  %v1739_v11 = vand.u32 2147483648, %v3800_v44 }
 0x1b6   : > { %v1880_v60 = vpack.c.bf16 %v1830_v18, %v1829_v2  ;;  %v1721_v41 = vsel %vm3850_vm10, %v2473_v37, %v1717_v14  ;;  %v3860_v6 = vadd.f32 %v455_v62, %v2667_v4  ;;  %vm1723_vm11 = vcmp.eq.f32.partialorder %v1722_v26, 8.507059e+37 }
 0x1b7   : > { %v2477_v13 = vpop.eup %2476  ;;  %v1731_v16 = vmul.f32 %v2475_v10, %v1730_v31  ;;  %vm1734_vm12 = vweird.f32 %v2475_v10  ;;  %2480 = vpow2.f32 %v2187_v27  ;;  %v1726_v32 = vsel %vm1723_vm11, %v1725_v33, %v1721_v41 }
 0x1b8   : > { %1912 = vst [vmem:[%s2786_s9 + $0x68] sm:$0xff] %v1880_v60  ;;  %v3863_v36 = vadd.f32 1.0, %v2477_v13  ;;  %2482 = vpow2.f32 %v2188_v22  ;;  %v2157_v34 = vmul.f32 -1.442695, %v3860_v6  ;;  %vm1733_vm13 = vweird.f32 %v3800_v44 }
 0x1b9   : > { %v2479_v21 = vpop.eup %2478  ;;  %v1732_v7 = vadd.f32 %v2475_v10, %v1731_v16  ;;  %v3868_v1 = vadd.f32 %v544_v9, %v2669_v5  ;;  %v3871_v48 = vadd.f32 %v495_v55, %v2667_v4  ;;  %vm1735_vm14 = vmor %vm1733_vm13, %vm1734_vm12  ;;  %vm1738_vm15 = vcmp.eq.f32.partialorder %v1737_v51, 8.507059e+37 }
 0x1ba   : > { %v1740_v57 = vor.u32 1.1754944e-38, %v1739_v11  ;;  %v1264_v40 = vmul.f32 %v2479_v21, %v3832_v19  ;;  %2484 = vrcp.f32 %v3863_v36  ;;  %v1861_v0 = vmul.f32 %v1726_v32, %v3713_v61 }
 0x1bb   : > { %v1736_v59 = vsel %vm1735_vm14, %v2475_v10, %v1732_v7  ;;  %2486 = vpow2.f32 %v2157_v34  ;;  %v3877_v35 = vadd.f32 %v584_v46, %v2669_v5  ;;  %v2158_v58 = vmul.f32 -1.442695, %v3868_v1 }
 0x1bc   : > { %v1741_v44 = vsel %vm1738_vm15, %v1740_v57, %v1736_v59  ;;  %v1265_v47 = vsub.f32 1.0, %v1264_v40  ;;  %v2189_v4 = vmul.f32 -1.442695, %v3871_v48  ;;  %vm1268_vm0 = vweird.f32 %v3832_v19 }
 0x1bd   : > { %v2481_v24 = vpop.eup %2480  ;;  %v1862_v37 = vmul.f32 %v1741_v44, %v3721_v23  ;;  %v1272_v17 = vand.u32 2147483647, %v3832_v19  ;;  %v1274_v25 = vand.u32 2147483648, %v3832_v19  ;;  %2488 = vpow2.f32 %v2158_v58 }
 0x1be   : > { %v2483_v61 = vpop.eup %2482  ;;  %v1266_v56 = vmul.f32 %v2479_v21, %v1265_v47  ;;  %v3885_v5 = vadd.f32 1.0, %v2481_v24  ;;  %vm1269_vm1 = vweird.f32 %v2479_v21  ;;  %2490 = vpow2.f32 %v2189_v4 }
 0x1bf   : > { %v1896_v52 = vpack.c.bf16 %v1862_v37, %v1861_v0  ;;  %v3887_v42 = vadd.f32 1.0, %v2483_v61  ;;  %v2190_v23 = vmul.f32 -1.442695, %v3877_v35  ;;  %v1287_v39 = vand.u32 2147483647, %v3863_v36  ;;  %vm3897_vm2 = vmor %vm1268_vm0, %vm1269_vm1 }
 0x1c0   : > { %v2485_v45 = vpop.eup %2484  ;;  %v1267_v12 = vadd.f32 %v2479_v21, %v1266_v56  ;;  %2492 = vrcp.f32 %v3885_v5  ;;  %v1289_v49 = vand.u32 2147483648, %v3863_v36  ;;  %vm1273_vm3 = vcmp.eq.f32.partialorder %v1272_v17, 8.507059e+37 }
 0x1c1   : > { %v2487_v53 = vpop.eup %2486  ;;  %1928 = vst [vmem:[%s2786_s9 + $0xe8] sm:$0xff] %v1896_v52  ;;  %v1279_v38 = vmul.f32 %v2485_v45, %v3863_v36  ;;  %2494 = vrcp.f32 %v3887_v42  ;;  %v1275_v2 = vor.u32 1.1754944e-38, %v1274_v25  ;;  %vm1283_vm4 = vweird.f32 %v3863_v36 }
 0x1c2   : > { %v1271_v29 = vsel %vm3897_vm2, %v2479_v21, %v1267_v12  ;;  %v1752_v8 = vand.u32 2147483647, %v3885_v5  ;;  %v3906_v43 = vadd.f32 1.0, %v2487_v53  ;;  %2496 = vpow2.f32 %v2190_v23 }
 0x1c3   : > { %v1280_v10 = vsub.f32 1.0, %v1279_v38  ;;  %v2489_v15 = vpop.eup %2488  ;;  %vm1284_vm5 = vweird.f32 %v2485_v45  ;;  %vm3908_vm6 = vcmp.eq.f32.partialorder %v1287_v39, 8.507059e+37  ;;  %v1276_v14 = vsel %vm1273_vm3, %v1275_v2, %v1271_v29 }
 0x1c4   : > { %v2491_v19 = vpop.eup %2490  ;;  %v3912_v62 = vadd.f32 1.0, %v2489_v15  ;;  %v1290_v51 = vor.u32 1.1754944e-38, %v1289_v49  ;;  %v1754_v30 = vand.u32 2147483648, %v3885_v5  ;;  %2498 = vrcp.f32 %v3906_v43  ;;  %vm1285_vm8 = vmor %vm1283_vm4, %vm1284_vm5 }
 0x1c5   : > { %v1281_v26 = vmul.f32 %v2485_v45, %v1280_v10  ;;  %vm1748_vm7 = vweird.f32 %v3885_v5  ;;  %vm3921_vm9 = vcmp.eq.f32.partialorder %v1752_v8, 8.507059e+37  ;;  %vm1763_vm10 = vweird.f32 %v3887_v42 }
 0x1c6   : > { %v2493_v18 = vpop.eup %2492  ;;  %2500 = vrcp.f32 %v3912_v62  ;;  %v1767_v41 = vand.u32 2147483647, %v3887_v42  ;;  %v1831_v11 = vmul.f32 %v1276_v14, %v3730_v20  ;;  %v1769_v13 = vand.u32 2147483648, %v3887_v42 }
 0x1c7   : > { %v2495_v33 = vpop.eup %2494  ;;  %v1282_v31 = vadd.f32 %v2485_v45, %v1281_v26  ;;  %v1744_v27 = vmul.f32 %v2493_v18, %v3885_v5  ;;  %v1755_v36 = vor.u32 1.1754944e-38, %v1754_v30  ;;  %v3932_v46 = vadd.f32 1.0, %v2491_v19 }
 0x1c8   : > { %v1759_v60 = vmul.f32 %v2495_v33, %v3887_v42  ;;  %v2497_v16 = vpop.eup %2496  ;;  %vm1749_vm11 = vweird.f32 %v2493_v18  ;;  %vm1764_vm12 = vweird.f32 %v2495_v33  ;;  %vm3937_vm13 = vcmp.eq.f32.partialorder %v1767_v41, 8.507059e+37 }
 0x1c9   : > { %v1286_v9 = vsel %vm1285_vm8, %v2485_v45, %v1282_v31  ;;  %v1745_v55 = vsub.f32 1.0, %v1744_v27  ;;  %v3935_v57 = vadd.f32 1.0, %v2497_v16  ;;  %2502 = vrcp.f32 %v3932_v46  ;;  %vm1750_vm14 = vmor %vm1748_vm7, %vm1749_vm11 }
 0x1ca   : > { %v1291_v32 = vsel %vm3908_vm6, %v1290_v51, %v1286_v9  ;;  %v1760_v34 = vsub.f32 1.0, %v1759_v60  ;;  %v2499_v20 = vpop.eup %2498  ;;  %v1770_v58 = vor.u32 1.1754944e-38, %v1769_v13  ;;  %v1302_v24 = vand.u32 2147483647, %v3906_v43  ;;  %vm1765_vm15 = vmor %vm1763_vm10, %vm1764_vm12 }
 0x1cb   : > { %v1832_v21 = vmul.f32 %v1291_v32, %v3738_v3  ;;  %v1746_v7 = vmul.f32 %v2493_v18, %v1745_v55  ;;  %v1294_v3 = vmul.f32 %v2499_v20, %v3906_v43  ;;  %v1304_v37 = vand.u32 2147483648, %v3906_v43 }
 0x1cc   : > { %v1761_v40 = vmul.f32 %v2495_v33, %v1760_v34  ;;  %v2501_v59 = vpop.eup %2500  ;;  %v1317_v25 = vand.u32 2147483647, %v3912_v62  ;;  %2504 = vrcp.f32 %v3935_v57  ;;  %v1319_v12 = vand.u32 2147483648, %v3912_v62 }
 0x1cd   : > { %v1881_v44 = vpack.c.bf16 %v1832_v21, %v1831_v11  ;;  %v1747_v47 = vadd.f32 %v2493_v18, %v1746_v7  ;;  %v1309_v17 = vmul.f32 %v2501_v59, %v3912_v62  ;;  %v1295_v56 = vsub.f32 1.0, %v1294_v3 }
 0x1ce   : > { %v1762_v4 = vadd.f32 %v2495_v33, %v1761_v40  ;;  %vm1299_vm0 = vweird.f32 %v2499_v20  ;;  %vm1298_vm1 = vweird.f32 %v3906_v43  ;;  %vm1314_vm2 = vweird.f32 %v2501_v59 }
 0x1cf   : > { %1913 = vst [vmem:[%s2786_s9 + $0x70] sm:$0xff] %v1881_v44  ;;  %v1751_v61 = vsel %vm1750_vm14, %v2493_v18, %v1747_v47  ;;  %v1310_v45 = vsub.f32 1.0, %v1309_v17  ;;  %v1296_v38 = vmul.f32 %v2499_v20, %v1295_v56  ;;  %v2503_v42 = vpop.eup %2502  ;;  %vm1303_vm3 = vcmp.eq.f32.partialorder %v1302_v24, 8.507059e+37  ;;  %vm1300_vm4 = vmor %vm1298_vm1, %vm1299_vm0 }
 0x1d0   : > { %v1756_v5 = vsel %vm3921_vm9, %v1755_v36, %v1751_v61  ;;  %v1766_v52 = vsel %vm1765_vm15, %v2495_v33, %v1762_v4  ;;  %v1305_v29 = vor.u32 1.1754944e-38, %v1304_v37  ;;  %v1774_v2 = vmul.f32 %v2503_v42, %v3932_v46 }
 0x1d1   : > { %v1863_v23 = vmul.f32 %v1756_v5, %v3836_v50  ;;  %v1771_v53 = vsel %vm3937_vm13, %v1770_v58, %v1766_v52  ;;  %v1311_v63 = vmul.f32 %v2501_v59, %v1310_v45  ;;  %v1297_v49 = vadd.f32 %v2499_v20, %v1296_v38 }
 0x1d2   : > { %v1864_v39 = vmul.f32 %v1771_v53, %v3840_v28  ;;  %vm1313_vm5 = vweird.f32 %v3912_v62  ;;  %vm1318_vm6 = vcmp.eq.f32.partialorder %v1317_v25, 8.507059e+37  ;;  %v2505_v15 = vpop.eup %2504  ;;  %v1320_v28 = vor.u32 1.1754944e-38, %v1319_v12 }
 0x1d3   : > { %v1312_v50 = vadd.f32 %v2501_v59, %v1311_v63  ;;  %v1301_v8 = vsel %vm1300_vm4, %v2499_v20, %v1297_v49  ;;  %vm1315_vm7 = vmor %vm1313_vm5, %vm1314_vm2  ;;  %v1775_v19 = vsub.f32 1.0, %v1774_v2  ;;  %v1784_v43 = vand.u32 2147483648, %v3932_v46 }
 0x1d4   : > { %v1897_v10 = vpack.c.bf16 %v1864_v39, %v1863_v23  ;;  %v1306_v26 = vsel %vm1303_vm3, %v1305_v29, %v1301_v8  ;;  %v1782_v18 = vand.u32 2147483647, %v3932_v46  ;;  %v1789_v14 = vmul.f32 %v2505_v15, %v3935_v57 }
 0x1d5   : > { %v1316_v54 = vsel %vm1315_vm7, %v2501_v59, %v1312_v50  ;;  %v1833_v51 = vmul.f32 %v1306_v26, %v3860_v6  ;;  %v1776_v62 = vmul.f32 %v2503_v42, %v1775_v19  ;;  %vm1779_vm8 = vweird.f32 %v2503_v42 }
 0x1d6   : > { %1929 = vst [vmem:[%s2786_s9 + $0xf0] sm:$0xff] %v1897_v10  ;;  %v1321_v30 = vsel %vm1318_vm6, %v1320_v28, %v1316_v54  ;;  %v1790_v31 = vsub.f32 1.0, %v1789_v14  ;;  %vm1778_vm9 = vweird.f32 %v3932_v46  ;;  %v1785_v22 = vor.u32 1.1754944e-38, %v1784_v43 }
 0x1d7   : > { %v1834_v33 = vmul.f32 %v1321_v30, %v3868_v1  ;;  %v1777_v27 = vadd.f32 %v2503_v42, %v1776_v62  ;;  %v1799_v60 = vand.u32 2147483648, %v3935_v57  ;;  %vm1780_vm10 = vmor %vm1778_vm9, %vm1779_vm8  ;;  %vm1794_vm11 = vweird.f32 %v2505_v15 }
 0x1d8   : > { %v1791_v11 = vmul.f32 %v2505_v15, %v1790_v31  ;;  %v1797_v6 = vand.u32 2147483647, %v3935_v57  ;;  %vm1783_vm12 = vcmp.eq.f32.partialorder %v1782_v18, 8.507059e+37  ;;  %vm1793_vm13 = vweird.f32 %v3935_v57 }
 0x1d9   : > { %v1882_v41 = vpack.c.bf16 %v1834_v33, %v1833_v51  ;;  %v1781_v9 = vsel %vm1780_vm10, %v2503_v42, %v1777_v27  ;;  %vm1795_vm14 = vmor %vm1793_vm13, %vm1794_vm11  ;;  %v1800_v1 = vor.u32 1.1754944e-38, %v1799_v60 }
 0x1da   : > { %v1786_v55 = vsel %vm1783_vm12, %v1785_v22, %v1781_v9  ;;  %v1792_v13 = vadd.f32 %v2505_v15, %v1791_v11  ;;  %vm1798_vm15 = vcmp.eq.f32.partialorder %v1797_v6, 8.507059e+37 }
 0x1db   : > { %1914 = vst [vmem:[%s2786_s9 + $0x78] sm:$0xff] %v1882_v41  ;;  %v1865_v16 = vmul.f32 %v1786_v55, %v3871_v48 }
 0x1dc   : > { %v1796_v32 = vsel %vm1795_vm14, %v2505_v15, %v1792_v13 }
 0x1dd   : > { %v1801_v36 = vsel %vm1798_vm15, %v1800_v1, %v1796_v32 }
 0x1de   : > { %v1866_v34 = vmul.f32 %v1801_v36, %v3877_v35 }
 0x1e0   : > { %v1898_v46 = vpack.c.bf16 %v1866_v34, %v1865_v16 }
 0x1e2   : > { %1930 = vst [vmem:[%s2786_s9 + $0xf8] sm:$0xff] %v1898_v46 }
 0x1e3 PF: > { %s13_s12 = sadd.s32 1, %s2512_s12  }
 0x1e4   : > { %p10_p4 = scmp.ge.s32.totalorder %s13_s12, 4  }
 0x1e6   :  { %12 = sbr.rel (!%p10_p4) target bundleno = 1 (0x1), region = 62 }

// kernel: hms_hbac_spec_forward.5
= control target key start
LH: loop header
LB: loop body
LE: loop exit
PB: predicated region body
PF: predicated region fallthrough
CT: control target
= control target key end

     0   :  { %s3309_s15 = smov 0   ;;  %s3311_s16 = smov 0   ;;  %s4246_s0 = inlined_call_operand.vmem [shape: bf16[2,2,10,18,128], index: 0, kind: input, shape index: {}]   ;;  %s4247_s1 = inlined_call_operand.vmem [shape: bf16[9,128,128], index: 1, kind: input, shape index: {}]   ;;  %s4248_s2 = inlined_call_operand.vmem [shape: bf16[1,128], index: 2, kind: input, shape index: {}]   ;;  %s4249_s3 = inlined_call_operand.vmem [shape: bf16[2,16,16,128], index: 3, kind: input, shape index: {}]   ;;  %s4250_s4 = inlined_call_operand.vmem [shape: bf16[2,16,16,128], index: 4, kind: output, shape index: {}]  }
   0x1   :  { %s3313_s17 = smov 0   ;;  %s3315_s18 = smov 0  }
   0x2   :  { %s3317_s19 = smov 0  }
   0x3 LB: > { %s23_s20 = sadd.s32 1, %s3274_s17  ;;  %s26_s21 = sadd.s32 1, %s3278_s18  ;;  %s3282_s19 = sphi %s3317_s19, %s14_s19   ;;  %s3278_s18 = sphi %s3315_s18, %s4266_s18   ;;  %s3274_s17 = sphi %s3313_s17, %s4265_s17   ;;  %s3270_s16 = sphi %s3311_s16, %s4264_s16   ;;  %s3266_s15 = sphi %s3309_s15, %s4263_s15  }
   0x4   : > { %p24_p0 = scmp.ge.s32.totalorder %s23_s20, 2  ;;  %p2452_p1 = scmp.ge.s32.totalorder %s3282_s19, 1 }
   0x5   : > { %p200_p2 = scmp.lt.s32.totalorder %s3282_s19, 5 }
   0x6   : > { %s4268_s20 = smov (%p24_p0, %s23_s20), 0  ;;  %s4270_s21 = smov (!%p24_p0, %s26_s21), %s3278_s18 }
   0x7   : > { %p201_p3 = pnand %p2452_p1, %p200_p2  ;;  %p28_p4 = scmp.ge.s32.totalorder %s4270_s21, 2 }
   0x8   : > { %p245_p5 = scmp.lt.s32.totalorder (!%p201_p3), %s3270_s16, 1  ;;  %p247_p6 = scmp.lt.s32.totalorder (!%p201_p3), %s3266_s15, 1 }
   0x9   : > { %s4272_s21 = smov (%p28_p4, %s4270_s21), 0  ;;  %204 = sbr.rel (%p201_p3) target bundleno = 502 (0x1f6), region = 36 }
   0xa   : > { %s2454_s30 = sshll.u32 (!%p201_p3), %s3266_s15, 3 }
   0xb   : > { %p257_p7 = scmp.lt.s32.totalorder (!%p201_p3), %s2454_s30, 15 }
   0xe   : > { %v2971_v0 = vld [vmem:[%s4247_s1 + $0x78] sm:$0xff]  ;;  %v2970_v1 = vld [vmem:[%s4247_s1 + $0x70] sm:$0xff]  ;;  %s4274_s16 = smov (!%p245_p5, %s3270_s16), 1  ;;  %v2969_v2 = vld [vmem:[%s4247_s1 + $0x68] sm:$0xff]  ;;  %vm322_vm0 = vsmask.f32 3328 }
   0xf   : > { %3114 = vmatpush.bf16.msra.mxu1 %v2971_v0  ;;  %3115 = vmatpush.bf16.msra.mxu2 %v2971_v0  ;;  %s248_s26 = scalar_select %p247_p6, %s3266_s15, 1  ;;  %v2968_v3 = vld [vmem:[%s4247_s1 + $0x60] sm:$0xff]  ;;  %vm323_vm1 = vsmask.f32 7440  ;;  %v2967_v21 = vld [vmem:[%s4247_s1 + $0x58] sm:$0xff]  ;;  %v2966_v40 = vld [vmem:[%s4247_s1 + $0x50] sm:$0xff] }
  0x10   : > { %3116 = vmatpush.bf16.msra.mxu3 %v2971_v0  ;;  %614 = vmatpush.bf16.msra.mxu0 %v2971_v0  ;;  %s3139_s27 = smul.u32 60, %s4274_s16  ;;  %vm3402_vm2 = vmor %vm322_vm0, %vm323_vm1  ;;  %v2965_v59 = vld [vmem:[%s4247_s1 + $0x48] sm:$0xff]  ;;  %vm816_vm3 = vcmask 1042432   ;;  %vm817_vm4 = vcmask 1046532   ;;  %s4276_s30 = smov (!%p257_p7, %s2454_s30), 15 }
  0x11   : > { %s3138_s28 = smul.u32 30, %s248_s26  ;;  %vm3619_vm5 = vmor %vm816_vm3, %vm817_vm4  ;;  %s2455_s15 = sshll.u32 %s4276_s30, 1 }
  0x13   : > { %3117 = vmatpush.bf16.msra.mxu1 %v2970_v1  ;;  %3118 = vmatpush.bf16.msra.mxu2 %v2970_v1  ;;  %s251_s5 = sadd.s32 %s3139_s27, %s3138_s28 }
  0x14   : > { %3119 = vmatpush.bf16.msra.mxu3 %v2970_v1  ;;  %615 = vmatpush.bf16.msra.mxu0 %v2970_v1  ;;  %s2453_s6 = sshll.u32 %s251_s5, 2  ;;  %s2456_s5 = sshll.u32 %s4274_s16, 5 }
  0x15   : > { %s3361_s11 = scalar_lea.vmem %s4246_s0, %s2453_s6  ;;  %s4028_s6 = sadd.s32 %s2456_s5, %s2455_s15 }
  0x16   : > { %v3364_v4 = vld [vmem:[%s3361_s11 + $0x18] sm:$0xf]  ;;  %v3367_v5 = vld [vmem:[%s3361_s11 + $0x1c] sm:$0xf]  ;;  %v3370_v6 = vld [vmem:[%s3361_s11 + $0x20] sm:$0x1] }
  0x17   : > { %3120 = vmatpush.bf16.msra.mxu1 %v2969_v2  ;;  %3121 = vmatpush.bf16.msra.mxu2 %v2969_v2  ;;  %v374_v7 = vshrl.u32 %v3364_v4, 16  ;;  %v377_v8 = vshll.u32 %v3364_v4, 16  ;;  %v383_v9 = vshll.u32 %v3367_v5, 16  ;;  %v387_v10 = vshrl.u32 %v3367_v5, 16  ;;  %v3377_v11 = vld [vmem:[%s3361_s11 + $0x30] sm:$0xf] }
  0x18   : > { %3122 = vmatpush.bf16.msra.mxu3 %v2969_v2  ;;  %616 = vmatpush.bf16.msra.mxu0 %v2969_v2  ;;  %v393_v12 = vshll.u32 %v3370_v6, 16  ;;  %v3381_v13 = vld [vmem:[%s3361_s11 + $0x34] sm:$0xf]  ;;  %v3384_v14 = vld [vmem:[%s3361_s11 + $0x38] sm:$0x1]  ;;  %v422_v15 = vshrl.u32 %v3377_v11, 16 }
  0x19   : > { %v376_v16 = vrot.slane %v374_v7, 4  ;;  %v379_v17 = vrot.slane %v377_v8, 5  ;;  %v385_v18 = vrot.slane %v383_v9, 5  ;;  %v389_v19 = vrot.slane %v387_v10, 4  ;;  %v3388_v20 = vld [vmem:[%s3361_s11 + $0x48] sm:$0xf] }
  0x1a   : > { %v395_v22 = vrot.slane %v393_v12, 5  ;;  %v424_v23 = vrot.slane %v422_v15, 4  ;;  %v425_v24 = vshll.u32 %v3377_v11, 16  ;;  %v431_v25 = vshll.u32 %v3381_v13, 16  ;;  %v3398_v30 = vld [vmem:[%s3361_s11 + $0x4c] sm:$0xf] }
  0x1b   : > { %3123 = vmatpush.bf16.msra.mxu1 %v2968_v3  ;;  %3124 = vmatpush.bf16.msra.mxu2 %v2968_v3  ;;  %v380_v26 = vor.u32 %v379_v17, %v376_v16  ;;  %v390_v27 = vor.u32 %v389_v19, %v385_v18  ;;  %v435_v28 = vshrl.u32 %v3381_v13, 16  ;;  %v441_v29 = vshll.u32 %v3384_v14, 16  ;;  %v3412_v42 = vld [vmem:[%s3361_s11 + $0x50] sm:$0x1]  ;;  %v3421_v50 = vld [vmem:[%s3361_s11] sm:$0xf] }
  0x1c   : > { %3125 = vmatpush.bf16.msra.mxu3 %v2968_v3  ;;  %617 = vmatpush.bf16.msra.mxu0 %v2968_v3  ;;  %v427_v32 = vrot.slane %v425_v24, 5  ;;  %v433_v33 = vrot.slane %v431_v25, 5  ;;  %v470_v34 = vshrl.u32 %v3388_v20, 16  ;;  %v473_v35 = vshll.u32 %v3388_v20, 16  ;;  %v3432_v63 = vld [vmem:[%s3361_s11 + $0x4] sm:$0xf] }
  0x1d   : > { %v381_v36 = vrot.slane %v380_v26, 4  ;;  %v391_v37 = vrot.slane %v390_v27, 4  ;;  %v437_v38 = vrot.slane %v435_v28, 4  ;;  %v443_v39 = vrot.slane %v441_v29, 5  ;;  %v3438_v8 = vld [vmem:[%s3361_s11 + $0x8] sm:$0x1] }
  0x1e   : > { %v428_v41 = vor.u32 %v427_v32, %v424_v23  ;;  %v472_v43 = vrot.slane %v470_v34, 4  ;;  %v475_v44 = vrot.slane %v473_v35, 5  ;;  %v479_v45 = vshll.u32 %v3398_v30, 16  ;;  %v3441_v9 = vld [vmem:[%s3361_s11 + $0x24] sm:$0xf]  ;;  %s2457_s7 = sshll.u32 %s4028_s6, 2 }
  0x1f   : > { %3126 = vmatpush.bf16.msra.mxu1 %v2967_v21  ;;  %3127 = vmatpush.bf16.msra.mxu2 %v2967_v21  ;;  %v386_v46 = vsel %vm3402_vm2, %v381_v36, %v385_v18  ;;  %v396_v47 = vsel %vm3402_vm2, %v391_v37, %v395_v22  ;;  %v438_v48 = vor.u32 %v437_v38, %v433_v33  ;;  %v483_v49 = vshrl.u32 %v3398_v30, 16  ;;  %v3449_v22 = vld [vmem:[%s3361_s11 + $0x28] sm:$0xf]  ;;  %v2964_v23 = vld [vmem:[%s4247_s1 + $0x40] sm:$0xff]  ;;  %v3458_v27 = vld [vmem:[%s3361_s11 + $0x2c] sm:$0x1]  ;;  %s4041_s9 = scalar_lea.vmem %s4249_s3, %s2457_s7  ;;  %s4064_s13 = scalar_lea.vmem %s4250_s4, %s2457_s7 }
  0x20   : > { %3128 = vmatpush.bf16.msra.mxu3 %v2967_v21  ;;  %618 = vmatpush.bf16.msra.mxu0 %v2967_v21  ;;  %v538_v51 = vunpack.c.l.b16 %v386_v46  ;;  %v539_v52 = vunpack.c.l.b16 %v396_v47  ;;  %v429_v53 = vrot.slane %v428_v41, 4  ;;  %v476_v54 = vor.u32 %v475_v44, %v472_v43  ;;  %v3465_v35 = vld [vmem:[%s3361_s11 + $0x3c] sm:$0xf] }
  0x21   : > { %v439_v55 = vrot.slane %v438_v48, 4  ;;  %v481_v56 = vrot.slane %v479_v45, 5  ;;  %v485_v57 = vrot.slane %v483_v49, 4  ;;  %v489_v58 = vshll.u32 %v3412_v42, 16  ;;  %v2979_v37 = vld [vmem:[%s4247_s1 + $0xb8] sm:$0xff] }
  0x22   : > { %v3427_v60 = vpack.c.b16 %v539_v52, %v538_v51  ;;  %v434_v61 = vsel %vm3402_vm2, %v429_v53, %v433_v33  ;;  %v477_v62 = vrot.slane %v476_v54, 4  ;;  %v326_v0 = vshrl.u32 %v3421_v50, 16  ;;  %v2963_v38 = vld [vmem:[%s4247_s1 + $0x38] sm:$0xff]  ;;  %v3485_v53 = vld [vmem:[%s3361_s11 + $0x40] sm:$0xf] }
  0x23   : > { %3129 = vmatpush.bf16.msra.mxu1 %v2966_v40  ;;  %3130 = vmatpush.bf16.msra.mxu2 %v2966_v40  ;;  %v444_v1 = vsel %vm3402_vm2, %v439_v55, %v443_v39  ;;  %v542_v2 = vunpack.c.l.b16 %v434_v61  ;;  %v486_v3 = vor.u32 %v485_v57, %v481_v56  ;;  %v491_v7 = vrot.slane %v489_v58, 5  ;;  %v2987_v43 = vld [vmem:[%s4247_s1 + $0xf8] sm:$0xff]  ;;  %v3492_v61 = vld [vmem:[%s3361_s11 + $0x44] sm:$0x1] }
  0x24   : > { %3131 = vmatpush.bf16.msra.mxu3 %v2966_v40  ;;  %619 = vmatpush.bf16.msra.mxu0 %v2966_v40  ;;  %v543_v10 = vunpack.c.l.b16 %v444_v1  ;;  %v482_v12 = vsel %vm3402_vm2, %v477_v62, %v481_v56  ;;  %v328_v15 = vrot.slane %v326_v0, 4  ;;  %v329_v16 = vshll.u32 %v3421_v50, 16  ;;  %v2995_v51 = vld [vmem:[%s4247_s1 + $0x138] sm:$0xff]  ;;  %v2978_v56 = vld [vmem:[%s4247_s1 + $0xb0] sm:$0xff] }
  0x25   : > { %v487_v17 = vrot.slane %v486_v3, 4  ;;  %v546_v18 = vunpack.c.l.b16 %v482_v12  ;;  %v335_v19 = vshll.u32 %v3432_v63, 16  ;;  %v339_v21 = vshrl.u32 %v3432_v63, 16  ;;  %v2962_v0 = vld [vmem:[%s4247_s1 + $0x30] sm:$0xff] }
  0x26   : > { %v3454_v24 = vpack.c.b16 %v543_v10, %v542_v2  ;;  %v331_v25 = vrot.slane %v329_v16, 5  ;;  %v345_v26 = vshll.u32 %v3438_v8, 16  ;;  %v398_v28 = vshrl.u32 %v3441_v9, 16 }
  0x27   : > { %3132 = vmatpush.bf16.msra.mxu1 %v2965_v59  ;;  %3133 = vmatpush.bf16.msra.mxu2 %v2965_v59  ;;  %v492_v29 = vsel %vm3402_vm2, %v487_v17, %v491_v7  ;;  %v337_v32 = vrot.slane %v335_v19, 5  ;;  %v341_v33 = vrot.slane %v339_v21, 4  ;;  %v401_v34 = vshll.u32 %v3441_v9, 16  ;;  %v3501_v7 = vld [vmem:[%s3361_s11 + $0x54] sm:$0xf] }
  0x28   : > { %3134 = vmatpush.bf16.msra.mxu3 %v2965_v59  ;;  %620 = vmatpush.bf16.msra.mxu0 %v2965_v59  ;;  %v547_v36 = vunpack.c.l.b16 %v492_v29  ;;  %v332_v39 = vor.u32 %v331_v25, %v328_v15  ;;  %v347_v40 = vrot.slane %v345_v26, 5  ;;  %v400_v41 = vrot.slane %v398_v28, 4  ;;  %v2994_v19 = vld [vmem:[%s4247_s1 + $0x130] sm:$0xff]  ;;  %v2977_v26 = vld [vmem:[%s4247_s1 + $0xa8] sm:$0xff] }
  0x29   : > { %v342_v44 = vor.u32 %v341_v33, %v337_v32  ;;  %v403_v45 = vrot.slane %v401_v34, 5  ;;  %v407_v46 = vshll.u32 %v3449_v22, 16  ;;  %v411_v47 = vshrl.u32 %v3449_v22, 16  ;;  %v3523_v33 = vld [vmem:[%s3361_s11 + $0x58] sm:$0xf] }
  0x2a   : > { %v3478_v48 = vpack.c.b16 %v547_v36, %v546_v18  ;;  %v333_v49 = vrot.slane %v332_v39, 4  ;;  %v417_v52 = vshll.u32 %v3458_v27, 16  ;;  %v446_v54 = vshrl.u32 %v3465_v35, 16  ;;  %v2986_v18 = vld [vmem:[%s4247_s1 + $0xf0] sm:$0xff] }
  0x2b   : > { %3135 = vmatpush.bf16.msra.mxu1 %v2964_v23  ;;  %3136 = vmatpush.bf16.msra.mxu2 %v2964_v23  ;;  %v343_v55 = vrot.slane %v342_v44, 4  ;;  %v404_v57 = vor.u32 %v403_v45, %v400_v41  ;;  %v409_v58 = vrot.slane %v407_v46, 5  ;;  %v413_v59 = vrot.slane %v411_v47, 4  ;;  %v3533_v41 = vld [vmem:[%s3361_s11 + $0xc] sm:$0xf] }
  0x2c   : > { %3137 = vmatpush.bf16.msra.mxu3 %v2964_v23  ;;  %621 = vmatpush.bf16.msra.mxu0 %v2964_v23  ;;  %v338_v62 = vsel %vm3402_vm2, %v333_v49, %v337_v32  ;;  %v419_v1 = vrot.slane %v417_v52, 5  ;;  %v448_v2 = vrot.slane %v446_v54, 4  ;;  %v449_v3 = vshll.u32 %v3465_v35, 16  ;;  %v2985_v47 = vld [vmem:[%s4247_s1 + $0xe8] sm:$0xff] }
  0x2d   : > { %v348_v10 = vsel %vm3402_vm2, %v343_v55, %v347_v40  ;;  %v534_v12 = vunpack.c.l.b16 %v338_v62  ;;  %v405_v15 = vrot.slane %v404_v57, 4  ;;  %v414_v16 = vor.u32 %v413_v59, %v409_v58  ;;  %v3530_v40 = vld [vmem:[%s3361_s11 + $0x5c] sm:$0x1]  ;;  %v2993_v55 = vld [vmem:[%s4247_s1 + $0x128] sm:$0xff]  ;;  %v3548_v59 = vld [vmem:[%s3361_s11 + $0x10] sm:$0xf] }
  0x2e   : > { %632 = vmatmul.bf16.vlgmr.msra.gmra.mxu1 %v3427_v60  ;;  %642 = vmatmul.bf16.vlgmr.msra.gmra.mxu2 %v3454_v24  ;;  %v535_v17 = vunpack.c.l.b16 %v348_v10  ;;  %v451_v21 = vrot.slane %v449_v3, 5  ;;  %v455_v23 = vshll.u32 %v3485_v53, 16  ;;  %v459_v25 = vshrl.u32 %v3485_v53, 16 }
  0x2f   : > { %972 = vmatpush.bf16.msrb.mxu2 %v2979_v37  ;;  %759 = vmatpush.bf16.msrb.mxu1 %v2963_v38  ;;  %v410_v28 = vsel %vm3402_vm2, %v405_v15, %v409_v58  ;;  %v415_v29 = vrot.slane %v414_v16, 4  ;;  %v465_v32 = vshll.u32 %v3492_v61, 16  ;;  %v494_v34 = vshrl.u32 %v3501_v7, 16  ;;  %v2961_v37 = vld [vmem:[%s4247_s1 + $0x28] sm:$0xff]  ;;  %v3560_v15 = vld [vmem:[%s3361_s11 + $0x14] sm:$0x1] }
  0x30   : > { %652 = vmatmul.bf16.vlgmr.msra.gmra.mxu3 %v3478_v48  ;;  %1266 = vmatpush.bf16.msrb.mxu0 %v2995_v51  ;;  %v550_v36 = vpack.c.b16 %v535_v17, %v534_v12  ;;  %v452_v38 = vor.u32 %v451_v21, %v448_v2  ;;  %v457_v39 = vrot.slane %v455_v23, 5  ;;  %v540_v44 = vunpack.c.l.b16 %v410_v28  ;;  %v2984_v28 = vld [vmem:[%s4247_s1 + $0xe0] sm:$0xff] }
  0x31   : > { %1108 = vmatpush.bf16.msrb.mxu3 %v2987_v43  ;;  %v420_v43 = vsel %vm3402_vm2, %v415_v29, %v419_v1  ;;  %v461_v45 = vrot.slane %v459_v25, 4  ;;  %v467_v46 = vrot.slane %v465_v32, 5  ;;  %v496_v51 = vrot.slane %v494_v34, 4  ;;  %v2960_v1 = vld [vmem:[%s4247_s1 + $0x20] sm:$0xff] }
  0x32   : > { %622 = vmatmul.bf16.vlgmr.msra.gmra.mxu0 %v550_v36  ;;  %v453_v49 = vrot.slane %v452_v38, 4  ;;  %v497_v52 = vshll.u32 %v3501_v7, 16  ;;  %v503_v54 = vshll.u32 %v3523_v33, 16  ;;  %v507_v57 = vshrl.u32 %v3523_v33, 16  ;;  %v2992_v29 = vld [vmem:[%s4247_s1 + $0x120] sm:$0xff] }
  0x33   : > { %973 = vmatpush.bf16.msrb.mxu2 %v2978_v56  ;;  %760 = vmatpush.bf16.msrb.mxu1 %v2962_v0  ;;  %v462_v56 = vor.u32 %v461_v45, %v457_v39  ;;  %v513_v58 = vshll.u32 %v3530_v40, 16  ;;  %v350_v62 = vshrl.u32 %v3533_v41, 16  ;;  %v2976_v0 = vld [vmem:[%s4247_s1 + $0xa0] sm:$0xff]  ;;  %v541_v2 = vunpack.c.l.b16 %v420_v43  ;;  %v2975_v43 = vld [vmem:[%s4247_s1 + $0x98] sm:$0xff] }
  0x34   : > { %1267 = vmatpush.bf16.msrb.mxu0 %v2994_v19  ;;  %v458_v3 = vsel %vm3402_vm2, %v453_v49, %v457_v39  ;;  %v499_v10 = vrot.slane %v497_v52, 5  ;;  %v505_v12 = vrot.slane %v503_v54, 5  ;;  %v353_v25 = vshll.u32 %v3533_v41, 16  ;;  %v2959_v45 = vld [vmem:[%s4247_s1 + $0x18] sm:$0xff] }
  0x35   : > { %1109 = vmatpush.bf16.msrb.mxu3 %v2986_v18  ;;  %v463_v16 = vrot.slane %v462_v56, 4  ;;  %v544_v17 = vunpack.c.l.b16 %v458_v3  ;;  %v509_v18 = vrot.slane %v507_v57, 4  ;;  %v515_v19 = vrot.slane %v513_v58, 5 }
  0x36   : > { %v500_v21 = vor.u32 %v499_v10, %v496_v51  ;;  %v352_v23 = vrot.slane %v350_v62, 4  ;;  %v363_v36 = vshrl.u32 %v3548_v59, 16  ;;  %v2974_v10 = vld [vmem:[%s4247_s1 + $0x90] sm:$0xff] }
  0x37   : > { %974 = vmatpush.bf16.msrb.mxu2 %v2977_v26  ;;  %761 = vmatpush.bf16.msrb.mxu1 %v2961_v37  ;;  %v359_v26 = vshll.u32 %v3548_v59, 16  ;;  %v468_v32 = vsel %vm3402_vm2, %v463_v16, %v467_v46  ;;  %v510_v34 = vor.u32 %v509_v18, %v505_v12  ;;  %v369_v37 = vshll.u32 %v3560_v15, 16 }
  0x38   : > { %1268 = vmatpush.bf16.msrb.mxu0 %v2993_v55  ;;  %v545_v38 = vunpack.c.l.b16 %v468_v32  ;;  %v501_v39 = vrot.slane %v500_v21, 4  ;;  %v3580_v46 = vpack.c.b16 %v541_v2, %v540_v44  ;;  %v365_v52 = vrot.slane %v363_v36, 4  ;;  %v2983_v44 = vld [vmem:[%s4247_s1 + $0xd8] sm:$0xff]  ;;  %v2973_v32 = vld [vmem:[%s4247_s1 + $0x88] sm:$0xff] }
  0x39   : > { %1110 = vmatpush.bf16.msrb.mxu3 %v2985_v47  ;;  %v355_v47 = vrot.slane %v353_v25, 5  ;;  %v361_v49 = vrot.slane %v359_v26, 5  ;;  %v511_v51 = vrot.slane %v510_v34, 4  ;;  %v371_v57 = vrot.slane %v369_v37, 5  ;;  %v2957_v34 = vld [vmem:[%s4247_s1 + $0x8] sm:$0xff] }
  0x3a   : > { %v3582_v54 = vpack.c.b16 %v545_v38, %v544_v17  ;;  %v506_v55 = vsel %vm3402_vm2, %v501_v39, %v505_v12  ;;  %v821_v12 = vrot.slane %v3432_v63, 5  ;;  %v2958_v17 = vld [vmem:[%s4247_s1 + $0x10] sm:$0xff]  ;;  %v2574_v18 = vrot.slane %v3421_v50, 9  ;;  %v2981_v39 = vld [vmem:[%s4247_s1 + $0xc8] sm:$0xff] }
  0x3b   : > { %975 = vmatpush.bf16.msrb.mxu2 %v2976_v0  ;;  %762 = vmatpush.bf16.msrb.mxu1 %v2960_v1  ;;  %v356_v56 = vor.u32 %v355_v47, %v352_v23  ;;  %v516_v58 = vsel %vm3402_vm2, %v511_v51, %v515_v19  ;;  %v548_v62 = vunpack.c.l.b16 %v506_v55  ;;  %v366_v0 = vor.u32 %v365_v52, %v361_v49  ;;  %v2991_v1 = vld [vmem:[%s4247_s1 + $0x118] sm:$0xff]  ;;  %v2990_v50 = vld [vmem:[%s4247_s1 + $0x110] sm:$0xff]  ;;  %v2956_v47 = vld [vmem:[%s4247_s1] sm:$0xff] }
  0x3c   : > { %1269 = vmatpush.bf16.msrb.mxu0 %v2992_v29  ;;  %v549_v2 = vunpack.c.l.b16 %v516_v58  ;;  %v823_v23 = vrot.slane %v821_v12, 4  ;;  %v824_v25 = vrot.slane %v3438_v8, 5  ;;  %v822_v37 = vsel %vm3619_vm5, %v2574_v18, %v821_v12  ;;  %v3011_v52 = vld [vmem:[%s4247_s1 + $0x1b8] sm:$0xff]  ;;  %v2947_v18 = vld [vmem:[%s3361_s11 + $0xc] sm:$0xff] }
  0x3d   : > { %1111 = vmatpush.bf16.msrb.mxu3 %v2984_v28  ;;  %v357_v3 = vrot.slane %v356_v56, 4  ;;  %v367_v16 = vrot.slane %v366_v0, 4  ;;  %v2982_v28 = vld [vmem:[%s4247_s1 + $0xd0] sm:$0xff]  ;;  %v3003_v55 = vld [vmem:[%s4247_s1 + $0x178] sm:$0xff]  ;;  %v2980_v56 = vld [vmem:[%s4247_s1 + $0xc0] sm:$0xff]  ;;  %v2576_v12 = vrot.slane %v3364_v4, 9 }
  0x3e   : > { %637 = vmatmul.bf16.gmra.mxu1 %v3580_v46  ;;  %647 = vmatmul.bf16.gmra.mxu2 %v3582_v54  ;;  %v3604_v19 = vpack.c.b16 %v549_v2, %v548_v62  ;;  %v825_v38 = vsel %vm3619_vm5, %v823_v23, %v824_v25  ;;  %v3019_v58 = vld [vmem:[%s4247_s1 + $0x1f8] sm:$0xff]  ;;  %v828_v2 = vrot.slane %v3548_v59, 5  ;;  %v2575_v59 = vrot.slane %v3533_v41, 9 }
  0x3f   : > { %976 = vmatpush.bf16.msrb.mxu2 %v2975_v43  ;;  %763 = vmatpush.bf16.msrb.mxu1 %v2959_v45  ;;  %v362_v21 = vsel %vm3402_vm2, %v357_v3, %v361_v49  ;;  %v372_v63 = vsel %vm3402_vm2, %v367_v16, %v371_v57  ;;  %v2989_v43 = vld [vmem:[%s4247_s1 + $0x108] sm:$0xff]  ;;  %v2972_v45 = vld [vmem:[%s4247_s1 + $0x80] sm:$0xff]  ;;  %v892_v49 = vunpack.c.l.b16 %v822_v37  ;;  %v893_v51 = vunpack.c.l.b16 %v825_v38  ;;  %v3027_v62 = vld [vmem:[%s4247_s1 + $0x238] sm:$0xff] }
  0x40   : > { %v536_v26 = vunpack.c.l.b16 %v362_v21  ;;  %1270 = vmatpush.bf16.msrb.mxu0 %v2991_v1  ;;  %657 = vmatmul.bf16.gmra.mxu3 %v3604_v19  ;;  %v537_v8 = vunpack.c.l.b16 %v372_v63  ;;  %v2988_v57 = vld [vmem:[%s4247_s1 + $0x100] sm:$0xff]  ;;  %v835_v1 = vrot.slane %v3367_v5, 5  ;;  %v3010_v3 = vld [vmem:[%s4247_s1 + $0x1b0] sm:$0xff]  ;;  %v830_v23 = vrot.slane %v828_v2, 4 }
  0x41   : > { %1112 = vmatpush.bf16.msrb.mxu3 %v2983_v44  ;;  %v2946_v44 = vld [vmem:[%s3361_s11] sm:$0xff]  ;;  %v908_v0 = vpack.c.b16 %v893_v51, %v892_v49  ;;  %v3026_v5 = vld [vmem:[%s4247_s1 + $0x230] sm:$0xff]  ;;  %v831_v25 = vrot.slane %v3560_v15, 5  ;;  %v3017_v15 = vld [vmem:[%s4247_s1 + $0x1e8] sm:$0xff] }
  0x42   : > { %v551_v36 = vpack.c.b16 %v537_v8, %v536_v26  ;;  %v837_v16 = vrot.slane %v835_v1, 4  ;;  %v3018_v21 = vld [vmem:[%s4247_s1 + $0x1f0] sm:$0xff]  ;;  %v836_v4 = vsel %vm3619_vm5, %v2576_v12, %v835_v1  ;;  %v3712_v49 = vld [vmem:[%s3361_s11 + $0x18] sm:$0xff]  ;;  %v2578_v12 = vrot.slane %v3377_v11, 9 }
  0x43   : > { %977 = vmatpush.bf16.msrb.mxu2 %v2974_v10  ;;  %764 = vmatpush.bf16.msrb.mxu1 %v2958_v17  ;;  %v3002_v10 = vld [vmem:[%s4247_s1 + $0x170] sm:$0xff]  ;;  %v838_v17 = vrot.slane %v3370_v6, 5  ;;  %v896_v63 = vunpack.c.l.b16 %v836_v4  ;;  %v832_v8 = vsel %vm3619_vm5, %v830_v23, %v831_v25  ;;  %v2999_v1 = vld [vmem:[%s4247_s1 + $0x158] sm:$0xff]  ;;  %v856_v23 = vrot.slane %v3485_v53, 5 }
  0x44   : > { %1271 = vmatpush.bf16.msrb.mxu0 %v2990_v50  ;;  %v829_v50 = vsel %vm3619_vm5, %v2575_v59, %v828_v2  ;;  %v895_v38 = vunpack.c.l.b16 %v832_v8  ;;  %v3023_v2 = vld [vmem:[%s4247_s1 + $0x218] sm:$0xff]  ;;  %v3014_v11 = vld [vmem:[%s4247_s1 + $0x1d0] sm:$0xff] }
  0x45   : > { %1113 = vmatpush.bf16.msrb.mxu3 %v2982_v28  ;;  %627 = vmatmul.bf16.gmra.mxu0 %v551_v36  ;;  %v839_v6 = vsel %vm3619_vm5, %v837_v16, %v838_v17  ;;  %v3009_v28 = vld [vmem:[%s4247_s1 + $0x1a8] sm:$0xff]  ;;  %v894_v37 = vunpack.c.l.b16 %v829_v50  ;;  %v852_v17 = vrot.slane %v3384_v14, 5  ;;  %v2998_v14 = vld [vmem:[%s4247_s1 + $0x150] sm:$0xff]  ;;  %v3784_v25 = vld [vmem:[%s3361_s11 + $0x3c] sm:$0xff] }
  0x46   : > { %v897_v26 = vunpack.c.l.b16 %v839_v6  ;;  %v3022_v59 = vld [vmem:[%s4247_s1 + $0x210] sm:$0xff]  ;;  %v3005_v50 = vld [vmem:[%s4247_s1 + $0x188] sm:$0xff] }
  0x47   : > { %978 = vmatpush.bf16.msrb.mxu2 %v2973_v32  ;;  %765 = vmatpush.bf16.msrb.mxu1 %v2957_v34  ;;  %v3001_v32 = vld [vmem:[%s4247_s1 + $0x168] sm:$0xff] }
  0x48   : > { %1272 = vmatpush.bf16.msrb.mxu0 %v2989_v43  ;;  %v3688_v41 = vpack.c.b16 %v897_v26, %v896_v63  ;;  %v3025_v34 = vld [vmem:[%s4247_s1 + $0x228] sm:$0xff]  ;;  %v2577_v43 = vrot.slane %v3441_v9, 9  ;;  %v2579_v63 = vrot.slane %v3465_v35, 9  ;;  %v858_v26 = vrot.slane %v856_v23, 4 }
  0x49   : > { %1114 = vmatpush.bf16.msrb.mxu3 %v2981_v39  ;;  %v3706_v39 = vpack.c.b16 %v895_v38, %v894_v37  ;;  %v3013_v35 = vld [vmem:[%s4247_s1 + $0x1c8] sm:$0xff]  ;;  %v863_v38 = vrot.slane %v3398_v30, 5 }
  0x4a   : > { %v857_v53 = vsel %vm3619_vm5, %v2579_v63, %v856_v23 }
  0x4b   : > { %979 = vmatpush.bf16.msrb.mxu2 %v2972_v45  ;;  %766 = vmatpush.bf16.msrb.mxu1 %v2956_v47  ;;  %v845_v47 = vrot.slane %v3458_v27, 5  ;;  %v3016_v27 = vld [vmem:[%s4247_s1 + $0x1e0] sm:$0xff] }
  0x4c   : > { %1273 = vmatpush.bf16.msrb.mxu0 %v2988_v57  ;;  %v3000_v57 = vld [vmem:[%s4247_s1 + $0x160] sm:$0xff] }
  0x4d   : > { %1115 = vmatpush.bf16.msrb.mxu3 %v2980_v56 }
  0x4e   : > { %767 = vmatmul.bf16.vlgmr.msrb.gmra.mxu1 %v2946_v44  ;;  %980 = vmatmul.bf16.vlgmr.msrb.gmra.mxu2 %v908_v0  ;;  %v3007_v44 = vld [vmem:[%s4247_s1 + $0x198] sm:$0xff] }
  0x4f   : > { %1544 = vmatpush.bf16.msra.mxu2 %v3011_v52  ;;  %1408 = vmatpush.bf16.msra.mxu1 %v3003_v55  ;;  %v3015_v0 = vld [vmem:[%s4247_s1 + $0x1d8] sm:$0xff] }
  0x50   : > { %1844 = vmatpush.bf16.msra.mxu0 %v3027_v62  ;;  %1116 = vmatmul.bf16.vlgmr.msrb.gmra.mxu3 %v2947_v18  ;;  %v3736_v62 = vld [vmem:[%s3361_s11 + $0x24] sm:$0xff] }
  0x51   : > { %1702 = vmatpush.bf16.msra.mxu3 %v3019_v58  ;;  %v3024_v58 = vld [vmem:[%s4247_s1 + $0x220] sm:$0xff] }
  0x53   : > { %1545 = vmatpush.bf16.msra.mxu2 %v3010_v3  ;;  %1409 = vmatpush.bf16.msra.mxu1 %v3002_v10  ;;  %v849_v3 = vrot.slane %v3381_v13, 5  ;;  %v3756_v10 = vld [vmem:[%s3361_s11 + $0x30] sm:$0xff] }
  0x54   : > { %1845 = vmatpush.bf16.msra.mxu0 %v3026_v5 }
  0x55   : > { %1703 = vmatpush.bf16.msra.mxu3 %v3018_v21  ;;  %1274 = vmatmul.bf16.vlgmr.msrb.gmra.mxu0 %v551_v36  ;;  %v842_v36 = vrot.slane %v3449_v22, 5  ;;  %v3008_v22 = vld [vmem:[%s4247_s1 + $0x1a0] sm:$0xff]  ;;  %v851_v16 = vrot.slane %v849_v3, 4  ;;  %v850_v13 = vsel %vm3619_vm5, %v2578_v12, %v849_v3  ;;  %v870_v12 = vrot.slane %v3523_v33, 5 }
  0x56   : > { %v900_v21 = vunpack.c.l.b16 %v850_v13 }
  0x57   : > { %1546 = vmatpush.bf16.msra.mxu2 %v3009_v28  ;;  %1410 = vmatpush.bf16.msra.mxu1 %v3001_v32  ;;  %v844_v45 = vrot.slane %v842_v36, 4  ;;  %v843_v51 = vsel %vm3619_vm5, %v2577_v43, %v842_v36  ;;  %v853_v5 = vsel %vm3619_vm5, %v851_v16, %v852_v17  ;;  %v859_v28 = vrot.slane %v3492_v61, 5  ;;  %v2997_v61 = vld [vmem:[%s4247_s1 + $0x148] sm:$0xff]  ;;  %v3852_v16 = vld [vmem:[%s3361_s11 + $0x54] sm:$0xff] }
  0x58   : > { %1846 = vmatpush.bf16.msra.mxu0 %v3025_v34  ;;  %v898_v55 = vunpack.c.l.b16 %v843_v51  ;;  %v901_v4 = vunpack.c.l.b16 %v853_v5  ;;  %v3021_v34 = vld [vmem:[%s4247_s1 + $0x208] sm:$0xff]  ;;  %v2580_v43 = vrot.slane %v3388_v20, 9  ;;  %v3004_v51 = vld [vmem:[%s4247_s1 + $0x180] sm:$0xff] }
  0x59   : > { %1704 = vmatpush.bf16.msra.mxu3 %v3017_v15  ;;  %v846_v52 = vsel %vm3619_vm5, %v844_v45, %v845_v47  ;;  %v860_v8 = vsel %vm3619_vm5, %v858_v26, %v859_v28  ;;  %v902_v15 = vunpack.c.l.b16 %v857_v53  ;;  %v3812_v36 = vld [vmem:[%s3361_s11 + $0x48] sm:$0xff]  ;;  %v865_v45 = vrot.slane %v863_v38, 4  ;;  %v3012_v20 = vld [vmem:[%s4247_s1 + $0x1c0] sm:$0xff] }
  0x5a   : > { %v899_v56 = vunpack.c.l.b16 %v846_v52  ;;  %v3780_v6 = vpack.c.b16 %v901_v4, %v900_v21  ;;  %v903_v32 = vunpack.c.l.b16 %v860_v8  ;;  %v866_v47 = vrot.slane %v3412_v42, 5  ;;  %v2996_v42 = vld [vmem:[%s4247_s1 + $0x140] sm:$0xff]  ;;  %v3859_v21 = vld [vmem:[%s3361_s11 + $0x68] sm:$0x1] }
  0x5b   : > { %1547 = vmatpush.bf16.msra.mxu2 %v3008_v22  ;;  %1411 = vmatpush.bf16.msra.mxu1 %v3000_v57  ;;  %v864_v30 = vsel %vm3619_vm5, %v2580_v43, %v863_v38  ;;  %v3834_v22 = vld [vmem:[%s3361_s11 + $0x60] sm:$0xf]  ;;  %v1193_v28 = vshll.u32 %v3859_v21, 16 }
  0x5c   : > { %v3720_v9 = vpack.c.b16 %v899_v56, %v898_v55  ;;  %1847 = vmatpush.bf16.msra.mxu0 %v3024_v58  ;;  %v3808_v37 = vpack.c.b16 %v903_v32, %v902_v15  ;;  %v867_v52 = vsel %vm3619_vm5, %v865_v45, %v866_v47  ;;  %v904_v55 = vunpack.c.l.b16 %v864_v30  ;;  %v3887_v30 = vld [vmem:[%s3361_s11 + $0x60] sm:$0xff] }
  0x5d   : > { %1705 = vmatpush.bf16.msra.mxu3 %v3016_v27  ;;  %v905_v56 = vunpack.c.l.b16 %v867_v52  ;;  %v3837_v27 = vld [vmem:[%s3361_s11 + $0x64] sm:$0xf]  ;;  %v1174_v57 = vshrl.u32 %v3834_v22, 16  ;;  %v1177_v58 = vshll.u32 %v3834_v22, 16  ;;  %v1195_v15 = vrot.slane %v1193_v28, 5 }
  0x5e   : > { %772 = vmatmul.bf16.gmra.mxu1 %v2947_v18  ;;  %985 = vmatmul.bf16.gmra.mxu2 %v3706_v39  ;;  %v3006_v18 = vld [vmem:[%s4247_s1 + $0x190] sm:$0xff] }
  0x5f   : > { %1548 = vmatpush.bf16.msra.mxu2 %v3007_v44  ;;  %1412 = vmatpush.bf16.msra.mxu1 %v2999_v1  ;;  %v3841_v44 = vpack.c.b16 %v905_v56, %v904_v55  ;;  %v1187_v1 = vshrl.u32 %v3837_v27, 16  ;;  %v1176_v17 = vrot.slane %v1174_v57, 4 }
  0x60   : > { %1121 = vmatmul.bf16.gmra.mxu3 %v3712_v49  ;;  %1848 = vmatpush.bf16.msra.mxu0 %v3023_v2  ;;  %v3020_v2 = vld [vmem:[%s4247_s1 + $0x200] sm:$0xff] }
  0x61   : > { %1706 = vmatpush.bf16.msra.mxu3 %v3015_v0  ;;  %v1183_v0 = vshll.u32 %v3837_v27, 16  ;;  %v1189_v5 = vrot.slane %v1187_v1, 4 }
  0x63   : > { %1549 = vmatpush.bf16.msra.mxu2 %v3006_v18  ;;  %1413 = vmatpush.bf16.msra.mxu1 %v2998_v14  ;;  %v1179_v18 = vrot.slane %v1177_v58, 5  ;;  %v1185_v13 = vrot.slane %v1183_v0, 5  ;;  %v872_v14 = vrot.slane %v870_v12, 4 }
  0x64   : > { %1849 = vmatpush.bf16.msra.mxu0 %v3022_v59  ;;  %v873_v59 = vrot.slane %v3530_v40, 5 }
  0x65   : > { %1279 = vmatmul.bf16.gmra.mxu0 %v3427_v60  ;;  %1707 = vmatpush.bf16.msra.mxu3 %v3014_v11  ;;  %v2581_v11 = vrot.slane %v3501_v7, 9  ;;  %v1180_v23 = vor.u32 %v1179_v18, %v1176_v17  ;;  %v1190_v26 = vor.u32 %v1189_v5, %v1185_v13 }
  0x66   : > { %v874_v40 = vsel %vm3619_vm5, %v872_v14, %v873_v59 }
  0x67   : > { %1550 = vmatpush.bf16.msra.mxu2 %v3005_v50  ;;  %1414 = vmatpush.bf16.msra.mxu1 %v2997_v61  ;;  %v871_v7 = vsel %vm3619_vm5, %v2581_v11, %v870_v12  ;;  %v1181_v53 = vrot.slane %v1180_v23, 4  ;;  %v1191_v61 = vrot.slane %v1190_v26, 4 }
  0x68   : > { %1850 = vmatpush.bf16.msra.mxu0 %v3021_v34  ;;  %v906_v8 = vunpack.c.l.b16 %v871_v7 }
  0x69   : > { %1708 = vmatpush.bf16.msra.mxu3 %v3013_v35  ;;  %v907_v35 = vunpack.c.l.b16 %v874_v40  ;;  %v1186_v45 = vsel %vm3402_vm2, %v1181_v53, %v1185_v13  ;;  %v1196_v47 = vsel %vm3402_vm2, %v1191_v61, %v1195_v15 }
  0x6a   : > { %v1214_v52 = vunpack.c.l.b16 %v1186_v45 }
  0x6b   : > { %1551 = vmatpush.bf16.msra.mxu2 %v3004_v51  ;;  %1415 = vmatpush.bf16.msra.mxu1 %v2996_v42  ;;  %v3878_v43 = vpack.c.b16 %v907_v35, %v906_v8 }
  0x6c   : > { %1851 = vmatpush.bf16.msra.mxu0 %v3020_v2 }
  0x6d   : > { %1709 = vmatpush.bf16.msra.mxu3 %v3012_v20  ;;  %v1215_v20 = vunpack.c.l.b16 %v1196_v47 }
  0x6e   : > { %777 = vmatmul.bf16.gmra.mxu1 %v3712_v49  ;;  %990 = vmatmul.bf16.gmra.mxu2 %v3688_v41 }
  0x6f   : > { %v3892_v42 = vpack.c.b16 %v1215_v20, %v1214_v52 }
  0x70   : > { %1126 = vmatmul.bf16.gmra.mxu3 %v3736_v62 }
  0x75   : > { %1284 = vmatmul.bf16.gmra.mxu0 %v3580_v46 }
  0x7e   : > { %782 = vmatmul.bf16.gmra.mxu1 %v3736_v62  ;;  %995 = vmatmul.bf16.gmra.mxu2 %v3720_v9 }
  0x80   : > { %1131 = vmatmul.bf16.gmra.mxu3 %v3756_v10 }
  0x85   : > { %1289 = vmatmul.bf16.gmra.mxu0 %v3454_v24 }
  0x8e   : > { %787 = vmatmul.bf16.gmra.mxu1 %v3756_v10  ;;  %1000 = vmatmul.bf16.gmra.mxu2 %v3780_v6 }
  0x90   : > { %1136 = vmatmul.bf16.gmra.mxu3 %v3784_v25 }
  0x95   : > { %1294 = vmatmul.bf16.gmra.mxu0 %v3582_v54 }
  0x9e   : > { %792 = vmatmul.bf16.gmra.mxu1 %v3784_v25  ;;  %1005 = vmatmul.bf16.gmra.mxu2 %v3808_v37 }
  0xa0   : > { %1141 = vmatmul.bf16.gmra.mxu3 %v3812_v36 }
  0xa5   : > { %1299 = vmatmul.bf16.gmra.mxu0 %v3478_v48 }
  0xab   : > { %v3848_v3 = vpop.f32.mrf.mxu1 }
  0xae   : > { %797 = vmatmul.bf16.gmra.mxu1 %v3812_v36  ;;  %1010 = vmatmul.bf16.gmra.mxu2 %v3841_v44 }
  0xaf   : > { %v623_v4 = vpop.f32.mrf.mxu0 }
  0xb0   : > { %1146 = vmatmul.bf16.gmra.mxu3 %v3852_v16 }
  0xb1   : > { %v3862_v33 = vpop.f32.mrf.mxu2 }
  0xb3   : > { %v3864_v63 = vpop.f32.mrf.mxu3  ;;  %v3867_v50 = vpop.f32.mrf.mxu1 }
  0xb5   : > { %1304 = vmatmul.bf16.gmra.mxu0 %v3604_v19 }
  0xb7   : > { %v625_v32 = vpop.f32.mrf.mxu0 }
  0xb9   : > { %v3874_v34 = vpop.f32.mrf.mxu2 }
  0xbb   : > { %v3876_v38 = vpop.f32.mrf.mxu3  ;;  %v3884_v51 = vpop.f32.mrf.mxu1 }
  0xbe   : > { %802 = vmatmul.bf16.gmra.mxu1 %v3852_v16  ;;  %1015 = vmatmul.bf16.gmra.mxu2 %v3878_v43 }
  0xc0   : > { %1151 = vmatmul.bf16.gmra.mxu3 %v3887_v30 }
  0xc1   : > { %v3894_v55 = vpop.f32.mrf.mxu2 }
  0xc2   : > { %v628_v56 = vpop.f32.mrf.mxu0 }
  0xc3   : > { %v3896_v57 = vpop.f32.mrf.mxu1  ;;  %v3898_v58 = vpop.f32.mrf.mxu3 }
  0xc5   : > { %1309 = vmatmul.bf16.gmra.mxu0 %v3892_v42 }
  0xc9   : > { %v3901_v0 = vpop.f32.mrf.mxu2 }
  0xca   : > { %v630_v1 = vpop.f32.mrf.mxu0 }
  0xcb   : > { %v768_v2 = vpop.f32.mrf.mxu1  ;;  %v3903_v12 = vpop.f32.mrf.mxu3 }
  0xcc   : > { %v769_v17 = vadd.f32 %v768_v2, %v623_v4 }
  0xce   : > { %1416 = vmatmul.bf16.vlgmr.msra.gmra.mxu1 %v3706_v39  ;;  %1552 = vmatmul.bf16.vlgmr.msra.gmra.mxu2 %v3712_v49 }
  0xd0   : > { %1710 = vmatmul.bf16.vlgmr.msra.gmra.mxu3 %v3427_v60 }
  0xd1   : > { %v981_v18 = vpop.f32.mrf.mxu2 }
  0xd2   : > { %v1275_v13 = vpop.f32.mrf.mxu0  ;;  %v1021_v5 = vadd.f32 %v981_v18, %v769_v17 }
  0xd3   : > { %v770_v11 = vpop.f32.mrf.mxu1  ;;  %v1117_v14 = vpop.f32.mrf.mxu3 }
  0xd4   : > { %v771_v59 = vadd.f32 %v770_v11, %v625_v32  ;;  %v1157_v23 = vadd.f32 %v1117_v14, %v1021_v5 }
  0xd5   : > { %1852 = vmatmul.bf16.vlgmr.msra.gmra.mxu0 %v3688_v41 }
  0xd6   : > { %v3909_v26 = vadd.f32 %v1275_v13, %v1157_v23 }
  0xd9   : > { %v983_v28 = vpop.f32.mrf.mxu2 }
  0xda   : > { %v1277_v7 = vpop.f32.mrf.mxu0  ;;  %v1022_v4 = vadd.f32 %v983_v28, %v771_v59 }
  0xdb   : > { %v773_v40 = vpop.f32.mrf.mxu1  ;;  %v1119_v39 = vpop.f32.mrf.mxu3 }
  0xdc   : > { %v774_v53 = vadd.f32 %v773_v40, %v628_v56  ;;  %v1158_v49 = vadd.f32 %v1119_v39, %v1022_v4 }
  0xde   : > { %1421 = vmatmul.bf16.gmra.mxu1 %v3688_v41  ;;  %1557 = vmatmul.bf16.gmra.mxu2 %v3736_v62  ;;  %v3913_v60 = vadd.f32 %v1277_v7, %v1158_v49 }
  0xe0   : > { %1715 = vmatmul.bf16.gmra.mxu3 %v3580_v46 }
  0xe1   : > { %v986_v8 = vpop.f32.mrf.mxu2 }
  0xe2   : > { %v1280_v35 = vpop.f32.mrf.mxu0  ;;  %v1023_v61 = vadd.f32 %v986_v8, %v774_v53 }
  0xe3   : > { %v775_v15 = vpop.f32.mrf.mxu1  ;;  %v1122_v32 = vpop.f32.mrf.mxu3 }
  0xe4   : > { %v776_v45 = vadd.f32 %v775_v15, %v630_v1  ;;  %v1159_v47 = vadd.f32 %v1122_v32, %v1023_v61 }
  0xe5   : > { %1857 = vmatmul.bf16.gmra.mxu0 %v3720_v9 }
  0xe6   : > { %v3917_v52 = vadd.f32 %v1280_v35, %v1159_v47 }
  0xe9   : > { %v988_v20 = vpop.f32.mrf.mxu2 }
  0xea   : > { %v1282_v56 = vpop.f32.mrf.mxu0  ;;  %v1024_v41 = vadd.f32 %v988_v20, %v776_v45 }
  0xeb   : > { %v778_v2 = vpop.f32.mrf.mxu1  ;;  %v1124_v62 = vpop.f32.mrf.mxu3 }
  0xec   : > { %v779_v17 = vadd.f32 %v778_v2, %v3848_v3  ;;  %v1160_v18 = vadd.f32 %v1124_v62, %v1024_v41 }
  0xee   : > { %1426 = vmatmul.bf16.gmra.mxu1 %v3720_v9  ;;  %1562 = vmatmul.bf16.gmra.mxu2 %v3756_v10  ;;  %v3922_v46 = vadd.f32 %v1282_v56, %v1160_v18 }
  0xf0   : > { %1720 = vmatmul.bf16.gmra.mxu3 %v3454_v24 }
  0xf1   : > { %v991_v1 = vpop.f32.mrf.mxu2 }
  0xf2   : > { %v1285_v13 = vpop.f32.mrf.mxu0  ;;  %v1025_v5 = vadd.f32 %v991_v1, %v779_v17 }
  0xf3   : > { %v780_v11 = vpop.f32.mrf.mxu1  ;;  %v1127_v14 = vpop.f32.mrf.mxu3 }
  0xf4   : > { %v781_v59 = vadd.f32 %v780_v11, %v3867_v50  ;;  %v1161_v23 = vadd.f32 %v1127_v14, %v1025_v5 }
  0xf5   : > { %1862 = vmatmul.bf16.gmra.mxu0 %v3780_v6 }
  0xf6   : > { %v3927_v3 = vadd.f32 %v1285_v13, %v1161_v23 }
  0xf9   : > { %v993_v28 = vpop.f32.mrf.mxu2 }
  0xfa   : > { %v1287_v9 = vpop.f32.mrf.mxu0  ;;  %v1026_v7 = vadd.f32 %v993_v28, %v781_v59 }
  0xfb   : > { %v783_v10 = vpop.f32.mrf.mxu1  ;;  %v1129_v4 = vpop.f32.mrf.mxu3 }
  0xfc   : > { %v784_v40 = vadd.f32 %v783_v10, %v3884_v51  ;;  %v1162_v24 = vadd.f32 %v1129_v4, %v1026_v7  ;;  %v3957_v7 = vld [vmem:[%s3361_s11 + $0x6c] sm:$0xf]  ;;  %v3960_v4 = vld [vmem:[%s3361_s11 + $0x70] sm:$0xf] }
  0xfe   : > { %1431 = vmatmul.bf16.gmra.mxu1 %v3780_v6  ;;  %1567 = vmatmul.bf16.gmra.mxu2 %v3784_v25  ;;  %v3932_v39 = vadd.f32 %v1287_v9, %v1162_v24  ;;  %v1334_v9 = vrot.slane %v3837_v27, 5  ;;  %v1619_v27 = vshll.u32 %v3960_v4, 16 }
 0x100   : > { %1725 = vmatmul.bf16.gmra.mxu3 %v3582_v54  ;;  %v1336_v24 = vrot.slane %v1334_v9, 4 }
 0x101   : > { %v996_v50 = vpop.f32.mrf.mxu2 }
 0x102   : > { %v1290_v53 = vpop.f32.mrf.mxu0  ;;  %v1027_v49 = vadd.f32 %v996_v50, %v784_v40  ;;  %v1337_v50 = vrot.slane %v3859_v21, 5  ;;  %v1621_v21 = vrot.slane %v1619_v27, 5 }
 0x103   : > { %v785_v8 = vpop.f32.mrf.mxu1  ;;  %v1132_v35 = vpop.f32.mrf.mxu3 }
 0x104   : > { %v786_v61 = vadd.f32 %v785_v8, %v3896_v57  ;;  %v1163_v15 = vadd.f32 %v1132_v35, %v1027_v49 }
 0x105   : > { %1867 = vmatmul.bf16.gmra.mxu0 %v3808_v37 }
 0x106   : > { %v3937_v51 = vadd.f32 %v1290_v53, %v1163_v15  ;;  %v1623_v53 = vshrl.u32 %v3960_v4, 16 }
 0x109   : > { %v998_v32 = vpop.f32.mrf.mxu2 }
 0x10a   : > { %v1292_v6 = vpop.f32.mrf.mxu0  ;;  %v1028_v45 = vadd.f32 %v998_v32, %v786_v61 }
 0x10b   : > { %v788_v25 = vpop.f32.mrf.mxu1  ;;  %v1134_v47 = vpop.f32.mrf.mxu3 }
 0x10c   : > { %v1164_v20 = vadd.f32 %v1134_v47, %v1028_v45  ;;  %v789_v56 = vadd.f32 %v788_v25, %v3862_v33  ;;  %v1338_v45 = vsel %vm3619_vm5, %v1336_v24, %v1337_v50  ;;  %v1625_v25 = vrot.slane %v1623_v53, 4  ;;  %v2955_v50 = vld [vmem:[%s3361_s11 + $0x6c] sm:$0xff] }
 0x10e   : > { %1436 = vmatmul.bf16.gmra.mxu1 %v3808_v37  ;;  %1572 = vmatmul.bf16.gmra.mxu2 %v3812_v36  ;;  %v3941_v54 = vadd.f32 %v1292_v6, %v1164_v20  ;;  %v305_v20 = vld [vmem:[%s3361_s11 + $0x74] sm:$0x1] }
 0x110   : > { %1730 = vmatmul.bf16.gmra.mxu3 %v3478_v48 }
 0x111   : > { %v1001_v57 = vpop.f32.mrf.mxu2 }
 0x112   : > { %v1295_v41 = vpop.f32.mrf.mxu0  ;;  %v1029_v2 = vadd.f32 %v1001_v57, %v789_v56 }
 0x113   : > { %v790_v62 = vpop.f32.mrf.mxu1  ;;  %v1137_v17 = vpop.f32.mrf.mxu3 }
 0x114   : > { %v1165_v18 = vadd.f32 %v1137_v17, %v1029_v2  ;;  %v791_v37 = vadd.f32 %v790_v62, %v3874_v34  ;;  %v1357_v2 = vunpack.c.l.b16 %v1338_v45  ;;  %v1626_v62 = vor.u32 %v1625_v25, %v1621_v21 }
 0x115   : > { %1872 = vmatmul.bf16.gmra.mxu0 %v3841_v44  ;;  %v1629_v17 = vshll.u32 %v305_v20, 16 }
 0x116   : > { %v3946_v1 = vadd.f32 %v1295_v41, %v1165_v18 }
 0x119   : > { %v1003_v36 = vpop.f32.mrf.mxu2 }
 0x11a   : > { %v1297_v13 = vpop.f32.mrf.mxu0  ;;  %v1030_v5 = vadd.f32 %v1003_v36, %v791_v37 }
 0x11b   : > { %v793_v33 = vpop.f32.mrf.mxu1  ;;  %v1139_v11 = vpop.f32.mrf.mxu3 }
 0x11c   : > { %v1166_v48 = vadd.f32 %v1139_v11, %v1030_v5  ;;  %v794_v59 = vadd.f32 %v793_v33, %v3894_v55  ;;  %v1610_v55 = vshrl.u32 %v3957_v7, 16 }
 0x11e   : > { %1441 = vmatmul.bf16.gmra.mxu1 %v3841_v44  ;;  %1577 = vmatmul.bf16.gmra.mxu2 %v3852_v16  ;;  %v3951_v14 = vadd.f32 %v1297_v13, %v1166_v48  ;;  %v2730_v16 = vrot.slane %v3834_v22, 9  ;;  %v1612_v61 = vrot.slane %v1610_v55, 4  ;;  %v1627_v48 = vrot.slane %v1626_v62, 4 }
 0x120   : > { %1735 = vmatmul.bf16.gmra.mxu3 %v3604_v19  ;;  %v1613_v19 = vshll.u32 %v3957_v7, 16  ;;  %v1335_v22 = vsel %vm3619_vm5, %v2730_v16, %v1334_v9 }
 0x121   : > { %v1006_v23 = vpop.f32.mrf.mxu2  ;;  %v1356_v41 = vunpack.c.l.b16 %v1335_v22 }
 0x122   : > { %v1300_v34 = vpop.f32.mrf.mxu0  ;;  %v1031_v28 = vadd.f32 %v1006_v23, %v794_v59  ;;  %v1615_v15 = vrot.slane %v1613_v19, 5  ;;  %v1631_v59 = vrot.slane %v1629_v17, 5  ;;  %v1770_v23 = vrot.slane %v3960_v4, 5 }
 0x123   : > { %v795_v10 = vpop.f32.mrf.mxu1  ;;  %v1142_v40 = vpop.f32.mrf.mxu3  ;;  %v1358_v36 = vpack.c.b16 %v1357_v2, %v1356_v41 }
 0x124   : > { %v1167_v44 = vadd.f32 %v1142_v40, %v1031_v28  ;;  %v796_v8 = vadd.f32 %v795_v10, %v3901_v0  ;;  %v1616_v0 = vor.u32 %v1615_v15, %v1612_v61  ;;  %v1772_v9 = vrot.slane %v1770_v23, 4 }
 0x125   : > { %1877 = vmatmul.bf16.gmra.mxu0 %v3878_v43  ;;  %v1773_v10 = vrot.slane %v305_v20, 5 }
 0x126   : > { %v3969_v49 = vadd.f32 %v1300_v34, %v1167_v44  ;;  %v1617_v5 = vrot.slane %v1616_v0, 4 }
 0x127   : > { %v1774_v31 = vsel %vm3619_vm5, %v1772_v9, %v1773_v10 }
 0x128   : > { %v1622_v28 = vsel %vm3402_vm2, %v1617_v5, %v1621_v21  ;;  %v1793_v61 = vunpack.c.l.b16 %v1774_v31 }
 0x129   : > { %v1008_v35 = vpop.f32.mrf.mxu2  ;;  %v1650_v16 = vunpack.c.l.b16 %v1622_v28 }
 0x12a   : > { %v1302_v32 = vpop.f32.mrf.mxu0  ;;  %v1032_v6 = vadd.f32 %v1008_v35, %v796_v8 }
 0x12b   : > { %v798_v47 = vpop.f32.mrf.mxu1  ;;  %v1144_v56 = vpop.f32.mrf.mxu3 }
 0x12c   : > { %v1168_v57 = vadd.f32 %v1144_v56, %v1032_v6  ;;  %v799_v37 = vadd.f32 %v798_v47, %v3864_v63  ;;  %v1632_v63 = vsel %vm3402_vm2, %v1627_v48, %v1631_v59 }
 0x12d   : > { %v1651_v55 = vunpack.c.l.b16 %v1632_v63 }
 0x12e   : > { %1446 = vmatmul.bf16.gmra.mxu1 %v3878_v43  ;;  %1582 = vmatmul.bf16.gmra.mxu2 %v3887_v30  ;;  %v3979_v18 = vadd.f32 %v1302_v32, %v1168_v57 }
 0x12f   : > { %v1652_v35 = vpack.c.b16 %v1651_v55, %v1650_v16 }
 0x130   : > { %1740 = vmatmul.bf16.gmra.mxu3 %v3892_v42  ;;  %v2879_v42 = vrot.slane %v3957_v7, 9 }
 0x131   : > { %v1011_v13 = vpop.f32.mrf.mxu2 }
 0x132   : > { %v1305_v33 = vpop.f32.mrf.mxu0  ;;  %v1033_v11 = vadd.f32 %v1011_v13, %v799_v37  ;;  %v1771_v27 = vsel %vm3619_vm5, %v2879_v42, %v1770_v23 }
 0x133   : > { %v800_v43 = vpop.f32.mrf.mxu1  ;;  %v1147_v30 = vpop.f32.mrf.mxu3  ;;  %v1792_v22 = vunpack.c.l.b16 %v1771_v27 }
 0x134   : > { %v1169_v34 = vadd.f32 %v1147_v30, %v1033_v11  ;;  %v801_v44 = vadd.f32 %v800_v43, %v3876_v38 }
 0x135   : > { %1882 = vmatmul.bf16.gmra.mxu0 %v1358_v36  ;;  %v1794_v32 = vpack.c.b16 %v1793_v61, %v1792_v22 }
 0x136   : > { %v3989_v40 = vadd.f32 %v1305_v33, %v1169_v34 }
 0x139   : > { %v1013_v4 = vpop.f32.mrf.mxu2 }
 0x13a   : > { %v1307_v19 = vpop.f32.mrf.mxu0  ;;  %v1034_v24 = vadd.f32 %v1013_v4, %v801_v44 }
 0x13b   : > { %v803_v53 = vpop.f32.mrf.mxu1  ;;  %v1149_v7 = vpop.f32.mrf.mxu3 }
 0x13c   : > { %v1170_v8 = vadd.f32 %v1149_v7, %v1034_v24  ;;  %v804_v15 = vadd.f32 %v803_v53, %v3898_v58  ;;  %v1909_v58 = vld [vmem:[%s4248_s2] sm:$0x1] }
 0x13d   : > { %v1910_v5 = vunpack.c.l.bf16 %v1909_v58 }
 0x13e   : > { %1451 = vmatmul.bf16.gmra.mxu1 %v1358_v36  ;;  %1587 = vmatmul.bf16.gmra.mxu2 %v2955_v50  ;;  %v3997_v38 = vadd.f32 %v1307_v19, %v1170_v8 }
 0x13f   : > { %v4009_v23 = vperm.slane %v1910_v5, 0 }
 0x140   : > { %1745 = vmatmul.bf16.gmra.mxu3 %v1652_v35 }
 0x141   : > { %v1016_v6 = vpop.f32.mrf.mxu2 }
 0x142   : > { %v1310_v45 = vpop.f32.mrf.mxu0  ;;  %v1035_v21 = vadd.f32 %v1016_v6, %v804_v15 }
 0x143   : > { %v805_v25 = vpop.f32.mrf.mxu1  ;;  %v1152_v29 = vpop.f32.mrf.mxu3 }
 0x144   : > { %v1171_v47 = vadd.f32 %v1152_v29, %v1035_v21  ;;  %v806_v56 = vadd.f32 %v805_v25, %v3903_v12 }
 0x145   : > { %1887 = vmatmul.bf16.gmra.mxu0 %v1794_v32 }
 0x146   : > { %v4000_v20 = vadd.f32 %v1310_v45, %v1171_v47 }
 0x149   : > { %v1018_v57 = vpop.f32.mrf.mxu2 }
 0x14a   : > { %v1312_v41 = vpop.f32.mrf.mxu0  ;;  %v1036_v2 = vadd.f32 %v1018_v57, %v806_v56 }
 0x14b   : > { %v1417_v0 = vpop.f32.mrf.mxu1  ;;  %v1154_v62 = vpop.f32.mrf.mxu3 }
 0x14c   : > { %v1172_v17 = vadd.f32 %v1154_v62, %v1036_v2  ;;  %v1457_v36 = vadd.f32 %v1417_v0, %v3909_v26 }
 0x14e   : > { %v4006_v37 = vadd.f32 %v1312_v41, %v1172_v17 }
 0x151   : > { %v1553_v13 = vpop.f32.mrf.mxu2 }
 0x152   : > { %v1853_v33 = vpop.f32.mrf.mxu0  ;;  %v1593_v11 = vadd.f32 %v1553_v13, %v1457_v36 }
 0x153   : > { %v1419_v48 = vpop.f32.mrf.mxu1  ;;  %v1711_v12 = vpop.f32.mrf.mxu3 }
 0x154   : > { %v1751_v59 = vadd.f32 %v1711_v12, %v1593_v11  ;;  %v1458_v30 = vadd.f32 %v1419_v48, %v3913_v60 }
 0x156   : > { %v1893_v43 = vadd.f32 %v1853_v33, %v1751_v59 }
 0x158   : > { %v4013_v34 = vadd.f32 %v4009_v23, %v1893_v43 }
 0x159   : > { %v1555_v28 = vpop.f32.mrf.mxu2 }
 0x15a   : > { %v1855_v63 = vpop.f32.mrf.mxu0  ;;  %v1594_v42 = vadd.f32 %v1555_v28, %v1458_v30  ;;  %v2928_v26 = vmul.f32 -1.442695, %v4013_v34 }
 0x15b   : > { %v1422_v9 = vpop.f32.mrf.mxu1  ;;  %v1713_v10 = vpop.f32.mrf.mxu3 }
 0x15c   : > { %3180 = vpow2.f32 %v2928_v26  ;;  %v1752_v44 = vadd.f32 %v1713_v10, %v1594_v42  ;;  %v1459_v16 = vadd.f32 %v1422_v9, %v3917_v52 }
 0x15e   : > { %v1894_v4 = vadd.f32 %v1855_v63, %v1752_v44  ;;  %v3029_v63 = vld [vmem:[%s4041_s9] sm:$0xff]  }
 0x160   : > { %v4019_v55 = vadd.f32 %v4009_v23, %v1894_v4 }
 0x161   : > { %v1558_v60 = vpop.f32.mrf.mxu2 }
 0x162   : > { %v1858_v19 = vpop.f32.mrf.mxu0  ;;  %v1595_v24 = vadd.f32 %v1558_v60, %v1459_v16  ;;  %v3181_v50 = vpop.eup %3180  ;;  %v2929_v27 = vmul.f32 -1.442695, %v4019_v55 }
 0x163   : > { %v1424_v31 = vpop.f32.mrf.mxu1  ;;  %v1976_v53 = vadd.f32 1.0, %v3181_v50  ;;  %v1716_v7 = vpop.f32.mrf.mxu3 }
 0x164   : > { %3182 = vpow2.f32 %v2929_v27  ;;  %v1753_v8 = vadd.f32 %v1716_v7, %v1595_v24  ;;  %v1460_v52 = vadd.f32 %v1424_v31, %v3922_v46  ;;  %v3030_v24 = vunpack.c.l.bf16 %v3029_v63 }
 0x165   : > { %3184 = vrcp.f32 %v1976_v53  ;;  %v2003_v12 = vand.u32 2147483648, %v1976_v53  ;;  %vm1997_vm7 = vweird.f32 %v1976_v53  ;;  %v2001_v43 = vand.u32 2147483647, %v1976_v53 }
 0x166   : > { %v1895_v35 = vadd.f32 %v1858_v19, %v1753_v8  ;;  %v3031_v7 = vunpack.c.h.bf16 %v3029_v63 }
 0x167   : > { %v2004_v9 = vor.u32 1.1754944e-38, %v2003_v12  ;;  %vm2002_vm9 = vcmp.eq.f32.partialorder %v2001_v43, 8.507059e+37 }
 0x168   : > { %v4024_v22 = vadd.f32 %v4009_v23, %v1895_v35 }
 0x169   : > { %v1560_v61 = vpop.f32.mrf.mxu2 }
 0x16a   : > { %v1860_v15 = vpop.f32.mrf.mxu0  ;;  %v1596_v32 = vadd.f32 %v1560_v61, %v1460_v52  ;;  %v3183_v6 = vpop.eup %3182  ;;  %v2930_v45 = vmul.f32 -1.442695, %v4024_v22 }
 0x16b   : > { %v1427_v21 = vpop.f32.mrf.mxu1  ;;  %v3185_v25 = vpop.eup %3184  ;;  %v1977_v29 = vadd.f32 1.0, %v3183_v6 }
 0x16c   : > { %v1718_v47 = vpop.f32.mrf.mxu3  ;;  %v1993_v56 = vmul.f32 %v3185_v25, %v1976_v53  ;;  %3186 = vpow2.f32 %v2930_v45  ;;  %v1461_v62 = vadd.f32 %v1427_v21, %v3927_v3  ;;  %vm1998_vm6 = vweird.f32 %v3185_v25 }
 0x16d   : > { %v1754_v57 = vadd.f32 %v1718_v47, %v1596_v32  ;;  %3188 = vrcp.f32 %v1977_v29  ;;  %vm1999_vm8 = vmor %vm1997_vm7, %vm1998_vm6  ;;  %v2016_v10 = vand.u32 2147483647, %v1977_v29  ;;  %v2018_v44 = vand.u32 2147483648, %v1977_v29 }
 0x16e   : > { %v1994_v46 = vsub.f32 1.0, %v1993_v56  ;;  %vm2012_vm11 = vweird.f32 %v1977_v29 }
 0x16f   : > { %v1896_v41 = vadd.f32 %v1860_v15, %v1754_v57  ;;  %vm2017_vm13 = vcmp.eq.f32.partialorder %v2016_v10, 8.507059e+37  ;;  %v2019_v61 = vor.u32 1.1754944e-38, %v2018_v44 }
 0x170   : > { %v1995_v2 = vmul.f32 %v3185_v25, %v1994_v46 }
 0x171   : > { %v4032_v0 = vadd.f32 %v4009_v23, %v1896_v41  ;;  %v1563_v17 = vpop.f32.mrf.mxu2 }
 0x172   : > { %v1863_v58 = vpop.f32.mrf.mxu0  ;;  %v3187_v36 = vpop.eup %3186  ;;  %v1996_v13 = vadd.f32 %v3185_v25, %v1995_v2  ;;  %v1597_v33 = vadd.f32 %v1563_v17, %v1461_v62 }
 0x173   : > { %v2931_v5 = vmul.f32 -1.442695, %v4032_v0  ;;  %v1429_v11 = vpop.f32.mrf.mxu1  ;;  %v3189_v48 = vpop.eup %3188  ;;  %v4043_v59 = vadd.f32 1.0, %v3187_v36 }
 0x174   : > { %v1721_v3 = vpop.f32.mrf.mxu3  ;;  %v2008_v30 = vmul.f32 %v3189_v48, %v1977_v29  ;;  %v2000_v28 = vsel %vm1999_vm8, %v3185_v25, %v1996_v13  ;;  %vm2013_vm10 = vweird.f32 %v3189_v48  ;;  %v1462_v50 = vadd.f32 %v1429_v11, %v3932_v39 }
 0x175   : > { %3190 = vpow2.f32 %v2931_v5  ;;  %v1755_v26 = vadd.f32 %v1721_v3, %v1597_v33  ;;  %v2005_v19 = vsel %vm2002_vm9, %v2004_v9, %v2000_v28  ;;  %vm2014_vm12 = vmor %vm2012_vm11, %vm2013_vm10  ;;  %vm2027_vm15 = vweird.f32 %v4043_v59 }
 0x176   : > { %3192 = vrcp.f32 %v4043_v59  ;;  %v2009_v42 = vsub.f32 1.0, %v2008_v30  ;;  %v2232_v39 = vmul.f32 %v2005_v19, %v4013_v34  ;;  %v2031_v34 = vand.u32 2147483647, %v4043_v59  ;;  %v3100_v19 = vld [vmem:[%s4041_s9 + $0x8] sm:$0xff]  }
 0x177   : > { %v1897_v16 = vadd.f32 %v1863_v58, %v1755_v26 }
 0x178   : > { %v2010_v4 = vmul.f32 %v3189_v48, %v2009_v42  ;;  %v2280_v41 = vadd.f32 %v3030_v24, %v2232_v39  ;;  %vm2032_vm1 = vcmp.eq.f32.partialorder %v2031_v34, 8.507059e+37 }
 0x179   : > { %v1565_v60 = vpop.f32.mrf.mxu2  ;;  %v4049_v8 = vadd.f32 %v4009_v23, %v1897_v16 }
 0x17a   : > { %v1865_v27 = vpop.f32.mrf.mxu0  ;;  %v2011_v53 = vadd.f32 %v3189_v48, %v2010_v4  ;;  %v1598_v32 = vadd.f32 %v1565_v60, %v1462_v50 }
 0x17b   : > { %v3191_v31 = vpop.eup %3190  ;;  %v1432_v35 = vpop.f32.mrf.mxu1  ;;  %v2932_v25 = vmul.f32 -1.442695, %v4049_v8 }
 0x17c   : > { %v3193_v52 = vpop.eup %3192  ;;  %v4051_v15 = vadd.f32 1.0, %v3191_v31  ;;  %v1723_v6 = vpop.f32.mrf.mxu3  ;;  %v2015_v45 = vsel %vm2014_vm12, %v3189_v48, %v2011_v53  ;;  %v1463_v46 = vadd.f32 %v1432_v35, %v3937_v51  ;;  %v2033_v51 = vand.u32 2147483648, %v4043_v59 }
 0x17d   : > { %v2023_v21 = vmul.f32 %v3193_v52, %v4043_v59  ;;  %v2020_v29 = vsel %vm2017_vm13, %v2019_v61, %v2015_v45  ;;  %v1756_v57 = vadd.f32 %v1723_v6, %v1598_v32  ;;  %vm2028_vm14 = vweird.f32 %v3193_v52 }
 0x17e   : > { %3194 = vrcp.f32 %v4051_v15  ;;  %v2233_v47 = vmul.f32 %v2020_v29, %v4019_v55  ;;  %vm4074_vm0 = vmor %vm2027_vm15, %vm2028_vm14  ;;  %v2034_v26 = vor.u32 1.1754944e-38, %v2033_v51  ;;  %v2046_v10 = vand.u32 2147483647, %v4051_v15 }
 0x17f   : > { %v2024_v56 = vsub.f32 1.0, %v2023_v21  ;;  %3196 = vpow2.f32 %v2932_v25  ;;  %v1898_v55 = vadd.f32 %v1865_v27, %v1756_v57  ;;  %v2048_v4 = vand.u32 2147483648, %v4051_v15 }
 0x180   : > { %v2281_v2 = vadd.f32 %v3031_v7, %v2233_v47  ;;  %vm2042_vm3 = vweird.f32 %v4051_v15  ;;  %v3034_v32 = vunpack.c.l.bf16 %v3100_v19  ;;  %v3035_v6 = vunpack.c.h.bf16 %v3100_v19 }
 0x181   : > { %v2025_v62 = vmul.f32 %v3193_v52, %v2024_v56  ;;  %v1568_v17 = vpop.f32.mrf.mxu2  ;;  %v4070_v48 = vadd.f32 %v4009_v23, %v1898_v55  ;;  %vm2047_vm5 = vcmp.eq.f32.partialorder %v2046_v10, 8.507059e+37 }
 0x182   : > { %v1868_v58 = vpop.f32.mrf.mxu0  ;;  %v1599_v36 = vadd.f32 %v1568_v17, %v1463_v46  ;;  %v3063_v13 = vpack.c.bf16 %v2281_v2, %v2280_v41 }
 0x183   : > { %v2026_v5 = vadd.f32 %v3193_v52, %v2025_v62  ;;  %v1434_v33 = vpop.f32.mrf.mxu1  ;;  %v2933_v42 = vmul.f32 -1.442695, %v4070_v48 }
 0x184   : > { %v3195_v11 = vpop.eup %3194  ;;  %v1726_v12 = vpop.f32.mrf.mxu3  ;;  %3064 = vst [vmem:[%s4064_s13] sm:$0xff] %v3063_v13   ;;  %v1464_v16 = vadd.f32 %v1434_v33, %v3941_v54  ;;  %v2049_v54 = vor.u32 1.1754944e-38, %v2048_v4 }
 0x185   : > { %v3197_v3 = vpop.eup %3196  ;;  %v2038_v30 = vmul.f32 %v3195_v11, %v4051_v15  ;;  %v1757_v28 = vadd.f32 %v1726_v12, %v1599_v36  ;;  %v2030_v63 = vsel %vm4074_vm0, %v3193_v52, %v2026_v5  ;;  %vm2043_vm2 = vweird.f32 %v3195_v11 }
 0x186   : > { %v4081_v59 = vadd.f32 1.0, %v3197_v3  ;;  %v2035_v60 = vsel %vm2032_vm1, %v2034_v26, %v2030_v63  ;;  %vm2044_vm4 = vmor %vm2042_vm3, %vm2043_vm2 }
 0x187   : > { %v2039_v9 = vsub.f32 1.0, %v2038_v30  ;;  %v1899_v44 = vadd.f32 %v1868_v58, %v1757_v28  ;;  %v2234_v61 = vmul.f32 %v2035_v60, %v4024_v22 }
 0x188   : > { %3198 = vrcp.f32 %v4081_v59  ;;  %v2061_v3 = vand.u32 2147483647, %v4081_v59  ;;  %v2063_v28 = vand.u32 2147483648, %v4081_v59  ;;  %vm2057_vm7 = vweird.f32 %v4081_v59 }
 0x189   : > { %v2040_v24 = vmul.f32 %v3195_v11, %v2039_v9  ;;  %3200 = vpow2.f32 %v2933_v42  ;;  %v4090_v50 = vadd.f32 %v4009_v23, %v1899_v44  ;;  %v1570_v27 = vpop.f32.mrf.mxu2  ;;  %v2282_v46 = vadd.f32 %v3034_v32, %v2234_v61  ;;  %v3101_v61 = vld [vmem:[%s4041_s9 + $0x10] sm:$0xff]  }
 0x18a   : > { %v1870_v31 = vpop.f32.mrf.mxu0  ;;  %v1600_v53 = vadd.f32 %v1570_v27, %v1464_v16  ;;  %vm4118_vm9 = vcmp.eq.f32.partialorder %v2061_v3, 8.507059e+37 }
 0x18b   : > { %v2041_v7 = vadd.f32 %v3195_v11, %v2040_v24  ;;  %v2934_v35 = vmul.f32 -1.442695, %v4090_v50  ;;  %v1437_v52 = vpop.f32.mrf.mxu1 }
 0x18c   : > { %v1728_v39 = vpop.f32.mrf.mxu3  ;;  %v1465_v17 = vadd.f32 %v1437_v52, %v3946_v1 }
 0x18d   : > { %v2045_v45 = vsel %vm2044_vm4, %v3195_v11, %v2041_v7  ;;  %3202 = vpow2.f32 %v2934_v35  ;;  %v1758_v21 = vadd.f32 %v1728_v39, %v1600_v53 }
 0x18e   : > { %v3199_v25 = vpop.eup %3198  ;;  %v2050_v29 = vsel %vm2047_vm5, %v2049_v54, %v2045_v45 }
 0x18f   : > { %v3201_v47 = vpop.eup %3200  ;;  %v2235_v15 = vmul.f32 %v2050_v29, %v4032_v0  ;;  %v2053_v56 = vmul.f32 %v3199_v25, %v4081_v59  ;;  %v1900_v57 = vadd.f32 %v1870_v31, %v1758_v21  ;;  %vm2058_vm6 = vweird.f32 %v3199_v25 }
 0x190   : > { %v1981_v22 = vadd.f32 1.0, %v3201_v47  ;;  %vm4114_vm8 = vmor %vm2057_vm7, %vm2058_vm6  ;;  %v2064_v31 = vor.u32 1.1754944e-38, %v2063_v28  ;;  %v3039_v47 = vunpack.c.h.bf16 %v3101_v61  ;;  %v3102_v28 = vld [vmem:[%s4041_s9 + $0x18] sm:$0xff]  }
 0x191   : > { %v2283_v41 = vadd.f32 %v3035_v6, %v2235_v15  ;;  %v2054_v2 = vsub.f32 1.0, %v2053_v56  ;;  %v4099_v62 = vadd.f32 %v4009_v23, %v1900_v57  ;;  %v1573_v34 = vpop.f32.mrf.mxu2 }
 0x192   : > { %3204 = vrcp.f32 %v1981_v22  ;;  %v1873_v55 = vpop.f32.mrf.mxu0  ;;  %v1601_v5 = vadd.f32 %v1573_v34, %v1465_v17  ;;  %v2076_v53 = vand.u32 2147483647, %v1981_v22  ;;  %v2078_v7 = vand.u32 2147483648, %v1981_v22 }
 0x193   : > { %v3203_v58 = vpop.eup %3202  ;;  %v3068_v36 = vpack.c.bf16 %v2283_v41, %v2282_v46  ;;  %v2055_v13 = vmul.f32 %v3199_v25, %v2054_v2  ;;  %v2935_v0 = vmul.f32 -1.442695, %v4099_v62  ;;  %v1439_v51 = vpop.f32.mrf.mxu1  ;;  %vm2072_vm11 = vweird.f32 %v1981_v22 }
 0x194   : > { %v4103_v33 = vadd.f32 1.0, %v3203_v58  ;;  %v1731_v11 = vpop.f32.mrf.mxu3  ;;  %v1466_v26 = vadd.f32 %v1439_v51, %v3951_v14  ;;  %vm2077_vm13 = vcmp.eq.f32.partialorder %v2076_v53, 8.507059e+37  ;;  %v2079_v29 = vor.u32 1.1754944e-38, %v2078_v7 }
 0x195   : > { %3107 = vst [vmem:[%s4064_s13 + $0x8] sm:$0xff] %v3068_v36   ;;  %3206 = vpow2.f32 %v2935_v0  ;;  %v1759_v12 = vadd.f32 %v1731_v11, %v1601_v5  ;;  %v2056_v1 = vadd.f32 %v3199_v25, %v2055_v13 }
 0x196   : > { %3208 = vrcp.f32 %v4103_v33  ;;  %v2091_v36 = vand.u32 2147483647, %v4103_v33  ;;  %v2093_v13 = vand.u32 2147483648, %v4103_v33  ;;  %vm2087_vm15 = vweird.f32 %v4103_v33 }
 0x197   : > { %v1901_v43 = vadd.f32 %v1873_v55, %v1759_v12  ;;  %v2060_v59 = vsel %vm4114_vm8, %v3199_v25, %v2056_v1  ;;  %v3038_v25 = vunpack.c.l.bf16 %v3101_v61 }
 0x198   : > { %v3205_v30 = vpop.eup %3204  ;;  %v2065_v6 = vsel %vm4118_vm9, %v2064_v31, %v2060_v59  ;;  %vm2092_vm1 = vcmp.eq.f32.partialorder %v2091_v36, 8.507059e+37 }
 0x199   : > { %v2068_v63 = vmul.f32 %v3205_v30, %v1981_v22  ;;  %v4111_v42 = vadd.f32 %v4009_v23, %v1901_v43  ;;  %v1575_v9 = vpop.f32.mrf.mxu2  ;;  %vm2073_vm10 = vweird.f32 %v3205_v30  ;;  %v2236_v15 = vmul.f32 %v2065_v6, %v4049_v8 }
 0x19a   : > { %v1875_v4 = vpop.f32.mrf.mxu0  ;;  %v1602_v24 = vadd.f32 %v1575_v9, %v1466_v26  ;;  %vm2074_vm12 = vmor %vm2072_vm11, %vm2073_vm10 }
 0x19b   : > { %v3207_v16 = vpop.eup %3206  ;;  %v2069_v60 = vsub.f32 1.0, %v2068_v63  ;;  %v2936_v19 = vmul.f32 -1.442695, %v4111_v42  ;;  %v1442_v14 = vpop.f32.mrf.mxu1  ;;  %v2284_v12 = vadd.f32 %v3038_v25, %v2236_v15 }
 0x19c   : > { %v3209_v27 = vpop.eup %3208  ;;  %v4125_v35 = vadd.f32 1.0, %v3207_v16  ;;  %v1733_v52 = vpop.f32.mrf.mxu3  ;;  %v1467_v17 = vadd.f32 %v1442_v14, %v3969_v49  ;;  %v3042_v14 = vunpack.c.l.bf16 %v3102_v28 }
 0x19d   : > { %v2070_v32 = vmul.f32 %v3205_v30, %v2069_v60  ;;  %v2083_v54 = vmul.f32 %v3209_v27, %v4103_v33  ;;  %3210 = vpow2.f32 %v2936_v19  ;;  %v1760_v21 = vadd.f32 %v1733_v52, %v1602_v24 }
 0x19e   : > { %3212 = vrcp.f32 %v4125_v35  ;;  %vm2088_vm14 = vweird.f32 %v3209_v27  ;;  %v2094_v33 = vor.u32 1.1754944e-38, %v2093_v13  ;;  %v2108_v63 = vand.u32 2147483648, %v4125_v35 }
 0x19f   : > { %v2071_v39 = vadd.f32 %v3205_v30, %v2070_v32  ;;  %v2084_v45 = vsub.f32 1.0, %v2083_v54  ;;  %v1902_v46 = vadd.f32 %v1875_v4, %v1760_v21  ;;  %vm2089_vm0 = vmor %vm2087_vm15, %vm2088_vm14  ;;  %v2106_v16 = vand.u32 2147483647, %v4125_v35 }
 0x1a0   : > { %vm2102_vm3 = vweird.f32 %v4125_v35  ;;  %v3043_v52 = vunpack.c.h.bf16 %v3102_v28 }
 0x1a1   : > { %v2075_v56 = vsel %vm2074_vm12, %v3205_v30, %v2071_v39  ;;  %v2085_v57 = vmul.f32 %v3209_v27, %v2084_v45  ;;  %v1578_v41 = vpop.f32.mrf.mxu2  ;;  %v4141_v51 = vadd.f32 %v4009_v23, %v1902_v46  ;;  %vm2107_vm5 = vcmp.eq.f32.partialorder %v2106_v16, 8.507059e+37 }
 0x1a2   : > { %v2080_v2 = vsel %vm2077_vm13, %v2079_v29, %v2075_v56  ;;  %v1878_v34 = vpop.f32.mrf.mxu0  ;;  %v1603_v49 = vadd.f32 %v1578_v41, %v1467_v17 }
 0x1a3   : > { %v3211_v55 = vpop.eup %3210  ;;  %v2237_v22 = vmul.f32 %v2080_v2, %v4070_v48  ;;  %v2086_v58 = vadd.f32 %v3209_v27, %v2085_v57  ;;  %v1444_v0 = vpop.f32.mrf.mxu1  ;;  %v2937_v26 = vmul.f32 -1.442695, %v4141_v51 }
 0x1a4   : > { %v3213_v5 = vpop.eup %3212  ;;  %v4138_v8 = vadd.f32 1.0, %v3211_v55  ;;  %v1736_v11 = vpop.f32.mrf.mxu3  ;;  %v1468_v10 = vadd.f32 %v1444_v0, %v3979_v18  ;;  %v2109_v18 = vor.u32 1.1754944e-38, %v2108_v63 }
 0x1a5   : > { %v2285_v48 = vadd.f32 %v3039_v47, %v2237_v22  ;;  %v2098_v3 = vmul.f32 %v3213_v5, %v4125_v35  ;;  %v2090_v1 = vsel %vm2089_vm0, %v3209_v27, %v2086_v58  ;;  %v1761_v9 = vadd.f32 %v1736_v11, %v1603_v49 }
 0x1a6   : > { %3214 = vrcp.f32 %v4138_v8  ;;  %v2095_v44 = vsel %vm2092_vm1, %v2094_v33, %v2090_v1  ;;  %vm2103_vm2 = vweird.f32 %v3213_v5  ;;  %v2123_v0 = vand.u32 2147483648, %v4138_v8 }
 0x1a7   : > { %v3073_v43 = vpack.c.bf16 %v2285_v48, %v2284_v12  ;;  %v2099_v30 = vsub.f32 1.0, %v2098_v3  ;;  %3216 = vpow2.f32 %v2937_v26  ;;  %v1903_v60 = vadd.f32 %v1878_v34, %v1761_v9  ;;  %vm2104_vm4 = vmor %vm2102_vm3, %vm2103_vm2 }
 0x1a8   : > { %v2238_v7 = vmul.f32 %v2095_v44, %v4090_v50  ;;  %vm2117_vm7 = vweird.f32 %v4138_v8 }
 0x1a9   : > { %3108 = vst [vmem:[%s4064_s13 + $0x10] sm:$0xff] %v3073_v43   ;;  %v2100_v4 = vmul.f32 %v3213_v5, %v2099_v30  ;;  %v1580_v59 = vpop.f32.mrf.mxu2  ;;  %v4155_v61 = vadd.f32 %v4009_v23, %v1903_v60  ;;  %v2124_v43 = vor.u32 1.1754944e-38, %v2123_v0 }
 0x1aa   : > { %v1880_v19 = vpop.f32.mrf.mxu0  ;;  %v1604_v24 = vadd.f32 %v1580_v59, %v1468_v10  ;;  %v2286_v47 = vadd.f32 %v3042_v14, %v2238_v7  ;;  %v3103_v10 = vld [vmem:[%s4041_s9 + $0x20] sm:$0xff]  }
 0x1ab   : > { %v2101_v27 = vadd.f32 %v3213_v5, %v2100_v4  ;;  %v1447_v31 = vpop.f32.mrf.mxu1  ;;  %v2938_v21 = vmul.f32 -1.442695, %v4155_v61 }
 0x1ac   : > { %v3215_v53 = vpop.eup %3214  ;;  %v1738_v32 = vpop.f32.mrf.mxu3  ;;  %v1469_v15 = vadd.f32 %v1447_v31, %v3989_v40  ;;  %v3046_v31 = vunpack.c.l.bf16 %v3103_v10 }
 0x1ad   : > { %v2105_v54 = vsel %vm2104_vm4, %v3213_v5, %v2101_v27  ;;  %v2113_v6 = vmul.f32 %v3215_v53, %v4138_v8  ;;  %v1762_v39 = vadd.f32 %v1738_v32, %v1604_v24  ;;  %v3217_v50 = vpop.eup %3216  ;;  %3218 = vpow2.f32 %v2938_v21 }
 0x1ae   : > { %v2110_v45 = vsel %vm2107_vm5, %v2109_v18, %v2105_v54  ;;  %v1985_v46 = vadd.f32 1.0, %v3217_v50  ;;  %vm2118_vm6 = vweird.f32 %v3215_v53  ;;  %v2121_v5 = vand.u32 2147483647, %v4138_v8 }
 0x1af   : > { %v2239_v35 = vmul.f32 %v2110_v45, %v4099_v62  ;;  %v2114_v25 = vsub.f32 1.0, %v2113_v6  ;;  %v1904_v29 = vadd.f32 %v1880_v19, %v1762_v39  ;;  %vm2119_vm8 = vmor %vm2117_vm7, %vm2118_vm6  ;;  %v3047_v32 = vunpack.c.h.bf16 %v3103_v10 }
 0x1b0   : > { %3220 = vrcp.f32 %v1985_v46  ;;  %vm2122_vm9 = vcmp.eq.f32.partialorder %v2121_v5, 8.507059e+37  ;;  %v2138_v59 = vand.u32 2147483648, %v1985_v46  ;;  %v2136_v24 = vand.u32 2147483647, %v1985_v46 }
 0x1b1   : > { %v2287_v56 = vadd.f32 %v3043_v52, %v2239_v35  ;;  %v2115_v57 = vmul.f32 %v3215_v53, %v2114_v25  ;;  %v4162_v41 = vadd.f32 %v4009_v23, %v1904_v29  ;;  %v1583_v2 = vpop.f32.mrf.mxu2  ;;  %vm2132_vm11 = vweird.f32 %v1985_v46 }
 0x1b2   : > { %v1883_v17 = vpop.f32.mrf.mxu0  ;;  %v1605_v34 = vadd.f32 %v1583_v2, %v1469_v15  ;;  %v2139_v52 = vor.u32 1.1754944e-38, %v2138_v59  ;;  %vm2137_vm13 = vcmp.eq.f32.partialorder %v2136_v24, 8.507059e+37 }
 0x1b3   : > { %v3078_v55 = vpack.c.bf16 %v2287_v56, %v2286_v47  ;;  %v1449_v62 = vpop.f32.mrf.mxu1  ;;  %v2939_v22 = vmul.f32 -1.442695, %v4162_v41  ;;  %v2116_v36 = vadd.f32 %v3215_v53, %v2115_v57  ;;  %v3219_v40 = vpop.eup %3218 }
 0x1b4   : > { %v1741_v58 = vpop.f32.mrf.mxu3  ;;  %v4169_v49 = vadd.f32 1.0, %v3219_v40  ;;  %v1470_v3 = vadd.f32 %v1449_v62, %v3997_v38 }
 0x1b5   : > { %3109 = vst [vmem:[%s4064_s13 + $0x18] sm:$0xff] %v3078_v55   ;;  %v1763_v13 = vadd.f32 %v1741_v58, %v1605_v34  ;;  %3222 = vpow2.f32 %v2939_v22  ;;  %v2120_v48 = vsel %vm2119_vm8, %v3215_v53, %v2116_v36 }
 0x1b6   : > { %v3221_v12 = vpop.eup %3220  ;;  %3224 = vrcp.f32 %v4169_v49  ;;  %v2125_v9 = vsel %vm2122_vm9, %v2124_v43, %v2120_v48  ;;  %v2151_v2 = vand.u32 2147483647, %v4169_v49  ;;  %vm2147_vm15 = vweird.f32 %v4169_v49 }
 0x1b7   : > { %v1905_v11 = vadd.f32 %v1883_v17, %v1763_v13  ;;  %v2128_v33 = vmul.f32 %v3221_v12, %v1985_v46  ;;  %vm2133_vm10 = vweird.f32 %v3221_v12  ;;  %v2240_v27 = vmul.f32 %v2125_v9, %v4111_v42 }
 0x1b8   : > { %vm2134_vm12 = vmor %vm2132_vm11, %vm2133_vm10  ;;  %v2153_v17 = vand.u32 2147483648, %v4169_v49  ;;  %vm2152_vm1 = vcmp.eq.f32.partialorder %v2151_v2, 8.507059e+37 }
 0x1b9   : > { %v1585_v1 = vpop.f32.mrf.mxu2  ;;  %v4174_v30 = vadd.f32 %v4009_v23, %v1905_v11  ;;  %v2129_v44 = vsub.f32 1.0, %v2128_v33  ;;  %v2288_v42 = vadd.f32 %v3046_v31, %v2240_v27  ;;  %v3104_v11 = vld [vmem:[%s4041_s9 + $0x28] sm:$0xff]  }
 0x1ba   : > { %v1885_v28 = vpop.f32.mrf.mxu0  ;;  %v1606_v8 = vadd.f32 %v1585_v1, %v1470_v3  ;;  %v2154_v5 = vor.u32 1.1754944e-38, %v2153_v17  ;;  %v3051_v10 = vunpack.c.h.bf16 %v3104_v11 }
 0x1bb   : > { %v1452_v63 = vpop.f32.mrf.mxu1  ;;  %v3223_v26 = vpop.eup %3222  ;;  %v2940_v4 = vmul.f32 -1.442695, %v4174_v30  ;;  %v2130_v19 = vmul.f32 %v3221_v12, %v2129_v44 }
 0x1bc   : > { %v1743_v16 = vpop.f32.mrf.mxu3  ;;  %v4178_v60 = vadd.f32 1.0, %v3223_v26  ;;  %v3225_v14 = vpop.eup %3224  ;;  %v1471_v54 = vadd.f32 %v1452_v63, %v4000_v20 }
 0x1bd   : > { %v1764_v38 = vadd.f32 %v1743_v16, %v1606_v8  ;;  %3226 = vpow2.f32 %v2940_v4  ;;  %v2131_v53 = vadd.f32 %v3221_v12, %v2130_v19  ;;  %v2143_v7 = vmul.f32 %v3225_v14, %v4169_v49 }
 0x1be   : > { %3228 = vrcp.f32 %v4178_v60  ;;  %vm2148_vm14 = vweird.f32 %v3225_v14  ;;  %v2168_v49 = vand.u32 2147483648, %v4178_v60  ;;  %v2166_v1 = vand.u32 2147483647, %v4178_v60 }
 0x1bf   : > { %v1906_v18 = vadd.f32 %v1885_v28, %v1764_v38  ;;  %v2135_v39 = vsel %vm2134_vm12, %v3221_v12, %v2131_v53  ;;  %v2144_v45 = vsub.f32 1.0, %v2143_v7  ;;  %vm4195_vm0 = vmor %vm2147_vm15, %vm2148_vm14  ;;  %v3050_v28 = vunpack.c.l.bf16 %v3104_v11 }
 0x1c0   : > { %v2140_v35 = vsel %vm2137_vm13, %v2139_v52, %v2135_v39  ;;  %vm2162_vm3 = vweird.f32 %v4178_v60  ;;  %v2169_v9 = vor.u32 1.1754944e-38, %v2168_v49  ;;  %vm2167_vm5 = vcmp.eq.f32.partialorder %v2166_v1, 8.507059e+37 }
 0x1c1   : > { %v1588_v6 = vpop.f32.mrf.mxu2  ;;  %v4185_v21 = vadd.f32 %v4009_v23, %v1906_v18  ;;  %v2241_v47 = vmul.f32 %v2140_v35, %v4141_v51  ;;  %v2145_v15 = vmul.f32 %v3225_v14, %v2144_v45 }
 0x1c2   : > { %v1888_v25 = vpop.f32.mrf.mxu0  ;;  %v1607_v29 = vadd.f32 %v1588_v6, %v1471_v54 }
 0x1c3   : > { %v3227_v50 = vpop.eup %3226  ;;  %v2941_v56 = vmul.f32 -1.442695, %v4185_v21  ;;  %v1454_v20 = vpop.f32.mrf.mxu1  ;;  %v2289_v62 = vadd.f32 %v3047_v32, %v2241_v47  ;;  %v2146_v22 = vadd.f32 %v3225_v14, %v2145_v15 }
 0x1c4   : > { %v1746_v57 = vpop.f32.mrf.mxu3  ;;  %v3229_v46 = vpop.eup %3228  ;;  %v4191_v34 = vadd.f32 1.0, %v3227_v50  ;;  %v1472_v36 = vadd.f32 %v1454_v20, %v4006_v37 }
 0x1c5   : > { %v1765_v55 = vadd.f32 %v1746_v57, %v1607_v29  ;;  %v2158_v51 = vmul.f32 %v3229_v46, %v4178_v60  ;;  %v3083_v13 = vpack.c.bf16 %v2289_v62, %v2288_v42  ;;  %v2150_v40 = vsel %vm4195_vm0, %v3225_v14, %v2146_v22 }
 0x1c6   : > { %3230 = vrcp.f32 %v4191_v34  ;;  %vm2163_vm2 = vweird.f32 %v3229_v46  ;;  %v2155_v37 = vsel %vm2152_vm1, %v2154_v5, %v2150_v40  ;;  %vm2177_vm7 = vweird.f32 %v4191_v34 }
 0x1c7   : > { %v2159_v0 = vsub.f32 1.0, %v2158_v51  ;;  %3232 = vpow2.f32 %v2941_v56  ;;  %v1907_v12 = vadd.f32 %v1888_v25, %v1765_v55  ;;  %3110 = vst [vmem:[%s4064_s13 + $0x20] sm:$0xff] %v3083_v13   ;;  %vm2164_vm4 = vmor %vm2162_vm3, %vm2163_vm2  ;;  %v2242_v59 = vmul.f32 %v2155_v37, %v4155_v61  ;;  %v3105_v56 = vld [vmem:[%s4041_s9 + $0x30] sm:$0xff]  }
 0x1c8   : > { %v2181_v35 = vand.u32 2147483647, %v4191_v34  ;;  %v3054_v62 = vunpack.c.l.bf16 %v3105_v56 }
 0x1c9   : > { %v1590_v48 = vpop.f32.mrf.mxu2  ;;  %v2160_v3 = vmul.f32 %v3229_v46, %v2159_v0  ;;  %v4208_v33 = vadd.f32 %v4009_v23, %v1907_v12  ;;  %v2290_v7 = vadd.f32 %v3050_v28, %v2242_v59 }
 0x1ca   : > { %v1608_v43 = vadd.f32 %v1590_v48, %v1472_v36  ;;  %v1890_v24 = vpop.f32.mrf.mxu0  ;;  %vm2182_vm9 = vcmp.eq.f32.partialorder %v2181_v35, 8.507059e+37  ;;  %v3055_v36 = vunpack.c.h.bf16 %v3105_v56 }
 0x1cb   : > { %v2161_v8 = vadd.f32 %v3229_v46, %v2160_v3  ;;  %v2942_v44 = vmul.f32 -1.442695, %v4208_v33 }
 0x1cc   : > { %v1748_v63 = vpop.f32.mrf.mxu3  ;;  %v3231_v26 = vpop.eup %3230 }
 0x1cd   : > { %v1766_v4 = vadd.f32 %v1748_v63, %v1608_v43  ;;  %v3233_v16 = vpop.eup %3232  ;;  %v2165_v38 = vsel %vm2164_vm4, %v3229_v46, %v2161_v8  ;;  %v2173_v19 = vmul.f32 %v3231_v26, %v4191_v34  ;;  %3234 = vpow2.f32 %v2942_v44 }
 0x1ce   : > { %v2170_v14 = vsel %vm2167_vm5, %v2169_v9, %v2165_v38  ;;  %v1989_v27 = vadd.f32 1.0, %v3233_v16  ;;  %vm2178_vm6 = vweird.f32 %v3231_v26 }
 0x1cf   : > { %v1908_v60 = vadd.f32 %v1890_v24, %v1766_v4  ;;  %v2243_v31 = vmul.f32 %v2170_v14, %v4162_v41  ;;  %v2174_v53 = vsub.f32 1.0, %v2173_v19  ;;  %v2183_v41 = vand.u32 2147483648, %v4191_v34  ;;  %vm2179_vm8 = vmor %vm2177_vm7, %vm2178_vm6 }
 0x1d0   : > { %3236 = vrcp.f32 %v1989_v27  ;;  %v2198_v47 = vand.u32 2147483648, %v1989_v27  ;;  %v2196_v20 = vand.u32 2147483647, %v1989_v27  ;;  %vm2192_vm11 = vweird.f32 %v1989_v27 }
 0x1d1   : > { %v2291_v18 = vadd.f32 %v3051_v10, %v2243_v31  ;;  %v2175_v52 = vmul.f32 %v3231_v26, %v2174_v53  ;;  %v4216_v32 = vadd.f32 %v4009_v23, %v1908_v60  ;;  %v2184_v50 = vor.u32 1.1754944e-38, %v2183_v41 }
 0x1d2   : > { %v2199_v34 = vor.u32 1.1754944e-38, %v2198_v47  ;;  %vm2197_vm13 = vcmp.eq.f32.partialorder %v2196_v20, 8.507059e+37 }
 0x1d3   : > { %v3088_v61 = vpack.c.bf16 %v2291_v18, %v2290_v7  ;;  %v2943_v54 = vmul.f32 -1.442695, %v4216_v32  ;;  %v3235_v6 = vpop.eup %3234  ;;  %v2176_v39 = vadd.f32 %v3231_v26, %v2175_v52 }
 0x1d4   : > { %v1990_v45 = vadd.f32 1.0, %v3235_v6 }
 0x1d5   : > { %3111 = vst [vmem:[%s4064_s13 + $0x28] sm:$0xff] %v3088_v61   ;;  %3238 = vpow2.f32 %v2943_v54  ;;  %v2180_v23 = vsel %vm2179_vm8, %v3231_v26, %v2176_v39 }
 0x1d6   : > { %v3237_v42 = vpop.eup %3236  ;;  %3240 = vrcp.f32 %v1990_v45  ;;  %v2185_v46 = vsel %vm2182_vm9, %v2184_v50, %v2180_v23  ;;  %v2213_v3 = vand.u32 2147483648, %v1990_v45  ;;  %vm2207_vm15 = vweird.f32 %v1990_v45 }
 0x1d7   : > { %v2188_v25 = vmul.f32 %v3237_v42, %v1989_v27  ;;  %vm2193_vm10 = vweird.f32 %v3237_v42  ;;  %v2244_v51 = vmul.f32 %v2185_v46, %v4174_v30  ;;  %v2211_v43 = vand.u32 2147483647, %v1990_v45 }
 0x1d8   : > { %vm2194_vm12 = vmor %vm2192_vm11, %vm2193_vm10  ;;  %v2214_v8 = vor.u32 1.1754944e-38, %v2213_v3 }
 0x1d9   : > { %v2189_v29 = vsub.f32 1.0, %v2188_v25  ;;  %v2292_v11 = vadd.f32 %v3054_v62, %v2244_v51  ;;  %vm2212_vm1 = vcmp.eq.f32.partialorder %v2211_v43, 8.507059e+37 }
 0x1db   : > { %v3239_v15 = vpop.eup %3238  ;;  %v2190_v57 = vmul.f32 %v3237_v42, %v2189_v29 }
 0x1dc   : > { %v1991_v2 = vadd.f32 1.0, %v3239_v15  ;;  %v3241_v17 = vpop.eup %3240 }
 0x1dd   : > { %v2191_v55 = vadd.f32 %v3237_v42, %v2190_v57  ;;  %v2203_v22 = vmul.f32 %v3241_v17, %v1990_v45  ;;  %vm2208_vm14 = vweird.f32 %v3241_v17 }
 0x1de   : > { %3242 = vrcp.f32 %v1991_v2  ;;  %vm2209_vm0 = vmor %vm2207_vm15, %vm2208_vm14  ;;  %v2228_v63 = vand.u32 2147483648, %v1991_v2  ;;  %v2226_v9 = vand.u32 2147483647, %v1991_v2  ;;  %vm2222_vm3 = vweird.f32 %v1991_v2 }
 0x1df   : > { %v2195_v58 = vsel %vm2194_vm12, %v3237_v42, %v2191_v55  ;;  %v2204_v40 = vsub.f32 1.0, %v2203_v22 }
 0x1e0   : > { %v2200_v13 = vsel %vm2197_vm13, %v2199_v34, %v2195_v58  ;;  %v2229_v16 = vor.u32 1.1754944e-38, %v2228_v63  ;;  %vm2227_vm5 = vcmp.eq.f32.partialorder %v2226_v9, 8.507059e+37 }
 0x1e1   : > { %v2245_v0 = vmul.f32 %v2200_v13, %v4185_v21  ;;  %v2205_v5 = vmul.f32 %v3241_v17, %v2204_v40  ;;  %v3106_v21 = vld [vmem:[%s4041_s9 + $0x38] sm:$0xff]  }
 0x1e2   : > { %v3058_v4 = vunpack.c.l.bf16 %v3106_v21  ;;  %v3059_v19 = vunpack.c.h.bf16 %v3106_v21 }
 0x1e3   : > { %v2293_v49 = vadd.f32 %v3055_v36, %v2245_v0  ;;  %v2206_v48 = vadd.f32 %v3241_v17, %v2205_v5 }
 0x1e4   : > { %v3243_v12 = vpop.eup %3242 }
 0x1e5   : > { %v3093_v1 = vpack.c.bf16 %v2293_v49, %v2292_v11  ;;  %v2218_v30 = vmul.f32 %v3243_v12, %v1991_v2  ;;  %v2210_v37 = vsel %vm2209_vm0, %v3241_v17, %v2206_v48  ;;  %vm2223_vm2 = vweird.f32 %v3243_v12 }
 0x1e6   : > { %v2215_v10 = vsel %vm2212_vm1, %v2214_v8, %v2210_v37  ;;  %vm2224_vm4 = vmor %vm2222_vm3, %vm2223_vm2 }
 0x1e7   : > { %3112 = vst [vmem:[%s4064_s13 + $0x30] sm:$0xff] %v3093_v1   ;;  %v2219_v28 = vsub.f32 1.0, %v2218_v30  ;;  %v2246_v59 = vmul.f32 %v2215_v10, %v4208_v33 }
 0x1e9   : > { %v2220_v26 = vmul.f32 %v3243_v12, %v2219_v28  ;;  %v2294_v27 = vadd.f32 %v3058_v4, %v2246_v59 }
 0x1eb   : > { %v2221_v44 = vadd.f32 %v3243_v12, %v2220_v26 }
 0x1ed   : > { %v2225_v38 = vsel %vm2224_vm4, %v3243_v12, %v2221_v44 }
 0x1ee   : > { %v2230_v24 = vsel %vm2227_vm5, %v2229_v16, %v2225_v38 }
 0x1ef   : > { %v2247_v14 = vmul.f32 %v2230_v24, %v4216_v32 }
 0x1f1   : > { %v2295_v60 = vadd.f32 %v3059_v19, %v2247_v14 }
 0x1f3   : > { %v3098_v31 = vpack.c.bf16 %v2295_v60, %v2294_v27 }
 0x1f5   : > { %3113 = vst [vmem:[%s4064_s13 + $0x38] sm:$0xff] %v3098_v31  }
 0x1f6 PF: > { %s14_s19 = sadd.s32 1, %s3282_s19   ;;  %s4263_s15 = smov %s3274_s17 }
 0x1f7   : > { %p11_p8 = scmp.ge.s32.totalorder %s14_s19, 6   ;;  %s4264_s16 = smov %s3278_s18 }
 0x1f8   : > { %s4265_s17 = smov %s4268_s20  ;;  %s4266_s18 = smov %s4272_s21 }
 0x1f9   :  { %13 = sbr.rel (!%p11_p8) target bundleno = 3 (0x3), region = 77 }

// kernel: hms_hbac_spec_forward.7
= control target key start
LH: loop header
LB: loop body
LE: loop exit
PB: predicated region body
PF: predicated region fallthrough
CT: control target
= control target key end

     0   :  { %8 = vsyncpa [#allocation5], 0  ;;  %s964_s12 = smov 0   ;;  %s966_s13 = smov 0   ;;  %s1172_s0 = inlined_call_operand.vmem [shape: bf16[2,256,256], index: 0, kind: input, shape index: {}]   ;;  %s1173_s1 = inlined_call_operand.vmem [shape: bf16[256,128], index: 1, kind: input, shape index: {}]   ;;  %s1174_s2 = inlined_call_operand.vmem [shape: bf16[1,128], index: 2, kind: input, shape index: {}]   ;;  %s1175_s3 = inlined_call_operand.hbm [shape: bf16[2,128], index: 3, kind: output, shape index: {}]  }
   0x1   :  { %s968_s14 = smov 0  }
   0x2 LB: > { %s980_s15 = sadd.s32 4294967295, %s940_s14   ;;  %s983_s16 = sadd.s32 1, %s940_s14   ;;  %s940_s14 = sphi %s968_s14, %s1178_s14   ;;  %s936_s13 = sphi %s966_s13, %s1177_s13   ;;  %s932_s12 = sphi %s964_s12, %s1176_s12  }
   0x3   : > { %s18_s17 = ssub.s32 %s940_s14, %s983_s16  ;;  %s21_s18 = sadd.s32 1, %s936_s13 }
   0x4   : > { %p19_p0 = scmp.eq.s32.totalorder %s18_s17, 0  ;;  %p28_p1 = scmp.ne.s32.totalorder %s936_s13, %s932_s12 }
   0x5   : > { %p29_p2 = scmp.eq.s32.totalorder %s940_s14, 0  ;;  %p759_p4 = scmp.ge.s32.totalorder %s940_s14, 2 }
   0x6   : > { %s992_s19 = scalar_select %p19_p0, %s936_s13, %s21_s18  }
   0x7   : > { %p30_p3 = por %p29_p2, %p28_p1  ;;  %123 = sbr.rel (%p759_p4) target bundleno = 48 (0x30), region = 24 }
   0xc   : > { %126 = sbr.rel (!%p30_p3) target bundleno = 48 (0x30), region = 28  ;;  %s128_s20 = sand.u32 (%p30_p3), 1, %s936_s13  }
   0xd   : > { %s837_s21 = sshll.u32 (%p30_p3), %s940_s14, 7  ;;  %s760_s22 = sshll.u32 (%p30_p3), %s128_s20, 8 }
   0xe   : > { %s1000_s25 = scalar_lea.vmem (%p30_p3), %s1172_s0, %s837_s21  ;;  %s1005_s26 = scalar_lea.vmem (%p30_p3), [#allocation3], %s760_s22 }
   0xf   : > { %v225_v0 = vld [vmem:[%s1000_s25] sm:$0xff] (%p30_p3)  ;;  %v227_v1 = vld [vmem:[%s1000_s25 + $0x8] sm:$0xff] (%p30_p3)  ;;  %v229_v2 = vld [vmem:[%s1000_s25 + $0x10] sm:$0xff] (%p30_p3) }
  0x10   : > { %226 = vst [vmem:[%s1005_s26] sm:$0xff] (%p30_p3), %v225_v0  ;;  %v231_v3 = vld [vmem:[%s1000_s25 + $0x18] sm:$0xff] (%p30_p3)  ;;  %v233_v4 = vld [vmem:[%s1000_s25 + $0x20] sm:$0xff] (%p30_p3)  ;;  %v235_v5 = vld [vmem:[%s1000_s25 + $0x28] sm:$0xff] (%p30_p3) }
  0x11   : > { %228 = vst [vmem:[%s1005_s26 + $0x8] sm:$0xff] %v227_v1  ;;  %v237_v6 = vld [vmem:[%s1000_s25 + $0x30] sm:$0xff]  ;;  %v239_v7 = vld [vmem:[%s1000_s25 + $0x38] sm:$0xff]  ;;  %v241_v8 = vld [vmem:[%s1000_s25 + $0x40] sm:$0xff] }
  0x12   : > { %230 = vst [vmem:[%s1005_s26 + $0x10] sm:$0xff] %v229_v2  ;;  %v243_v9 = vld [vmem:[%s1000_s25 + $0x48] sm:$0xff]  ;;  %v245_v10 = vld [vmem:[%s1000_s25 + $0x50] sm:$0xff]  ;;  %v247_v11 = vld [vmem:[%s1000_s25 + $0x58] sm:$0xff] }
  0x13   : > { %232 = vst [vmem:[%s1005_s26 + $0x18] sm:$0xff] %v231_v3  ;;  %v249_v12 = vld [vmem:[%s1000_s25 + $0x60] sm:$0xff]  ;;  %v251_v13 = vld [vmem:[%s1000_s25 + $0x68] sm:$0xff]  ;;  %v253_v14 = vld [vmem:[%s1000_s25 + $0x70] sm:$0xff] }
  0x14   : > { %234 = vst [vmem:[%s1005_s26 + $0x20] sm:$0xff] %v233_v4  ;;  %v255_v15 = vld [vmem:[%s1000_s25 + $0x78] sm:$0xff]  ;;  %v257_v16 = vld [vmem:[%s1000_s25 + $0x100] sm:$0xff]  ;;  %v259_v17 = vld [vmem:[%s1000_s25 + $0x108] sm:$0xff] }
  0x15   : > { %236 = vst [vmem:[%s1005_s26 + $0x28] sm:$0xff] %v235_v5  ;;  %v261_v18 = vld [vmem:[%s1000_s25 + $0x110] sm:$0xff]  ;;  %v263_v19 = vld [vmem:[%s1000_s25 + $0x118] sm:$0xff]  ;;  %v265_v20 = vld [vmem:[%s1000_s25 + $0x120] sm:$0xff] }
  0x16   : > { %238 = vst [vmem:[%s1005_s26 + $0x30] sm:$0xff] %v237_v6  ;;  %v267_v21 = vld [vmem:[%s1000_s25 + $0x128] sm:$0xff]  ;;  %v269_v22 = vld [vmem:[%s1000_s25 + $0x130] sm:$0xff]  ;;  %v271_v23 = vld [vmem:[%s1000_s25 + $0x138] sm:$0xff] }
  0x17   : > { %240 = vst [vmem:[%s1005_s26 + $0x38] sm:$0xff] %v239_v7  ;;  %v273_v24 = vld [vmem:[%s1000_s25 + $0x140] sm:$0xff]  ;;  %v275_v25 = vld [vmem:[%s1000_s25 + $0x148] sm:$0xff]  ;;  %v277_v26 = vld [vmem:[%s1000_s25 + $0x150] sm:$0xff] }
  0x18   : > { %242 = vst [vmem:[%s1005_s26 + $0x40] sm:$0xff] %v241_v8  ;;  %v279_v27 = vld [vmem:[%s1000_s25 + $0x158] sm:$0xff]  ;;  %v281_v28 = vld [vmem:[%s1000_s25 + $0x160] sm:$0xff]  ;;  %v283_v29 = vld [vmem:[%s1000_s25 + $0x168] sm:$0xff] }
  0x19   : > { %244 = vst [vmem:[%s1005_s26 + $0x48] sm:$0xff] %v243_v9  ;;  %v285_v30 = vld [vmem:[%s1000_s25 + $0x170] sm:$0xff]  ;;  %v287_v31 = vld [vmem:[%s1000_s25 + $0x178] sm:$0xff] }
  0x1a   : > { %246 = vst [vmem:[%s1005_s26 + $0x50] sm:$0xff] %v245_v10 }
  0x1b   : > { %248 = vst [vmem:[%s1005_s26 + $0x58] sm:$0xff] %v247_v11 }
  0x1c   : > { %250 = vst [vmem:[%s1005_s26 + $0x60] sm:$0xff] %v249_v12 }
  0x1d   : > { %252 = vst [vmem:[%s1005_s26 + $0x68] sm:$0xff] %v251_v13 }
  0x1e   : > { %254 = vst [vmem:[%s1005_s26 + $0x70] sm:$0xff] %v253_v14 }
  0x1f   : > { %256 = vst [vmem:[%s1005_s26 + $0x78] sm:$0xff] %v255_v15 }
  0x20   : > { %258 = vst [vmem:[%s1005_s26 + $0x80] sm:$0xff] %v257_v16 }
  0x21   : > { %260 = vst [vmem:[%s1005_s26 + $0x88] sm:$0xff] %v259_v17 }
  0x22   : > { %262 = vst [vmem:[%s1005_s26 + $0x90] sm:$0xff] %v261_v18 }
  0x23   : > { %264 = vst [vmem:[%s1005_s26 + $0x98] sm:$0xff] %v263_v19 }
  0x24   : > { %266 = vst [vmem:[%s1005_s26 + $0xa0] sm:$0xff] %v265_v20 }
  0x25   : > { %268 = vst [vmem:[%s1005_s26 + $0xa8] sm:$0xff] %v267_v21 }
  0x26   : > { %270 = vst [vmem:[%s1005_s26 + $0xb0] sm:$0xff] %v269_v22 }
  0x27   : > { %272 = vst [vmem:[%s1005_s26 + $0xb8] sm:$0xff] %v271_v23 }
  0x28   : > { %274 = vst [vmem:[%s1005_s26 + $0xc0] sm:$0xff] %v273_v24 }
  0x29   : > { %276 = vst [vmem:[%s1005_s26 + $0xc8] sm:$0xff] %v275_v25 }
  0x2a   : > { %278 = vst [vmem:[%s1005_s26 + $0xd0] sm:$0xff] %v277_v26 }
  0x2b   : > { %280 = vst [vmem:[%s1005_s26 + $0xd8] sm:$0xff] %v279_v27 }
  0x2c   : > { %282 = vst [vmem:[%s1005_s26 + $0xe0] sm:$0xff] %v281_v28 }
  0x2d   : > { %284 = vst [vmem:[%s1005_s26 + $0xe8] sm:$0xff] %v283_v29 }
  0x2e   : > { %286 = vst [vmem:[%s1005_s26 + $0xf0] sm:$0xff] %v285_v30 }
  0x2f   : > { %288 = vst [vmem:[%s1005_s26 + $0xf8] sm:$0xff] %v287_v31 }
  0x30 PF: > { %p764_p5 = scmp.ge.s32.totalorder %s940_s14, 1  ;;  %p293_p6 = scmp.lt.s32.totalorder %s940_s14, 3 }
  0x32   : > { %p294_p7 = pnand %p764_p5, %p293_p6 }
  0x33   : > { %s300_s27 = sand.u32 (!%p294_p7), 1, %s932_s12   ;;  %p766_p8 = scmp.ne.s32.totalorder (!%p294_p7), %s980_s15, 0 }
  0x34   : > { %297 = sbr.rel (%p294_p7) target bundleno = 295 (0x127), region = 66  ;;  %s765_s28 = sshll.u32 (!%p294_p7), %s300_s27, 8 }
  0x35   : > { %s1071_s29 = scalar_lea.vmem (!%p294_p7), [#allocation3], %s765_s28 }
  0x39   : > { %322 = sbr.rel (%p766_p8) target bundleno = 64 (0x40), region = 74 }
  0x3e   : > { %v942_v32 = vmov 0.0  }
  0x3f   : > { %323 = vst [vmem:[#allocation2] sm:$0xf] %v942_v32 }
  0x40 PF: > { %v325_v33 = vld [vmem:[%s1071_s29] sm:$0xff]  ;;  %v326_v34 = vld [vmem:[%s1071_s29 + $0x8] sm:$0xff]  ;;  %v327_v37 = vld [vmem:[%s1071_s29 + $0x10] sm:$0xff]  ;;  %vm511_vm0 = vcmask 1041408   ;;  %vm519_vm1 = vcmask 1041409   ;;  %vm521_vm2 = vcmask 1043459  }
  0x41   : > { %v341_v35 = vld [vmem:[%s1071_s29 + $0x80] sm:$0xff]  ;;  %v342_v36 = vld [vmem:[%s1071_s29 + $0x88] sm:$0xff]  ;;  %v343_v38 = vld [vmem:[%s1071_s29 + $0x90] sm:$0xff]  ;;  %v357_v39 = vunpack.c.l.bf16 %v325_v33  ;;  %v358_v40 = vunpack.c.h.bf16 %v325_v33  ;;  %v359_v41 = vunpack.c.l.bf16 %v326_v34  ;;  %v360_v42 = vunpack.c.h.bf16 %v326_v34  ;;  %p767_p9 = scmp.ne.s32.totalorder %s980_s15, 1 }
  0x42   : > { %v328_v43 = vld [vmem:[%s1071_s29 + $0x18] sm:$0xff]  ;;  %v389_v45 = vunpack.c.l.bf16 %v341_v35  ;;  %v390_v46 = vunpack.c.h.bf16 %v341_v35  ;;  %v391_v47 = vunpack.c.l.bf16 %v342_v36  ;;  %v392_v48 = vunpack.c.h.bf16 %v342_v36  ;;  %v329_v49 = vld [vmem:[%s1071_s29 + $0x20] sm:$0xff]  ;;  %v330_v59 = vld [vmem:[%s1071_s29 + $0x28] sm:$0xff] }
  0x43   : > { %v344_v44 = vld [vmem:[%s1071_s29 + $0x98] sm:$0xff]  ;;  %v345_v50 = vld [vmem:[%s1071_s29 + $0xa0] sm:$0xff]  ;;  %v361_v51 = vunpack.c.l.bf16 %v327_v37  ;;  %v362_v52 = vunpack.c.h.bf16 %v327_v37  ;;  %v393_v53 = vunpack.c.l.bf16 %v343_v38  ;;  %v394_v54 = vunpack.c.h.bf16 %v343_v38  ;;  %v346_v60 = vld [vmem:[%s1071_s29 + $0xa8] sm:$0xff] }
  0x44   : > { %v363_v55 = vunpack.c.l.bf16 %v328_v43  ;;  %v364_v56 = vunpack.c.h.bf16 %v328_v43  ;;  %v395_v57 = vunpack.c.l.bf16 %v344_v44  ;;  %v396_v58 = vunpack.c.h.bf16 %v344_v44  ;;  %v331_v5 = vld [vmem:[%s1071_s29 + $0x30] sm:$0xff]  ;;  %v332_v15 = vld [vmem:[%s1071_s29 + $0x38] sm:$0xff]  ;;  %v333_v25 = vld [vmem:[%s1071_s29 + $0x40] sm:$0xff] }
  0x45   : > { %v421_v61 = vadd.f32 %v359_v41, %v357_v39  ;;  %v442_v62 = vadd.f32 %v360_v42, %v358_v40  ;;  %v463_v63 = vadd.f32 %v391_v47, %v389_v45  ;;  %v484_v0 = vadd.f32 %v392_v48, %v390_v46  ;;  %v347_v6 = vld [vmem:[%s1071_s29 + $0xb0] sm:$0xff]  ;;  %v348_v16 = vld [vmem:[%s1071_s29 + $0xb8] sm:$0xff]  ;;  %v349_v26 = vld [vmem:[%s1071_s29 + $0xc0] sm:$0xff] }
  0x46   : > { %v365_v1 = vunpack.c.l.bf16 %v329_v49  ;;  %v366_v2 = vunpack.c.h.bf16 %v329_v49  ;;  %v397_v3 = vunpack.c.l.bf16 %v345_v50  ;;  %v398_v4 = vunpack.c.h.bf16 %v345_v50  ;;  %v334_v35 = vld [vmem:[%s1071_s29 + $0x48] sm:$0xff]  ;;  %v335_v45 = vld [vmem:[%s1071_s29 + $0x50] sm:$0xff] }
  0x47   : > { %v422_v7 = vadd.f32 %v421_v61, %v361_v51  ;;  %v443_v8 = vadd.f32 %v442_v62, %v362_v52  ;;  %v464_v9 = vadd.f32 %v463_v63, %v393_v53  ;;  %v485_v10 = vadd.f32 %v484_v0, %v394_v54  ;;  %v350_v36 = vld [vmem:[%s1071_s29 + $0xc8] sm:$0xff]  ;;  %v351_v46 = vld [vmem:[%s1071_s29 + $0xd0] sm:$0xff] }
  0x48   : > { %v367_v11 = vunpack.c.l.bf16 %v330_v59  ;;  %v368_v12 = vunpack.c.h.bf16 %v330_v59  ;;  %v399_v13 = vunpack.c.l.bf16 %v346_v60  ;;  %v400_v14 = vunpack.c.h.bf16 %v346_v60 }
  0x49   : > { %v423_v17 = vadd.f32 %v422_v7, %v363_v55  ;;  %v444_v18 = vadd.f32 %v443_v8, %v364_v56  ;;  %v465_v19 = vadd.f32 %v464_v9, %v395_v57  ;;  %v486_v20 = vadd.f32 %v485_v10, %v396_v58  ;;  %v336_v55 = vld [vmem:[%s1071_s29 + $0x58] sm:$0xff] }
  0x4a   : > { %v369_v21 = vunpack.c.l.bf16 %v331_v5  ;;  %v370_v22 = vunpack.c.h.bf16 %v331_v5  ;;  %v401_v23 = vunpack.c.l.bf16 %v347_v6  ;;  %v402_v24 = vunpack.c.h.bf16 %v347_v6  ;;  %v352_v56 = vld [vmem:[%s1071_s29 + $0xd8] sm:$0xff] }
  0x4b   : > { %v424_v27 = vadd.f32 %v423_v17, %v365_v1  ;;  %v445_v28 = vadd.f32 %v444_v18, %v366_v2  ;;  %v466_v29 = vadd.f32 %v465_v19, %v397_v3  ;;  %v487_v30 = vadd.f32 %v486_v20, %v398_v4  ;;  %v337_v1 = vld [vmem:[%s1071_s29 + $0x60] sm:$0xff] }
  0x4c   : > { %v371_v31 = vunpack.c.l.bf16 %v332_v15  ;;  %v372_v32 = vunpack.c.h.bf16 %v332_v15  ;;  %v403_v33 = vunpack.c.l.bf16 %v348_v16  ;;  %v404_v34 = vunpack.c.h.bf16 %v348_v16  ;;  %v353_v2 = vld [vmem:[%s1071_s29 + $0xe0] sm:$0xff] }
  0x4d   : > { %v425_v37 = vadd.f32 %v424_v27, %v367_v11  ;;  %v446_v38 = vadd.f32 %v445_v28, %v368_v12  ;;  %v467_v39 = vadd.f32 %v466_v29, %v399_v13  ;;  %v488_v40 = vadd.f32 %v487_v30, %v400_v14  ;;  %v338_v11 = vld [vmem:[%s1071_s29 + $0x68] sm:$0xff] }
  0x4e   : > { %v373_v41 = vunpack.c.l.bf16 %v333_v25  ;;  %v374_v42 = vunpack.c.h.bf16 %v333_v25  ;;  %v405_v43 = vunpack.c.l.bf16 %v349_v26  ;;  %v406_v44 = vunpack.c.h.bf16 %v349_v26  ;;  %v354_v12 = vld [vmem:[%s1071_s29 + $0xe8] sm:$0xff] }
  0x4f   : > { %v426_v47 = vadd.f32 %v425_v37, %v369_v21  ;;  %v447_v48 = vadd.f32 %v446_v38, %v370_v22  ;;  %v468_v49 = vadd.f32 %v467_v39, %v401_v23  ;;  %v489_v50 = vadd.f32 %v488_v40, %v402_v24  ;;  %v339_v21 = vld [vmem:[%s1071_s29 + $0x70] sm:$0xff] }
  0x50   : > { %v375_v51 = vunpack.c.l.bf16 %v334_v35  ;;  %v376_v52 = vunpack.c.h.bf16 %v334_v35  ;;  %v407_v53 = vunpack.c.l.bf16 %v350_v36  ;;  %v408_v54 = vunpack.c.h.bf16 %v350_v36  ;;  %v355_v22 = vld [vmem:[%s1071_s29 + $0xf0] sm:$0xff] }
  0x51   : > { %v427_v57 = vadd.f32 %v426_v47, %v371_v31  ;;  %v448_v58 = vadd.f32 %v447_v48, %v372_v32  ;;  %v469_v59 = vadd.f32 %v468_v49, %v403_v33  ;;  %v490_v60 = vadd.f32 %v489_v50, %v404_v34  ;;  %v340_v31 = vld [vmem:[%s1071_s29 + $0x78] sm:$0xff] }
  0x52   : > { %v377_v61 = vunpack.c.l.bf16 %v335_v45  ;;  %v378_v62 = vunpack.c.h.bf16 %v335_v45  ;;  %v409_v63 = vunpack.c.l.bf16 %v351_v46  ;;  %v410_v0 = vunpack.c.h.bf16 %v351_v46  ;;  %v356_v32 = vld [vmem:[%s1071_s29 + $0xf8] sm:$0xff] }
  0x53   : > { %v428_v3 = vadd.f32 %v427_v57, %v373_v41  ;;  %v449_v4 = vadd.f32 %v448_v58, %v374_v42  ;;  %v470_v5 = vadd.f32 %v469_v59, %v405_v43  ;;  %v491_v6 = vadd.f32 %v490_v60, %v406_v44 }
  0x54   : > { %v379_v7 = vunpack.c.l.bf16 %v336_v55  ;;  %v380_v8 = vunpack.c.h.bf16 %v336_v55  ;;  %v411_v9 = vunpack.c.l.bf16 %v352_v56  ;;  %v412_v10 = vunpack.c.h.bf16 %v352_v56 }
  0x55   : > { %v429_v13 = vadd.f32 %v428_v3, %v375_v51  ;;  %v450_v14 = vadd.f32 %v449_v4, %v376_v52  ;;  %v471_v15 = vadd.f32 %v470_v5, %v407_v53  ;;  %v492_v16 = vadd.f32 %v491_v6, %v408_v54 }
  0x56   : > { %v381_v17 = vunpack.c.l.bf16 %v337_v1  ;;  %v382_v18 = vunpack.c.h.bf16 %v337_v1  ;;  %v413_v19 = vunpack.c.l.bf16 %v353_v2  ;;  %v414_v20 = vunpack.c.h.bf16 %v353_v2 }
  0x57   : > { %v430_v23 = vadd.f32 %v429_v13, %v377_v61  ;;  %v451_v24 = vadd.f32 %v450_v14, %v378_v62  ;;  %v472_v25 = vadd.f32 %v471_v15, %v409_v63  ;;  %v493_v26 = vadd.f32 %v492_v16, %v410_v0 }
  0x58   : > { %v383_v27 = vunpack.c.l.bf16 %v338_v11  ;;  %v384_v28 = vunpack.c.h.bf16 %v338_v11  ;;  %v415_v29 = vunpack.c.l.bf16 %v354_v12  ;;  %v416_v30 = vunpack.c.h.bf16 %v354_v12 }
  0x59   : > { %v431_v33 = vadd.f32 %v430_v23, %v379_v7  ;;  %v452_v34 = vadd.f32 %v451_v24, %v380_v8  ;;  %v473_v35 = vadd.f32 %v472_v25, %v411_v9  ;;  %v494_v36 = vadd.f32 %v493_v26, %v412_v10 }
  0x5a   : > { %v385_v37 = vunpack.c.l.bf16 %v339_v21  ;;  %v386_v38 = vunpack.c.h.bf16 %v339_v21  ;;  %v417_v39 = vunpack.c.l.bf16 %v355_v22  ;;  %v418_v40 = vunpack.c.h.bf16 %v355_v22 }
  0x5b   : > { %v432_v41 = vadd.f32 %v431_v33, %v381_v17  ;;  %v453_v42 = vadd.f32 %v452_v34, %v382_v18  ;;  %v474_v43 = vadd.f32 %v473_v35, %v413_v19  ;;  %v495_v44 = vadd.f32 %v494_v36, %v414_v20 }
  0x5c   : > { %v387_v45 = vunpack.c.l.bf16 %v340_v31  ;;  %v388_v46 = vunpack.c.h.bf16 %v340_v31  ;;  %v419_v47 = vunpack.c.l.bf16 %v356_v32  ;;  %v420_v48 = vunpack.c.h.bf16 %v356_v32 }
  0x5d   : > { %v433_v49 = vadd.f32 %v432_v41, %v383_v27  ;;  %v454_v50 = vadd.f32 %v453_v42, %v384_v28  ;;  %v475_v51 = vadd.f32 %v474_v43, %v415_v29  ;;  %v496_v52 = vadd.f32 %v495_v44, %v416_v30  ;;  %v324_v27 = vld [vmem:[#allocation2] sm:$0xf] }
  0x5e   : > { %vm523_vm3 = vcmask 1045509   ;;  %vm525_vm4 = vcmask 1047559  }
  0x5f   : > { %v434_v53 = vadd.f32 %v433_v49, %v385_v37  ;;  %v455_v54 = vadd.f32 %v454_v50, %v386_v38  ;;  %v476_v55 = vadd.f32 %v475_v51, %v417_v39  ;;  %v497_v56 = vadd.f32 %v496_v52, %v418_v40 }
  0x61   : > { %v435_v57 = vadd.f32 %v434_v53, %v387_v45  ;;  %v456_v58 = vadd.f32 %v455_v54, %v388_v46  ;;  %v477_v59 = vadd.f32 %v476_v55, %v419_v47  ;;  %v498_v60 = vadd.f32 %v497_v56, %v420_v48 }
  0x63   : > { %v436_v61 = vrot.slane %v435_v57, 4  ;;  %v457_v62 = vrot.slane %v456_v58, 4  ;;  %v478_v63 = vrot.slane %v477_v59, 4  ;;  %v499_v0 = vrot.slane %v498_v60, 4 }
  0x65   : > { %v437_v1 = vadd.f32 %v436_v61, %v435_v57  ;;  %v458_v2 = vadd.f32 %v457_v62, %v456_v58  ;;  %v479_v3 = vadd.f32 %v478_v63, %v477_v59  ;;  %v500_v4 = vadd.f32 %v499_v0, %v498_v60 }
  0x67   : > { %v438_v5 = vrot.slane %v437_v1, 2  ;;  %v459_v6 = vrot.slane %v458_v2, 2  ;;  %v480_v7 = vrot.slane %v479_v3, 2  ;;  %v501_v8 = vrot.slane %v500_v4, 2 }
  0x69   : > { %v439_v9 = vadd.f32 %v438_v5, %v437_v1  ;;  %v460_v10 = vadd.f32 %v459_v6, %v458_v2  ;;  %v481_v11 = vadd.f32 %v480_v7, %v479_v3  ;;  %v502_v12 = vadd.f32 %v501_v8, %v500_v4 }
  0x6b   : > { %v440_v13 = vrot.slane %v439_v9, 1  ;;  %v461_v14 = vrot.slane %v460_v10, 1  ;;  %v482_v15 = vrot.slane %v481_v11, 1  ;;  %v503_v16 = vrot.slane %v502_v12, 1 }
  0x6d   : > { %v441_v17 = vadd.f32 %v440_v13, %v439_v9  ;;  %v462_v18 = vadd.f32 %v461_v14, %v460_v10  ;;  %v483_v19 = vadd.f32 %v482_v15, %v481_v11  ;;  %v504_v20 = vadd.f32 %v503_v16, %v502_v12 }
  0x6f   : > { %v509_v21 = vrot.slane %v462_v18, 6  ;;  %v510_v22 = vrot.slane %v504_v20, 6 }
  0x71   : > { %v512_v23 = vsel %vm511_vm0, %v441_v17, %v509_v21  ;;  %v513_v24 = vsel %vm511_vm0, %v483_v19, %v510_v22 }
  0x72   : > { %v518_v25 = vrot.slane %v513_v24, 7 }
  0x74   : > { %v520_v26 = vsel %vm519_vm1, %v518_v25, %v512_v23 }
  0x75   : > { %v522_v28 = vsel %vm521_vm2, %v518_v25, %v520_v26 }
  0x76   : > { %v524_v29 = vsel %vm523_vm3, %v518_v25, %v522_v28  ;;  %533 = sbr.rel (%p767_p9) target bundleno = 290 (0x122), region = 78 }
  0x77   : > { %v526_v30 = vsel %vm525_vm4, %v518_v25, %v524_v29 }
  0x78   : > { %v528_v31 = vadd.f32 %v526_v30, %v324_v27 }
  0x7a   : > { %529 = vst [vmem:[#allocation2] sm:$0xf] %v528_v31 }
  0x7b   : > { %v845_v32 = vld [vmem:[%s1173_s1 + $0x38] sm:$0xff]  ;;  %v844_v34 = vld [vmem:[%s1173_s1 + $0x30] sm:$0xff]  ;;  %v843_v37 = vld [vmem:[%s1173_s1 + $0x28] sm:$0xff] }
  0x7c   : > { %v853_v33 = vld [vmem:[%s1173_s1 + $0x78] sm:$0xff]  ;;  %675 = vmatpush.bf16.msra.mxu0 %v845_v32  ;;  %v852_v35 = vld [vmem:[%s1173_s1 + $0x70] sm:$0xff]  ;;  %v851_v38 = vld [vmem:[%s1173_s1 + $0x68] sm:$0xff] }
  0x7d   : > { %688 = vmatpush.bf16.msra.mxu1 %v853_v33  ;;  %v842_v40 = vld [vmem:[%s1173_s1 + $0x20] sm:$0xff]  ;;  %v841_v42 = vld [vmem:[%s1173_s1 + $0x18] sm:$0xff]  ;;  %v840_v44 = vld [vmem:[%s1173_s1 + $0x10] sm:$0xff] }
  0x7e   : > { %v850_v41 = vld [vmem:[%s1173_s1 + $0x60] sm:$0xff]  ;;  %v849_v43 = vld [vmem:[%s1173_s1 + $0x58] sm:$0xff]  ;;  %v848_v45 = vld [vmem:[%s1173_s1 + $0x50] sm:$0xff] }
  0x7f   : > { %v839_v46 = vld [vmem:[%s1173_s1 + $0x8] sm:$0xff]  ;;  %v838_v48 = vld [vmem:[%s1173_s1] sm:$0xff] }
  0x80   : > { %676 = vmatpush.bf16.msra.mxu0 %v844_v34  ;;  %v847_v47 = vld [vmem:[%s1173_s1 + $0x48] sm:$0xff]  ;;  %v846_v49 = vld [vmem:[%s1173_s1 + $0x40] sm:$0xff] }
  0x81   : > { %v534_v36 = vld [vmem:[#allocation2] sm:$0xf]  ;;  %689 = vmatpush.bf16.msra.mxu1 %v852_v35  ;;  %v576_v54 = vld [vmem:[%s1174_s2] sm:$0x1] }
  0x82   : > { %v535_v39 = vmul.f32 0.00390625, %v534_v36  ;;  %v577_v55 = vunpack.c.l.bf16 %v576_v54 }
  0x84   : > { %537 = vst [vmem:[#allocation1] ss:$4 sm:$0xff] %v535_v39  ;;  %677 = vmatpush.bf16.msra.mxu0 %v843_v37  ;;  %v578_v56 = vperm.slane %v577_v55, 0 }
  0x85   : > { %690 = vmatpush.bf16.msra.mxu1 %v851_v38 }
  0x88   : > { %678 = vmatpush.bf16.msra.mxu0 %v842_v40 }
  0x89   : > { %691 = vmatpush.bf16.msra.mxu1 %v850_v41 }
  0x8b   : > { %v538_v50 = vld.sshfl [vmem:[#allocation1] sm:$0xff pattern:$0x73625140]  ;;  %v539_v51 = vld.sshfl [vmem:[#allocation1 + $0x8] sm:$0xff pattern:$0x73625140] }
  0x8c   : > { %679 = vmatpush.bf16.msra.mxu0 %v841_v42  ;;  %v542_v52 = vpack.c.bf16 %v538_v50, %v538_v50  ;;  %v543_v53 = vpack.c.bf16 %v539_v51, %v539_v51 }
  0x8d   : > { %692 = vmatpush.bf16.msra.mxu1 %v849_v43 }
  0x90   : > { %680 = vmatpush.bf16.msra.mxu0 %v840_v44 }
  0x91   : > { %693 = vmatpush.bf16.msra.mxu1 %v848_v45 }
  0x94   : > { %681 = vmatpush.bf16.msra.mxu0 %v839_v46 }
  0x95   : > { %694 = vmatpush.bf16.msra.mxu1 %v847_v47 }
  0x98   : > { %682 = vmatpush.bf16.msra.mxu0 %v838_v48 }
  0x99   : > { %695 = vmatpush.bf16.msra.mxu1 %v846_v49 }
  0x9b   : > { %683 = vmatmul.bf16.vlgmr.msra.gmra.mxu0 %v542_v52 }
  0x9c   : > { %696 = vmatmul.bf16.vlgmr.msra.gmra.mxu1 %v543_v53 }
 0x118   : > { %v684_v57 = vpop.f32.mrf.mxu0 }
 0x119   : > { %v697_v58 = vpop.f32.mrf.mxu1  ;;  %v685_v59 = vadd.f32 %v684_v57, %v578_v56 }
 0x11b   : > { %v698_v60 = vadd.f32 %v697_v58, %v685_v59 }
 0x11d   : > { %v701_v61 = vpack.c.bf16 %v698_v60, %v698_v60 }
 0x11f   : > { %702 = vst [vmem:[#allocation4] sm:$0x1] %v701_v61 }
 0x120   : > { %v686_v62 = vpop.f32.mrf.mxu0 }
 0x121   : > { %v699_v63 = vpop.f32.mrf.mxu1 }
 0x122 PF: > { %p858_p10 = scmp.eq.s32.totalorder %s980_s15, 1  ;;  %s943_s17 = smov [#allocation4]  }
 0x123   : > { %s709_s18 = sshll.u32 %s943_s17, 4  ;;  %s711_s22 = sshll.u32 %s1175_s3, 4  ;;  %s710_s18 = int_to_ptr.vmem [resolvable:$true] %s709_s18  ;;  %s712_s22 = int_to_ptr.hbm [resolvable:$true] %s711_s22 }
 0x124   : > { %855 = dma.vmem_to_hbm [thread:$0]  (%p858_p10), %s710_s18, 16, %s712_s22, [#allocation5]  }
 0x125   : > { %927 = dma.done.wait (%p858_p10), [#allocation5], 16  }
 0x126   : > { %929 = vsyncadd (%p858_p10), [#allocation5], 4294967280 }
 0x127 PF: > { %p11_p11 = scmp.ge.s32.totalorder %s983_s16, 4   ;;  %s1176_s12 = smov %s936_s13 }
 0x128   : > { %s1177_s13 = smov %s992_s19  ;;  %s1178_s14 = smov %s983_s16 }
 0x129   :  { %13 = sbr.rel (!%p11_p11) target bundleno = 2 (0x2), region = 110 }
 0x12e   :  { %725 = vsyncpa [#allocation5], 1 }
 0x12f   :  { %727 = vsyncpa [#allocation5 + $0x1], 1 }

</bundles_post_ra>
